<compile_context>
chip_gen: v7x
topology: tpu7x:2x2x1
jax: 0.10.0
libtpu: 0.0.40
codegen_flags: <defaults>
</compile_context>

<pallas_src>
import functools

import jax
import jax.numpy as jnp
from jax import lax
from jax.experimental import pallas as pl
from jax.experimental.pallas import tpu as pltpu

# ---- module constants (match the PyTorch script) ----
BLOCK_SIZE = 32     # causal mask size
N_EMBED = 128
NUM_HEADS = 4
HEAD_SIZE = 32      # head_size * num_heads == n_embed

_NEG_LARGE = -1e30  # finite "‑inf" (safer than -inf if masking ever changes)


def _mha_kernel(x_ref, wqkv_ref, wp_ref, bp_ref, o_ref, *, num_heads, head_size):
    """Fused multi-head causal attention + output projection for Bt batch rows.

    x_ref    : (Bt, T, C)      bf16 batch tile
    wqkv_ref : (C, 3*H*D)      bf16 packed [Q | K | V] projection weights (pre-transposed)
    wp_ref   : (H*D, C)        bf16 output projection weight (pre-transposed)
    bp_ref   : (1, C)          f32 output projection bias
    o_ref    : (Bt, T, C)      f32 output
    """
    Bt, T, C = x_ref.shape
    H, D = num_heads, head_size
    HD = H * D
    scale = C ** (-0.5)   # NOTE: PyTorch Head scales by C**-0.5 (embed dim), kept as-is.

    # One wide projection for all heads and all of Q/K/V: (Bt*T, C) @ (C, 3*H*D).
    xf = x_ref[...].reshape(Bt * T, C)
    qkv = jnp.dot(xf, wqkv_ref[...], preferred_element_type=jnp.float32)   # (Bt*T, 3*HD) f32

    # Split (128-lane-aligned slices), fold the score scale into Q once,
    # cast to bf16 for the small attention matmuls.
    q_all = (qkv[:, :HD] * scale).astype(jnp.bfloat16).reshape(Bt, T, HD)
    k_all = qkv[:, HD:2 * HD].astype(jnp.bfloat16).reshape(Bt, T, HD)
    v_all = qkv[:, 2 * HD:].astype(jnp.bfloat16).reshape(Bt, T, HD)

    # Causal mask: computed once per grid step, broadcast over Bt and heads.
    row = lax.broadcasted_iota(jnp.int32, (T, T), 0)
    col = lax.broadcasted_iota(jnp.int32, (T, T), 1)
    causal = col <= row

    wp_all = wp_ref[...]          # (HD, C) bf16, resident
    bias = bp_ref[...]            # (1, C)  f32, broadcasts over (Bt, T, C)

    acc = jnp.zeros((Bt, T, C), jnp.float32)
    for h in range(H):            # static unroll; H is small
        sl = slice(h * D, (h + 1) * D)
        q = q_all[:, :, sl]       # (Bt, T, D)
        k = k_all[:, :, sl]
        v = v_all[:, :, sl]

        # scores: contract over D, batched over Bt, no materialized transpose
        s = jnp.einsum('bqd,bkd->bqk', q, k,
                       preferred_element_type=jnp.float32)              # (Bt, T, T)
        s = jnp.where(causal, s, _NEG_LARGE)

        # softmax in f32; divide via EUP approximate reciprocal
        m = jnp.max(s, axis=-1, keepdims=True)
        e = jnp.exp(s - m)
        p = e * pl.reciprocal(jnp.sum(e, axis=-1, keepdims=True), approx=True)
        # dropout(p=0.1) on attention weights -> identity in eval mode

        ho = jnp.einsum('bqk,bkd->bqd', p.astype(jnp.bfloat16), v,
                        preferred_element_type=jnp.float32)              # (Bt, T, D)

        # accumulate the output projection per head (replaces concat + big matmul)
        acc = acc + jnp.einsum('bqd,dc->bqc', ho.astype(jnp.bfloat16), wp_all[sl, :],
                               preferred_element_type=jnp.float32)       # (Bt, T, C)

    out = acc + bias              # final dropout -> identity in eval mode
    o_ref[...] = out.astype(o_ref.dtype)


def _pick_block_batch(B):
    """Largest batch-tile in {16,8,4,2,1} dividing B that still leaves >=2 grid
    steps (keeps both v7x TensorCores fed)."""
    for bt in (16, 8, 4, 2, 1):
        if B % bt == 0 and B // bt >= 2:
            return bt
    return B   # B == 1


def multi_head_attention(x, wq, wk, wv, wp, bp):
    """x: (B, T, C) f32, T <= BLOCK_SIZE. wq/wk/wv: (H, C, D); wp: (H*D, C); bp: (C,).
    Returns (B, T, C) f32."""
    B, T, C = x.shape
    H, _, D = wq.shape
    assert C == N_EMBED and T <= BLOCK_SIZE and H * D == C

    # Pack the per-head Q/K/V weights into one (C, 3*H*D) matrix.
    def pack(w):                                    # (H, C, D) -> (C, H*D)
        return jnp.transpose(w, (1, 0, 2)).reshape(C, H * D)

    wqkv = jnp.concatenate([pack(wq), pack(wk), pack(wv)], axis=1)   # (C, 3*H*D)

    # bf16 operands at the kernel boundary; accumulation stays f32 inside.
    x_bf = x.astype(jnp.bfloat16)
    wqkv_bf = wqkv.astype(jnp.bfloat16)
    wp_bf = wp.astype(jnp.bfloat16)
    bp2d = bp.reshape(1, C).astype(jnp.float32)

    Bt = _pick_block_batch(B)
    grid = (B // Bt,)

    kernel = functools.partial(_mha_kernel, num_heads=H, head_size=D)

    return pl.pallas_call(
        kernel,
        out_shape=jax.ShapeDtypeStruct((B, T, C), jnp.float32),
        grid_spec=pltpu.PrefetchScalarGridSpec(
            num_scalar_prefetch=0,
            grid=grid,
            in_specs=[
                pl.BlockSpec((Bt, T, C), lambda i: (i, 0, 0)),        # x: Bt-row batch tile
                pl.BlockSpec((C, 3 * H * D), lambda i: (0, 0)),       # packed QKV weight (resident)
                pl.BlockSpec((H * D, C), lambda i: (0, 0)),           # output projection weight
                pl.BlockSpec((1, C), lambda i: (0, 0)),               # output projection bias
            ],
            out_specs=pl.BlockSpec((Bt, T, C), lambda i: (i, 0, 0)),
        ),
        compiler_params=pltpu.CompilerParams(
            dimension_semantics=("parallel",)),
    )(x_bf, wqkv_bf, wp_bf, bp2d)


def _reference(x, wq, wk, wv, wp, bp):
    """Pure-JAX f32 reference mirroring the PyTorch forward (eval mode)."""
    B, T, C = x.shape
    outs = []
    for h in range(wq.shape[0]):
        q = x @ wq[h]
        k = x @ wk[h]
        v = x @ wv[h]
        wei = (q @ jnp.swapaxes(k, -2, -1)) * C ** (-0.5)
        mask = jnp.tril(jnp.ones((T, T), dtype=bool))
        wei = jnp.where(mask[None], wei, -jnp.inf)
        wei = jax.nn.softmax(wei, axis=-1)
        outs.append(wei @ v)
    cat = jnp.concatenate(outs, axis=-1)
    return cat @ wp + bp


if __name__ == "__main__":
    key = jax.random.PRNGKey(0)
    k_x, k_q, k_k, k_v, k_p, k_b = jax.random.split(key, 6)

    B, T = 8, BLOCK_SIZE   # grid of 2 steps with Bt=4 (Bt*T = 128 rows per step)
    x = jax.random.normal(k_x, (B, T, N_EMBED), dtype=jnp.float32)

    # Deterministic parameter init (shapes from the module's __init__).
    # Per-head linear weights stored as (C, head_size) == PyTorch weight.T
    wq = jax.random.normal(k_q, (NUM_HEADS, N_EMBED, HEAD_SIZE), jnp.float32) * 0.05
    wk = jax.random.normal(k_k, (NUM_HEADS, N_EMBED, HEAD_SIZE), jnp.float32) * 0.05
    wv = jax.random.normal(k_v, (NUM_HEADS, N_EMBED, HEAD_SIZE), jnp.float32) * 0.05
    wp = jax.random.normal(k_p, (NUM_HEADS * HEAD_SIZE, N_EMBED), jnp.float32) * 0.05
    bp = jax.random.normal(k_b, (N_EMBED,), jnp.float32) * 0.05

    out = multi_head_attention(x, wq, wk, wv, wp, bp)
    out = jax.block_until_ready(out)

    ref = _reference(x, wq, wk, wv, wp, bp)
    assert out.shape == (B, T, N_EMBED)
    # bf16 matmul operands (f32 accumulation) -> loosen tolerance vs the f32 reference.
    assert jnp.allclose(out, ref, atol=3e-2, rtol=3e-2), "mismatch vs reference"

    print("KERNEL_OK")
</pallas_src>

<mosaic_0001>
module attributes {stable_mosaic.version = 11 : i64} {
  func.func @_mha_kernel(%arg0: i32, %arg1: memref<4x32x128xbf16, #tpu.memory_space<vmem>>, %arg2: memref<128x384xbf16, #tpu.memory_space<vmem>>, %arg3: memref<128x128xbf16, #tpu.memory_space<vmem>>, %arg4: memref<1x128xf32, #tpu.memory_space<vmem>>, %arg5: memref<4x32x128xf32, #tpu.memory_space<vmem>>) attributes {dimension_semantics = [#tpu.dimension_semantics<parallel>], iteration_bounds = array<i64: 2>, scalar_prefetch = 0 : i64, scratch_operands = 0 : i64, tpu.core_type = #tpu.core_type<tc>, window_params = [{transform_indices = @transform_0, window_bounds = array<i64: 4, 32, 128>}, {pipeline_mode = #tpu.pipeline_mode<synchronous>, transform_indices = @transform_1, window_bounds = array<i64: 128, 384>}, {pipeline_mode = #tpu.pipeline_mode<synchronous>, transform_indices = @transform_2, window_bounds = array<i64: 128, 128>}, {pipeline_mode = #tpu.pipeline_mode<synchronous>, transform_indices = @transform_3, window_bounds = array<i64: 1, 128>}, {transform_indices = @transform_4, window_bounds = array<i64: 4, 32, 128>}]} {
    %c0 = arith.constant 0 : index
    %c0_0 = arith.constant 0 : index
    %c0_1 = arith.constant 0 : index
    %0 = vector.load %arg1[%c0, %c0_0, %c0_1] : memref<4x32x128xbf16, #tpu.memory_space<vmem>>, vector<4x32x128xbf16>
    %1 = vector.shape_cast %0 : vector<4x32x128xbf16> to vector<128x128xbf16>
    %c0_2 = arith.constant 0 : index
    %c0_3 = arith.constant 0 : index
    %2 = vector.load %arg2[%c0_2, %c0_3] : memref<128x384xbf16, #tpu.memory_space<vmem>>, vector<128x384xbf16>
    %cst = arith.constant dense<0.000000e+00> : vector<128x384xf32>
    %3 = tpu.matmul %1, %2, %cst {dimension_numbers = #tpu.dot_dimension_numbers<[1], [0], [0], [1], [0, 0, 1, 1], [], []>} : vector<128x128xbf16>, vector<128x384xbf16>, vector<128x384xf32> -> vector<128x384xf32>
    %4 = vector.extract_strided_slice %3 {offsets = [0, 0], sizes = [128, 128], strides = [1, 1]} : vector<128x384xf32> to vector<128x128xf32>
    %cst_4 = arith.constant 0.0883883461 : f32
    %5 = vector.broadcast %cst_4 : f32 to vector<128x128xf32>
    %6 = arith.mulf %4, %5 : vector<128x128xf32>
    %7 = arith.truncf %6 : vector<128x128xf32> to vector<128x128xbf16>
    %8 = vector.shape_cast %7 : vector<128x128xbf16> to vector<4x32x128xbf16>
    %9 = vector.extract_strided_slice %3 {offsets = [0, 128], sizes = [128, 128], strides = [1, 1]} : vector<128x384xf32> to vector<128x128xf32>
    %10 = arith.truncf %9 : vector<128x128xf32> to vector<128x128xbf16>
    %11 = vector.shape_cast %10 : vector<128x128xbf16> to vector<4x32x128xbf16>
    %12 = vector.extract_strided_slice %3 {offsets = [0, 256], sizes = [128, 128], strides = [1, 1]} : vector<128x384xf32> to vector<128x128xf32>
    %13 = arith.truncf %12 : vector<128x128xf32> to vector<128x128xbf16>
    %14 = vector.shape_cast %13 : vector<128x128xbf16> to vector<4x32x128xbf16>
    %15 = tpu.iota {dimensions = array<i32: 0>} : vector<32x32xi32>
    %16 = tpu.iota {dimensions = array<i32: 1>} : vector<32x32xi32>
    %17 = arith.cmpi sle, %16, %15 : vector<32x32xi32>
    %c0_5 = arith.constant 0 : index
    %c0_6 = arith.constant 0 : index
    %18 = vector.load %arg3[%c0_5, %c0_6] : memref<128x128xbf16, #tpu.memory_space<vmem>>, vector<128x128xbf16>
    %c0_7 = arith.constant 0 : index
    %c0_8 = arith.constant 0 : index
    %19 = vector.load %arg4[%c0_7, %c0_8] : memref<1x128xf32, #tpu.memory_space<vmem>>, vector<1x128xf32>
    %cst_9 = arith.constant 0.000000e+00 : f32
    %20 = vector.broadcast %cst_9 : f32 to vector<4x32x128xf32>
    %21 = vector.extract_strided_slice %8 {offsets = [0, 0, 0], sizes = [4, 32, 32], strides = [1, 1, 1]} : vector<4x32x128xbf16> to vector<4x32x32xbf16>
    %22 = vector.extract_strided_slice %11 {offsets = [0, 0, 0], sizes = [4, 32, 32], strides = [1, 1, 1]} : vector<4x32x128xbf16> to vector<4x32x32xbf16>
    %23 = vector.extract_strided_slice %14 {offsets = [0, 0, 0], sizes = [4, 32, 32], strides = [1, 1, 1]} : vector<4x32x128xbf16> to vector<4x32x32xbf16>
    "tpu.trace_start"() <{level = 10 : i32, message = "bqd,bkd->bqk"}> : () -> ()
    %cst_10 = arith.constant dense<0.000000e+00> : vector<4x32x32xf32>
    %24 = tpu.matmul %21, %22, %cst_10 {dimension_numbers = #tpu.dot_dimension_numbers<[2], [2], [1], [1], [0, 0, 0, 1, 1, 1], [0], [0]>} : vector<4x32x32xbf16>, vector<4x32x32xbf16>, vector<4x32x32xf32> -> vector<4x32x32xf32>
    %cst_11 = arith.constant -1.000000e+30 : f32
    "tpu.trace_stop"() : () -> ()
    %25 = vector.shape_cast %17 : vector<32x32xi1> to vector<1x32x32xi1>
    %26 = vector.broadcast %25 : vector<1x32x32xi1> to vector<4x32x32xi1>
    %27 = vector.broadcast %cst_11 : f32 to vector<4x32x32xf32>
    %28 = arith.select %26, %24, %27 : vector<4x32x32xi1>, vector<4x32x32xf32>
    %cst_12 = arith.constant dense<0xFF800000> : vector<4x32xf32>
    %29 = vector.multi_reduction <maximumf>, %28, %cst_12 [2] : vector<4x32x32xf32> to vector<4x32xf32>
    %30 = vector.shape_cast %29 : vector<4x32xf32> to vector<4x32x1xf32>
    %31 = vector.broadcast %30 : vector<4x32x1xf32> to vector<4x32x32xf32>
    %32 = arith.subf %28, %31 : vector<4x32x32xf32>
    %33 = math.exp %32 : vector<4x32x32xf32>
    %cst_13 = arith.constant dense<0.000000e+00> : vector<4x32xf32>
    %34 = vector.multi_reduction <add>, %33, %cst_13 [2] : vector<4x32x32xf32> to vector<4x32xf32>
    %35 = vector.shape_cast %34 : vector<4x32xf32> to vector<4x32x1xf32>
    %36 = tpu.reciprocal %35 {approx = true} : vector<4x32x1xf32> -> vector<4x32x1xf32>
    %37 = vector.broadcast %36 : vector<4x32x1xf32> to vector<4x32x32xf32>
    %38 = arith.mulf %33, %37 : vector<4x32x32xf32>
    %39 = arith.truncf %38 : vector<4x32x32xf32> to vector<4x32x32xbf16>
    "tpu.trace_start"() <{level = 10 : i32, message = "bqk,bkd->bqd"}> : () -> ()
    %cst_14 = arith.constant dense<0.000000e+00> : vector<4x32x32xf32>
    %40 = tpu.matmul %39, %23, %cst_14 {dimension_numbers = #tpu.dot_dimension_numbers<[2], [1], [1], [2], [0, 0, 0, 1, 1, 2], [0], [0]>} : vector<4x32x32xbf16>, vector<4x32x32xbf16>, vector<4x32x32xf32> -> vector<4x32x32xf32>
    "tpu.trace_stop"() : () -> ()
    %41 = arith.truncf %40 : vector<4x32x32xf32> to vector<4x32x32xbf16>
    %42 = vector.extract_strided_slice %18 {offsets = [0, 0], sizes = [32, 128], strides = [1, 1]} : vector<128x128xbf16> to vector<32x128xbf16>
    "tpu.trace_start"() <{level = 10 : i32, message = "bqd,dc->bqc"}> : () -> ()
    %cst_15 = arith.constant dense<0.000000e+00> : vector<4x32x128xf32>
    %43 = tpu.matmul %41, %42, %cst_15 {dimension_numbers = #tpu.dot_dimension_numbers<[2], [0], [0, 1], [1], [0, 0, 0, 1, 1, 1], [], []>} : vector<4x32x32xbf16>, vector<32x128xbf16>, vector<4x32x128xf32> -> vector<4x32x128xf32>
    "tpu.trace_stop"() : () -> ()
    %44 = arith.addf %20, %43 : vector<4x32x128xf32>
    %45 = vector.extract_strided_slice %8 {offsets = [0, 0, 32], sizes = [4, 32, 32], strides = [1, 1, 1]} : vector<4x32x128xbf16> to vector<4x32x32xbf16>
    %46 = vector.extract_strided_slice %11 {offsets = [0, 0, 32], sizes = [4, 32, 32], strides = [1, 1, 1]} : vector<4x32x128xbf16> to vector<4x32x32xbf16>
    %47 = vector.extract_strided_slice %14 {offsets = [0, 0, 32], sizes = [4, 32, 32], strides = [1, 1, 1]} : vector<4x32x128xbf16> to vector<4x32x32xbf16>
    "tpu.trace_start"() <{level = 10 : i32, message = "bqd,bkd->bqk"}> : () -> ()
    %cst_16 = arith.constant dense<0.000000e+00> : vector<4x32x32xf32>
    %48 = tpu.matmul %45, %46, %cst_16 {dimension_numbers = #tpu.dot_dimension_numbers<[2], [2], [1], [1], [0, 0, 0, 1, 1, 1], [0], [0]>} : vector<4x32x32xbf16>, vector<4x32x32xbf16>, vector<4x32x32xf32> -> vector<4x32x32xf32>
    %cst_17 = arith.constant -1.000000e+30 : f32
    "tpu.trace_stop"() : () -> ()
    %49 = vector.shape_cast %17 : vector<32x32xi1> to vector<1x32x32xi1>
    %50 = vector.broadcast %49 : vector<1x32x32xi1> to vector<4x32x32xi1>
    %51 = vector.broadcast %cst_17 : f32 to vector<4x32x32xf32>
    %52 = arith.select %50, %48, %51 : vector<4x32x32xi1>, vector<4x32x32xf32>
    %cst_18 = arith.constant dense<0xFF800000> : vector<4x32xf32>
    %53 = vector.multi_reduction <maximumf>, %52, %cst_18 [2] : vector<4x32x32xf32> to vector<4x32xf32>
    %54 = vector.shape_cast %53 : vector<4x32xf32> to vector<4x32x1xf32>
    %55 = vector.broadcast %54 : vector<4x32x1xf32> to vector<4x32x32xf32>
    %56 = arith.subf %52, %55 : vector<4x32x32xf32>
    %57 = math.exp %56 : vector<4x32x32xf32>
    %cst_19 = arith.constant dense<0.000000e+00> : vector<4x32xf32>
    %58 = vector.multi_reduction <add>, %57, %cst_19 [2] : vector<4x32x32xf32> to vector<4x32xf32>
    %59 = vector.shape_cast %58 : vector<4x32xf32> to vector<4x32x1xf32>
    %60 = tpu.reciprocal %59 {approx = true} : vector<4x32x1xf32> -> vector<4x32x1xf32>
    %61 = vector.broadcast %60 : vector<4x32x1xf32> to vector<4x32x32xf32>
    %62 = arith.mulf %57, %61 : vector<4x32x32xf32>
    %63 = arith.truncf %62 : vector<4x32x32xf32> to vector<4x32x32xbf16>
    "tpu.trace_start"() <{level = 10 : i32, message = "bqk,bkd->bqd"}> : () -> ()
    %cst_20 = arith.constant dense<0.000000e+00> : vector<4x32x32xf32>
    %64 = tpu.matmul %63, %47, %cst_20 {dimension_numbers = #tpu.dot_dimension_numbers<[2], [1], [1], [2], [0, 0, 0, 1, 1, 2], [0], [0]>} : vector<4x32x32xbf16>, vector<4x32x32xbf16>, vector<4x32x32xf32> -> vector<4x32x32xf32>
    "tpu.trace_stop"() : () -> ()
    %65 = arith.truncf %64 : vector<4x32x32xf32> to vector<4x32x32xbf16>
    %66 = vector.extract_strided_slice %18 {offsets = [32, 0], sizes = [32, 128], strides = [1, 1]} : vector<128x128xbf16> to vector<32x128xbf16>
    "tpu.trace_start"() <{level = 10 : i32, message = "bqd,dc->bqc"}> : () -> ()
    %cst_21 = arith.constant dense<0.000000e+00> : vector<4x32x128xf32>
    %67 = tpu.matmul %65, %66, %cst_21 {dimension_numbers = #tpu.dot_dimension_numbers<[2], [0], [0, 1], [1], [0, 0, 0, 1, 1, 1], [], []>} : vector<4x32x32xbf16>, vector<32x128xbf16>, vector<4x32x128xf32> -> vector<4x32x128xf32>
    "tpu.trace_stop"() : () -> ()
    %68 = arith.addf %44, %67 : vector<4x32x128xf32>
    %69 = vector.extract_strided_slice %8 {offsets = [0, 0, 64], sizes = [4, 32, 32], strides = [1, 1, 1]} : vector<4x32x128xbf16> to vector<4x32x32xbf16>
    %70 = vector.extract_strided_slice %11 {offsets = [0, 0, 64], sizes = [4, 32, 32], strides = [1, 1, 1]} : vector<4x32x128xbf16> to vector<4x32x32xbf16>
    %71 = vector.extract_strided_slice %14 {offsets = [0, 0, 64], sizes = [4, 32, 32], strides = [1, 1, 1]} : vector<4x32x128xbf16> to vector<4x32x32xbf16>
    "tpu.trace_start"() <{level = 10 : i32, message = "bqd,bkd->bqk"}> : () -> ()
    %cst_22 = arith.constant dense<0.000000e+00> : vector<4x32x32xf32>
    %72 = tpu.matmul %69, %70, %cst_22 {dimension_numbers = #tpu.dot_dimension_numbers<[2], [2], [1], [1], [0, 0, 0, 1, 1, 1], [0], [0]>} : vector<4x32x32xbf16>, vector<4x32x32xbf16>, vector<4x32x32xf32> -> vector<4x32x32xf32>
    %cst_23 = arith.constant -1.000000e+30 : f32
    "tpu.trace_stop"() : () -> ()
    %73 = vector.shape_cast %17 : vector<32x32xi1> to vector<1x32x32xi1>
    %74 = vector.broadcast %73 : vector<1x32x32xi1> to vector<4x32x32xi1>
    %75 = vector.broadcast %cst_23 : f32 to vector<4x32x32xf32>
    %76 = arith.select %74, %72, %75 : vector<4x32x32xi1>, vector<4x32x32xf32>
    %cst_24 = arith.constant dense<0xFF800000> : vector<4x32xf32>
    %77 = vector.multi_reduction <maximumf>, %76, %cst_24 [2] : vector<4x32x32xf32> to vector<4x32xf32>
    %78 = vector.shape_cast %77 : vector<4x32xf32> to vector<4x32x1xf32>
    %79 = vector.broadcast %78 : vector<4x32x1xf32> to vector<4x32x32xf32>
    %80 = arith.subf %76, %79 : vector<4x32x32xf32>
    %81 = math.exp %80 : vector<4x32x32xf32>
    %cst_25 = arith.constant dense<0.000000e+00> : vector<4x32xf32>
    %82 = vector.multi_reduction <add>, %81, %cst_25 [2] : vector<4x32x32xf32> to vector<4x32xf32>
    %83 = vector.shape_cast %82 : vector<4x32xf32> to vector<4x32x1xf32>
    %84 = tpu.reciprocal %83 {approx = true} : vector<4x32x1xf32> -> vector<4x32x1xf32>
    %85 = vector.broadcast %84 : vector<4x32x1xf32> to vector<4x32x32xf32>
    %86 = arith.mulf %81, %85 : vector<4x32x32xf32>
    %87 = arith.truncf %86 : vector<4x32x32xf32> to vector<4x32x32xbf16>
    "tpu.trace_start"() <{level = 10 : i32, message = "bqk,bkd->bqd"}> : () -> ()
    %cst_26 = arith.constant dense<0.000000e+00> : vector<4x32x32xf32>
    %88 = tpu.matmul %87, %71, %cst_26 {dimension_numbers = #tpu.dot_dimension_numbers<[2], [1], [1], [2], [0, 0, 0, 1, 1, 2], [0], [0]>} : vector<4x32x32xbf16>, vector<4x32x32xbf16>, vector<4x32x32xf32> -> vector<4x32x32xf32>
    "tpu.trace_stop"() : () -> ()
    %89 = arith.truncf %88 : vector<4x32x32xf32> to vector<4x32x32xbf16>
    %90 = vector.extract_strided_slice %18 {offsets = [64, 0], sizes = [32, 128], strides = [1, 1]} : vector<128x128xbf16> to vector<32x128xbf16>
    "tpu.trace_start"() <{level = 10 : i32, message = "bqd,dc->bqc"}> : () -> ()
    %cst_27 = arith.constant dense<0.000000e+00> : vector<4x32x128xf32>
    %91 = tpu.matmul %89, %90, %cst_27 {dimension_numbers = #tpu.dot_dimension_numbers<[2], [0], [0, 1], [1], [0, 0, 0, 1, 1, 1], [], []>} : vector<4x32x32xbf16>, vector<32x128xbf16>, vector<4x32x128xf32> -> vector<4x32x128xf32>
    "tpu.trace_stop"() : () -> ()
    %92 = arith.addf %68, %91 : vector<4x32x128xf32>
    %93 = vector.extract_strided_slice %8 {offsets = [0, 0, 96], sizes = [4, 32, 32], strides = [1, 1, 1]} : vector<4x32x128xbf16> to vector<4x32x32xbf16>
    %94 = vector.extract_strided_slice %11 {offsets = [0, 0, 96], sizes = [4, 32, 32], strides = [1, 1, 1]} : vector<4x32x128xbf16> to vector<4x32x32xbf16>
    %95 = vector.extract_strided_slice %14 {offsets = [0, 0, 96], sizes = [4, 32, 32], strides = [1, 1, 1]} : vector<4x32x128xbf16> to vector<4x32x32xbf16>
    "tpu.trace_start"() <{level = 10 : i32, message = "bqd,bkd->bqk"}> : () -> ()
    %cst_28 = arith.constant dense<0.000000e+00> : vector<4x32x32xf32>
    %96 = tpu.matmul %93, %94, %cst_28 {dimension_numbers = #tpu.dot_dimension_numbers<[2], [2], [1], [1], [0, 0, 0, 1, 1, 1], [0], [0]>} : vector<4x32x32xbf16>, vector<4x32x32xbf16>, vector<4x32x32xf32> -> vector<4x32x32xf32>
    %cst_29 = arith.constant -1.000000e+30 : f32
    "tpu.trace_stop"() : () -> ()
    %97 = vector.shape_cast %17 : vector<32x32xi1> to vector<1x32x32xi1>
    %98 = vector.broadcast %97 : vector<1x32x32xi1> to vector<4x32x32xi1>
    %99 = vector.broadcast %cst_29 : f32 to vector<4x32x32xf32>
    %100 = arith.select %98, %96, %99 : vector<4x32x32xi1>, vector<4x32x32xf32>
    %cst_30 = arith.constant dense<0xFF800000> : vector<4x32xf32>
    %101 = vector.multi_reduction <maximumf>, %100, %cst_30 [2] : vector<4x32x32xf32> to vector<4x32xf32>
    %102 = vector.shape_cast %101 : vector<4x32xf32> to vector<4x32x1xf32>
    %103 = vector.broadcast %102 : vector<4x32x1xf32> to vector<4x32x32xf32>
    %104 = arith.subf %100, %103 : vector<4x32x32xf32>
    %105 = math.exp %104 : vector<4x32x32xf32>
    %cst_31 = arith.constant dense<0.000000e+00> : vector<4x32xf32>
    %106 = vector.multi_reduction <add>, %105, %cst_31 [2] : vector<4x32x32xf32> to vector<4x32xf32>
    %107 = vector.shape_cast %106 : vector<4x32xf32> to vector<4x32x1xf32>
    %108 = tpu.reciprocal %107 {approx = true} : vector<4x32x1xf32> -> vector<4x32x1xf32>
    %109 = vector.broadcast %108 : vector<4x32x1xf32> to vector<4x32x32xf32>
    %110 = arith.mulf %105, %109 : vector<4x32x32xf32>
    %111 = arith.truncf %110 : vector<4x32x32xf32> to vector<4x32x32xbf16>
    "tpu.trace_start"() <{level = 10 : i32, message = "bqk,bkd->bqd"}> : () -> ()
    %cst_32 = arith.constant dense<0.000000e+00> : vector<4x32x32xf32>
    %112 = tpu.matmul %111, %95, %cst_32 {dimension_numbers = #tpu.dot_dimension_numbers<[2], [1], [1], [2], [0, 0, 0, 1, 1, 2], [0], [0]>} : vector<4x32x32xbf16>, vector<4x32x32xbf16>, vector<4x32x32xf32> -> vector<4x32x32xf32>
    "tpu.trace_stop"() : () -> ()
    %113 = arith.truncf %112 : vector<4x32x32xf32> to vector<4x32x32xbf16>
    %114 = vector.extract_strided_slice %18 {offsets = [96, 0], sizes = [32, 128], strides = [1, 1]} : vector<128x128xbf16> to vector<32x128xbf16>
    "tpu.trace_start"() <{level = 10 : i32, message = "bqd,dc->bqc"}> : () -> ()
    %cst_33 = arith.constant dense<0.000000e+00> : vector<4x32x128xf32>
    %115 = tpu.matmul %113, %114, %cst_33 {dimension_numbers = #tpu.dot_dimension_numbers<[2], [0], [0, 1], [1], [0, 0, 0, 1, 1, 1], [], []>} : vector<4x32x32xbf16>, vector<32x128xbf16>, vector<4x32x128xf32> -> vector<4x32x128xf32>
    "tpu.trace_stop"() : () -> ()
    %116 = arith.addf %92, %115 : vector<4x32x128xf32>
    %117 = vector.shape_cast %19 : vector<1x128xf32> to vector<1x1x128xf32>
    %118 = vector.broadcast %117 : vector<1x1x128xf32> to vector<4x32x128xf32>
    %119 = arith.addf %116, %118 : vector<4x32x128xf32>
    %c0_34 = arith.constant 0 : index
    %c0_35 = arith.constant 0 : index
    %c0_36 = arith.constant 0 : index
    %120 = vector.load %arg5[%c0_34, %c0_35, %c0_36] : memref<4x32x128xf32, #tpu.memory_space<vmem>>, vector<4x32x128xf32>
    tpu.vector_store %arg5[%c0_34, %c0_35, %c0_36], %119 {strides = array<i32>} : memref<4x32x128xf32, #tpu.memory_space<vmem>>, vector<4x32x128xf32>,
    return
  }
  func.func @transform_0(%arg0: i32) -> (i32, i32, i32) {
    %c0_i32 = arith.constant 0 : i32
    %c0_i32_0 = arith.constant 0 : i32
    %c0_i32_1 = arith.constant 0 : i32
    return %arg0, %c0_i32, %c0_i32_0 : i32, i32, i32
  }
  func.func @transform_1(%arg0: i32) -> (i32, i32) {
    %c0_i32 = arith.constant 0 : i32
    %c0_i32_0 = arith.constant 0 : i32
    %c0_i32_1 = arith.constant 0 : i32
    return %c0_i32, %c0_i32_0 : i32, i32
  }
  func.func @transform_2(%arg0: i32) -> (i32, i32) {
    %c0_i32 = arith.constant 0 : i32
    %c0_i32_0 = arith.constant 0 : i32
    %c0_i32_1 = arith.constant 0 : i32
    return %c0_i32, %c0_i32_0 : i32, i32
  }
  func.func @transform_3(%arg0: i32) -> (i32, i32) {
    %c0_i32 = arith.constant 0 : i32
    %c0_i32_0 = arith.constant 0 : i32
    %c0_i32_1 = arith.constant 0 : i32
    return %c0_i32, %c0_i32_0 : i32, i32
  }
  func.func @transform_4(%arg0: i32) -> (i32, i32, i32) {
    %c0_i32 = arith.constant 0 : i32
    %c0_i32_0 = arith.constant 0 : i32
    %c0_i32_1 = arith.constant 0 : i32
    return %arg0, %c0_i32, %c0_i32_0 : i32, i32, i32
  }
}

</mosaic_0001>

<bundles_post_ra>
// kernel: tpu_custom_call.1
= control target key start
LH: loop header
LB: loop body
LE: loop exit
PB: predicated region body
PF: predicated region fallthrough
CT: control target
= control target key end

     0   :  { %9 = vsyncpa [#allocation3], 0  ;;  %s7341_s0 = inlined_call_operand.hbm [shape: bf16[8,32,128], index: 0, kind: input, shape index: {}]   ;;  %s7342_s1 = inlined_call_operand.hbm [shape: bf16[128,384], index: 1, kind: input, shape index: {}]   ;;  %s7343_s2 = inlined_call_operand.hbm [shape: bf16[128,128], index: 2, kind: input, shape index: {}]   ;;  %s7344_s3 = inlined_call_operand.vmem [shape: f32[1,128], index: 3, kind: input, shape index: {}]   ;;  %s7345_s4 = inlined_call_operand.hbm [shape: f32[8,32,128], index: 4, kind: output, shape index: {}]  }
   0x1   :  { %11 = vsyncpa [#allocation3 + $0x1], 0 }
   0x2   :  { %12 = vsyncpa [#allocation6], 0 }
   0x3   :  { %13 = vsyncpa [#allocation4], 0 }
   0x4   :  { %15 = vsyncpa [#allocation4 + $0x1], 0  ;;  %s5724_s15 = smov 0   ;;  %s5726_s16 = smov 0  }
   0x5   :  { %s5728_s17 = smov 0   ;;  %s5730_s18 = smov 0  }
   0x6 LB: > { %s5745_s19 = sadd.s32 4294967295, %s5683_s18   ;;  %s4349_s20 = sadd.s32 4294967294, %s5683_s18   ;;  %s5683_s18 = sphi %s5730_s18, %s7429_s18   ;;  %s5679_s17 = sphi %s5728_s17, %s7428_s17   ;;  %s5675_s16 = sphi %s5726_s16, %s7427_s16   ;;  %s5671_s15 = sphi %s5724_s15, %s7426_s15  }
   0x7   : > { %p41_p0 = scmp.ne.s32.totalorder %s5675_s16, %s5671_s15  ;;  %p7346_p1 = scmp.eq.s32.totalorder %s5745_s19, 0 }
   0x8   : > { %p134_p3 = scmp.eq.s32.totalorder %s4349_s20, 1  ;;  %p4350_p5 = scmp.ge.s32.totalorder %s5683_s18, 1 }
   0x9   : > { %p5754_p4 = por %p7346_p1, %p41_p0  ;;  %p141_p7 = scmp.lt.s32.totalorder %s5683_s18, 3 }
   0xa   : > { %p5759_p6 = por %p134_p3, %p41_p0  ;;  %s5685_s24 = smov [#allocation5]  }
   0xb   : > { %s7367_s21 = scalar_select %p5754_p4, 1, 0 }
   0xc   : > { %s7368_s22 = scalar_select %p5759_p6, 1, 0 }
   0xd   : > { %p5764_p8 = pnand %p4350_p5, %p141_p7  ;;  %s153_s25 = sshll.u32 %s5685_s24, 4  ;;  %s5768_s25 = int_to_ptr.vmem [resolvable:$true] %s153_s25 }
   0xe   : > { %s5686_s27 = smov [#allocation7]   ;;  %s5527_s5 = scalar_lea.hbm %s7342_s1, 3072 }
   0xf   : > { %p5158_p9 = pneg %p5764_p8  ;;  %s166_s28 = sshll.u32 %s5686_s27, 4  ;;  %s5779_s28 = int_to_ptr.vmem [resolvable:$true] %s166_s28 }
  0x10   : > { %p5528_p12 = scmp.ne.s32.totalorder %s7342_s1, %s5527_s5  ;;  %p5534_p5 = scmp.lt.u32.totalorder %s5527_s5, %s7342_s1 }
  0x11   : > { %p5775_p11 = pnand %p5158_p9, %p7346_p1 }
  0x13   : > { %p5529_p13 = pneg %p5775_p11 }
  0x15   : > { %p5530_p0 = pnand %p5529_p13, %p5528_p12 }
  0x17   : > { %p5531_p3 = pneg %p5530_p0 }
  0x19   : > { %p5536_p7 = pnand %p5534_p5, %p5531_p3 }
  0x1b   : > { %5539 = shalt.err (!%p5536_p7)
}
  0x1c   : > { %s5540_s10 = scalar_lea.vmem %s5768_s25, 3072  ;;  %p5548_p2 = scmp.lt.s32.totalorder %s5768_s25, %s5768_s25 }
  0x1d   : > { %p5541_p9 = scmp.ne.s32.totalorder %s5768_s25, %s5540_s10  ;;  %p5549_p12 = scmp.lt.s32.totalorder %s5540_s10, %s5540_s10 }
  0x1f   : > { %p5543_p10 = pnand %p5541_p9, %p5529_p13  ;;  %p5550_p0 = por %p5549_p12, %p5548_p2 }
  0x21   : > { %p5544_p1 = pneg %p5543_p10 }
  0x23   : > { %p5551_p6 = pnand %p5550_p0, %p5544_p1 }
  0x25   : > { %5554 = shalt.err (!%p5551_p6)
}
  0x26   : > { %s5687_s11 = smov 192   ;;  %s5688_s12 = smov 12  }
  0x27   : > { %5161 = dma.hbm_to_vmem [thread:$0]  (!%p5775_p11), %s7342_s1, 3072, %s5768_s25, [#allocation6], %s5687_s11, %s5687_s11, %s5688_s12  }
  0x28   : > { %s5555_s27 = scalar_lea.hbm %s7343_s2, 1024 }
  0x29   : > { %p5556_p2 = scmp.ne.s32.totalorder %s7343_s2, %s5555_s27  ;;  %p5562_p10 = scmp.lt.u32.totalorder %s5555_s27, %s7343_s2 }
  0x2b   : > { %p5558_p1 = pnand %p5556_p2, %p5529_p13 }
  0x2d   : > { %p5559_p6 = pneg %p5558_p1 }
  0x2f   : > { %p5564_p3 = pnand %p5562_p10, %p5559_p6 }
  0x31   : > { %5567 = shalt.err (!%p5564_p3)
}
  0x32   : > { %s5568_s25 = scalar_lea.vmem %s5779_s28, 1024  ;;  %p5576_p12 = scmp.lt.s32.totalorder %s5779_s28, %s5779_s28 }
  0x33   : > { %p5569_p5 = scmp.ne.s32.totalorder %s5779_s28, %s5568_s25  ;;  %p5577_p0 = scmp.lt.s32.totalorder %s5568_s25, %s5568_s25 }
  0x35   : > { %p5571_p7 = pnand %p5569_p5, %p5529_p13  ;;  %p5578_p2 = por %p5577_p0, %p5576_p12 }
  0x37   : > { %p5572_p9 = pneg %p5571_p7 }
  0x39   : > { %p5579_p1 = pnand %p5578_p2, %p5572_p9 }
  0x3b   : > { %5582 = shalt.err (!%p5579_p1)
}
  0x3c   : > { %s5689_s7 = smov 64   ;;  %s5690_s8 = smov 4  }
  0x3d   : > { %5164 = dma.hbm_to_vmem [thread:$0]  (!%p5775_p11), %s7343_s2, 1024, %s5779_s28, [#allocation6], %s5689_s7, %s5689_s7, %s5690_s8  }
  0x3e   : > { %s5837_s11 = sadd.s32 1, %s5683_s18   ;;  %s28_s13 = sadd.s32 1, %s5679_s17 }
  0x3f   : > { %s25_s12 = ssub.s32 %s5683_s18, %s5837_s11  ;;  %p35_p6 = scmp.ne.s32.totalorder %s5679_s17, %s5675_s16 }
  0x40   : > { %p26_p13 = scmp.eq.s32.totalorder %s25_s12, 0  ;;  %p36_p10 = scmp.eq.s32.totalorder %s5683_s18, 0 }
  0x41   : > { %p7371_p5 = scmp.eq.s32.totalorder %s5745_s19, 1  ;;  %p5175_p9 = scmp.lt.s32.totalorder %s5683_s18, 2 }
  0x42   : > { %s5846_s14 = scalar_select %p26_p13, %s5679_s17, %s28_s13  }
  0x43   : > { %p37_p3 = por %p36_p10, %p35_p6  ;;  %p5850_p7 = por %p7371_p5, %p35_p6 }
  0x44   : > { %s183_s20 = sand.u32 1, %s5679_s17   ;;  %s4507_s28 = sshll.u32 %s5683_s18, 10 }
  0x45   : > { %s7372_s26 = scalar_select %p5850_p7, 1, 0 }
  0x46   : > { %s4354_s24 = sshll.u32 %s183_s20, 6  ;;  %s5860_s30 = scalar_lea.hbm %s7341_s0, %s4507_s28 }
  0x47   : > { %s187_s5 = scalar_lea.vmem [#allocation2], %s4354_s24  ;;  %p5864_p11 = pnand %p5175_p9, %p37_p3 }
  0x48   : > { %s195_s6 = sshll.u32 %s187_s5, 4  ;;  %s5868_s9 = scalar_lea.sflag [#allocation3], %s183_s20  ;;  %s5862_s6 = int_to_ptr.vmem [resolvable:$true] %s195_s6 }
  0x49   : > { %s5583_s10 = scalar_lea.hbm %s5860_s30, 1024  ;;  %p5585_p0 = pneg %p5864_p11 }
  0x4a   : > { %p5584_p12 = scmp.ne.s32.totalorder %s5860_s30, %s5583_s10  ;;  %s5588_s24 = scalar_lea.hbm %s7341_s0, 2048 }
  0x4b   : > { %p5589_p13 = scmp.lt.u32.totalorder %s5860_s30, %s7341_s0  ;;  %p5590_p6 = scmp.lt.u32.totalorder %s5588_s24, %s5583_s10 }
  0x4c   : > { %p5586_p2 = pnand %p5585_p0, %p5584_p12  ;;  %p5592_p3 = scmp.lt.u32.totalorder %s5583_s10, %s5860_s30 }
  0x4d   : > { %p5591_p10 = por %p5590_p6, %p5589_p13 }
  0x4e   : > { %p5587_p1 = pneg %p5586_p2 }
  0x4f   : > { %p5593_p5 = por %p5592_p3, %p5591_p10 }
  0x51   : > { %p5594_p9 = pnand %p5593_p5, %p5587_p1 }
  0x53   : > { %5597 = shalt.err (!%p5594_p9)
}
  0x54   : > { %s5598_s20 = scalar_lea.vmem %s5862_s6, 1024  ;;  %s5691_s29 = smov [#allocation2]  }
  0x55   : > { %p5599_p12 = scmp.ne.s32.totalorder %s5862_s6, %s5598_s20  ;;  %s5603_s5 = sshll.u32 %s5691_s29, 4  ;;  %s5604_s5 = int_to_ptr.vmem [resolvable:$false] %s5603_s5 }
  0x56   : > { %s5605_s12 = scalar_lea.vmem %s5604_s5, 2048  ;;  %p5606_p4 = scmp.lt.s32.totalorder %s5862_s6, %s5604_s5 }
  0x57   : > { %p5601_p2 = pnand %p5599_p12, %p5585_p0  ;;  %p5607_p13 = scmp.lt.s32.totalorder %s5605_s12, %s5598_s20 }
  0x59   : > { %p5602_p7 = pneg %p5601_p2  ;;  %p5608_p6 = por %p5607_p13, %p5606_p4 }
  0x5b   : > { %p5609_p10 = pnand %p5608_p6, %p5602_p7 }
  0x5d   : > { %5612 = shalt.err (!%p5609_p10)
}
  0x5e   : > { %5168 = dma.hbm_to_vmem [thread:$0]  (!%p5864_p11), %s5860_s30, 1024, %s5862_s6, %s5868_s9, %s5689_s7, %s5689_s7, %s5690_s8  }
  0x5f   : > { %207 = sbr.rel (%p5764_p8) target bundleno = 3732 (0xe94), region = 36 }
  0x66   : > { %s5902_s10 = sand.u32 1, %s5675_s16   ;;  %p7374_p4 = scmp.ne.s32.totalorder %s7367_s21, 0 }
  0x67   : > { %s4359_s13 = sshll.u32 %s5902_s10, 6  ;;  %s210_s24 = scalar_lea.sflag [#allocation3], %s5902_s10 }
  0x68   : > { %s5906_s28 = scalar_lea.vmem [#allocation2], %s4359_s13 }
  0x69   : > { %5658 = dma.done.wait (%p7374_p4), %s210_s24, 1024  }
  0x6a   : > { %5660 = vsyncadd (%p7374_p4), %s210_s24, 4294966272  ;;  %p7375_p7 = scmp.eq.s32.totalorder %s5745_s19, 0 }
  0x6c   : > { %5662 = dma.done.wait (%p7375_p7), [#allocation6], 4096   ;;  %p7376_p8 = pmov %p7375_p7 }
  0x6d   : > { %v5692_v0 = vmov 0   ;;  %v5223_v1 = vld [vmem:[#allocation5 + $0x4] ss:$12 sps:$4 sm:$0xff]   ;;  %v5225_v2 = vld [vmem:[#allocation5] ss:$12 sps:$4 sm:$0xff]   ;;  %v5250_v28 = vld [vmem:[%s5906_s28 + $0x18] sm:$0xff]  }
  0x6e   : > { %5664 = vsyncadd (%p7376_p8), [#allocation6], 4294963200  ;;  %505 = vmatprep.mubr.bf16.mxu0 %v5692_v0  ;;  %473 = vmatprep.subr.bf16.mxu0 %v5223_v1  ;;  %v5226_v3 = vld [vmem:[#allocation5 + $0x1c] ss:$12 sps:$4 sm:$0xff]   ;;  %v5228_v4 = vld [vmem:[#allocation5 + $0x18] ss:$12 sps:$4 sm:$0xff]  }
  0x6f   : > { %474 = vmatpush1.bf16.msra.mxu0 %v5225_v2  ;;  %v5229_v5 = vld [vmem:[#allocation5 + $0x34] ss:$12 sps:$4 sm:$0xff]   ;;  %v5231_v6 = vld [vmem:[#allocation5 + $0x30] ss:$12 sps:$4 sm:$0xff]   ;;  %v5232_v7 = vld [vmem:[#allocation5 + $0x4c] ss:$12 sps:$4 sm:$0xff]  }
  0x70   : > { %475 = vmatprep.subr.bf16.mxu0 %v5226_v3  ;;  %v5234_v8 = vld [vmem:[#allocation5 + $0x48] ss:$12 sps:$4 sm:$0xff]   ;;  %v5247_v9 = vld [vmem:[%s5906_s28] sm:$0xff]   ;;  %v5243_v17 = vld [vmem:[#allocation5 + $0x90] ss:$12 sps:$4 sm:$0xff]   ;;  %vm751_vm0 = vcmask 261120  }
  0x71   : > { %v5235_v10 = vld [vmem:[#allocation5 + $0x64] ss:$12 sps:$4 sm:$0xff]   ;;  %4710 = vmatprep.mubr.bf16.mxu1 %v5247_v9  ;;  %v5237_v11 = vld [vmem:[#allocation5 + $0x60] ss:$12 sps:$4 sm:$0xff]   ;;  %v5238_v12 = vld [vmem:[#allocation5 + $0x7c] ss:$12 sps:$4 sm:$0xff]  }
  0x72   : > { %v5240_v13 = vld [vmem:[#allocation5 + $0x78] ss:$12 sps:$4 sm:$0xff]   ;;  %v5241_v14 = vld [vmem:[#allocation5 + $0x94] ss:$12 sps:$4 sm:$0xff]   ;;  %v5258_v21 = vld [vmem:[#allocation5 + $0x50] ss:$12 sps:$4 sm:$0xff]  }
  0x73   : > { %476 = vmatpush1.bf16.msra.mxu0 %v5228_v4  ;;  %v5255_v15 = vld [vmem:[#allocation5 + $0x8] ss:$12 sps:$4 sm:$0xff]   ;;  %v5256_v16 = vld [vmem:[#allocation5 + $0x20] ss:$12 sps:$4 sm:$0xff]   ;;  %v5257_v18 = vld [vmem:[#allocation5 + $0x38] ss:$12 sps:$4 sm:$0xff]  }
  0x74   : > { %477 = vmatprep.subr.bf16.mxu0 %v5229_v5  ;;  %4694 = vmatprep.subr.bf16.mxu1 %v5255_v15  ;;  %v5244_v19 = vld [vmem:[#allocation5 + $0xac] ss:$12 sps:$4 sm:$0xff]   ;;  %v5246_v20 = vld [vmem:[#allocation5 + $0xa8] ss:$12 sps:$4 sm:$0xff]   ;;  %v5262_v26 = vld [vmem:[#allocation5 + $0xb0] ss:$12 sps:$4 sm:$0xff]  }
  0x75   : > { %4695 = vmatpush3.bf16.msra.mxu1 %v5255_v15  ;;  %v5259_v22 = vld [vmem:[#allocation5 + $0x68] ss:$12 sps:$4 sm:$0xff]   ;;  %v5260_v23 = vld [vmem:[#allocation5 + $0x80] ss:$12 sps:$4 sm:$0xff]   ;;  %v5261_v25 = vld [vmem:[#allocation5 + $0x98] ss:$12 sps:$4 sm:$0xff]  }
  0x76   : > { %4696 = vmatprep.subr.bf16.mxu1 %v5256_v16  ;;  %v5248_v24 = vld [vmem:[%s5906_s28 + $0x8] sm:$0xff]   ;;  %v5249_v27 = vld [vmem:[%s5906_s28 + $0x10] sm:$0xff]   ;;  %v5251_v29 = vld [vmem:[%s5906_s28 + $0x20] sm:$0xff]   ;;  %s5693_s21 = smov 96   ;;  %s5694_s23 = smov 64  }
  0x77   : > { %478 = vmatpush1.bf16.msra.mxu0 %v5231_v6  ;;  %v5252_v30 = vld [vmem:[%s5906_s28 + $0x28] sm:$0xff]   ;;  %v5253_v31 = vld [vmem:[%s5906_s28 + $0x30] sm:$0xff]   ;;  %v5254_v32 = vld [vmem:[%s5906_s28 + $0x38] sm:$0xff]   ;;  %s5695_s7 = smov 32   ;;  %s4362_s8 = sshll.u32 %s5902_s10, 7 }
  0x78   : > { %479 = vmatprep.subr.bf16.mxu0 %v5232_v7  ;;  %s7246_s25 = scalar_lea.vmem [#allocation8], %s4362_s8  ;;  %s4509_s9 = sshll.u32 %s5745_s19, 11 }
  0x79   : > { %4697 = vmatpush3.bf16.msra.mxu1 %v5256_v16  ;;  %s4257_s27 = sshll.u32 %s7246_s25, 4  ;;  %s7291_s5 = scalar_lea.hbm %s7345_s4, %s4509_s9  ;;  %s7293_s27 = int_to_ptr.vmem [resolvable:$true] %s4257_s27 }
  0x7a   : > { %4698 = vmatprep.subr.bf16.mxu1 %v5257_v18  ;;  %s4243_s19 = scalar_lea.sflag [#allocation4], %s5902_s10  ;;  %s5613_s12 = scalar_lea.vmem %s7293_s27, 2048 }
  0x7b   : > { %480 = vmatpush1.bf16.msra.mxu0 %v5234_v8  ;;  %p5614_p11 = scmp.ne.s32.totalorder %s7293_s27, %s5613_s12  ;;  %p7423_p0 = scmp.ne.s32.totalorder %s7372_s26, 0 }
  0x7c   : > { %481 = vmatprep.subr.bf16.mxu0 %v5235_v10  ;;  %s5696_s13 = smov [#allocation8]  }
  0x7d   : > { %4699 = vmatpush3.bf16.msra.mxu1 %v5257_v18  ;;  %p5615_p1 = pnand %p5614_p11, %p7423_p0  ;;  %s5617_s24 = sshll.u32 %s5696_s13, 4  ;;  %s5618_s24 = int_to_ptr.vmem [resolvable:$false] %s5617_s24 }
  0x7e   : > { %4700 = vmatprep.subr.bf16.mxu1 %v5258_v21  ;;  %s5619_s28 = scalar_lea.vmem %s5618_s24, 4096  ;;  %p5620_p5 = scmp.lt.s32.totalorder %s7293_s27, %s5618_s24 }
  0x7f   : > { %482 = vmatpush1.bf16.msra.mxu0 %v5237_v11  ;;  %p5616_p3 = pneg %p5615_p1  ;;  %p5621_p9 = scmp.lt.s32.totalorder %s5619_s28, %s5613_s12 }
  0x80   : > { %483 = vmatprep.subr.bf16.mxu0 %v5238_v12 }
  0x81   : > { %4701 = vmatpush3.bf16.msra.mxu1 %v5258_v21  ;;  %p5622_p12 = por %p5621_p9, %p5620_p5 }
  0x82   : > { %4702 = vmatprep.subr.bf16.mxu1 %v5259_v22 }
  0x83   : > { %484 = vmatpush1.bf16.msra.mxu0 %v5240_v13  ;;  %p5623_p2 = pnand %p5622_p12, %p5616_p3 }
  0x84   : > { %485 = vmatprep.subr.bf16.mxu0 %v5241_v14 }
  0x85   : > { %4703 = vmatpush3.bf16.msra.mxu1 %v5259_v22 }
  0x86   : > { %4704 = vmatprep.subr.bf16.mxu1 %v5260_v23 }
  0x87   : > { %486 = vmatpush1.bf16.msra.mxu0 %v5243_v17 }
  0x88   : > { %487 = vmatprep.subr.bf16.mxu0 %v5244_v19 }
  0x89   : > { %4705 = vmatpush3.bf16.msra.mxu1 %v5260_v23 }
  0x8a   : > { %4706 = vmatprep.subr.bf16.mxu1 %v5261_v25 }
  0x8b   : > { %488 = vmatpush1.bf16.msra.mxu0 %v5246_v20 }
  0x8d   : > { %4707 = vmatpush3.bf16.msra.mxu1 %v5261_v25 }
  0x8e   : > { %506 = vmatmul.mubr.bf16.vlgmr.msra.gmra.mrb[0].mxu0 %v5247_v9  ;;  %4708 = vmatprep.subr.bf16.mxu1 %v5262_v26 }
  0x8f   : > { %515 = vmatprep.mubr.bf16.mxu0 %v5692_v0 }
  0x91   : > { %4709 = vmatpush3.bf16.msra.mxu1 %v5262_v26 }
  0x94   : > { %4711 = vmatmul.mubr.bf16.vlgmr.msra.gmra.mrb[0].mxu1 %v5248_v24 }
  0x95   : > { %4714 = vmatprep.mubr.bf16.mxu1 %v5249_v27 }
  0x96   : > { %516 = vmatmul.mubr.bf16.gmra.mrb[4].mxu0 %v5248_v24 }
  0x97   : > { %525 = vmatprep.mubr.bf16.mxu0 %v5692_v0 }
  0x9c   : > { %4715 = vmatmul.mubr.bf16.gmra.mrb[4].mxu1 %v5250_v28 }
  0x9d   : > { %4718 = vmatprep.mubr.bf16.mxu1 %v5251_v29 }
  0x9e   : > { %526 = vmatmul.mubr.bf16.gmra.mrb[8].mxu0 %v5249_v27 }
  0x9f   : > { %535 = vmatprep.mubr.bf16.mxu0 %v5692_v0 }
  0xa4   : > { %4719 = vmatmul.mubr.bf16.gmra.mrb[8].mxu1 %v5252_v30 }
  0xa5   : > { %4722 = vmatprep.mubr.bf16.mxu1 %v5253_v31 }
  0xa6   : > { %536 = vmatmul.mubr.bf16.gmra.mrb[12].mxu0 %v5250_v28 }
  0xa7   : > { %545 = vmatprep.mubr.bf16.mxu0 %v5692_v0 }
  0xac   : > { %4723 = vmatmul.mubr.bf16.gmra.mrb[12].mxu1 %v5254_v32 }
  0xae   : > { %546 = vmatmul.mubr.bf16.gmra.mrb[16].mxu0 %v5251_v29 }
  0xaf   : > { %555 = vmatprep.mubr.bf16.mxu0 %v5692_v0 }
  0xb6   : > { %556 = vmatmul.mubr.bf16.gmra.mrb[20].mxu0 %v5252_v30 }
  0xb7   : > { %565 = vmatprep.mubr.bf16.mxu0 %v5692_v0 }
  0xbe   : > { %566 = vmatmul.mubr.bf16.gmra.mrb[24].mxu0 %v5253_v31 }
  0xbf   : > { %575 = vmatprep.mubr.bf16.mxu0 %v5692_v0 }
  0xc6   : > { %576 = vmatmul.mubr.bf16.gmra.mrb[28].mxu0 %v5254_v32 }
 0x161   : > { %v507_v33 = vpop.f32.mrb[0].mxu0 }
 0x162   : > { %v509_v34 = vpop.f32.mrb[1].mxu0  ;;  %v683_v36 = vmul.f32 0.088388346, %v507_v33 }
 0x163   : > { %v511_v35 = vpop.f32.mrb[2].mxu0 }
 0x164   : > { %v684_v37 = vmul.f32 0.088388346, %v511_v35  ;;  %v513_v38 = vpop.f32.mrb[3].mxu0 }
 0x165   : > { %v5932_v39 = vpack.c.bf16 %v513_v38, %v509_v34 }
 0x166   : > { %v5934_v40 = vpack.c.bf16 %v684_v37, %v683_v36 }
 0x167   : > { %5114 = vmatprep.subr.msk.bf16.mxu1 %vm751_vm0, %v5932_v39  ;;  %v759_v41 = vsel %vm751_vm0, %v5932_v39, 0  ;;  %v4712_v57 = vpop.f32.mrb[0].mxu1 }
 0x168   : > { %4727 = vmatpush3.bf16.xpose.msra.mxu1 %v759_v41  ;;  %4730 = vmatprep.mubr.msk.bf16.mxu1 %vm751_vm0, %v5934_v40  ;;  %v620_v59 = vpop.f32.mrb[1].mxu1 }
 0x169   : > { %v517_v42 = vpop.f32.mrb[4].mxu0  ;;  %v4713_v61 = vpop.f32.mrb[2].mxu1 }
 0x16a   : > { %v519_v43 = vpop.f32.mrb[5].mxu0  ;;  %v685_v45 = vmul.f32 0.088388346, %v517_v42  ;;  %v5960_v63 = vpack.c.bf16 %v4713_v61, %v4712_v57  ;;  %v623_v0 = vpop.f32.mrb[3].mxu1 }
 0x16b   : > { %v521_v44 = vpop.f32.mrb[6].mxu0  ;;  %v5964_v1 = vpack.c.bf16 %v623_v0, %v620_v59 }
 0x16c   : > { %v686_v46 = vmul.f32 0.088388346, %v521_v44  ;;  %v523_v47 = vpop.f32.mrb[7].mxu0 }
 0x16d   : > { %v5942_v48 = vpack.c.bf16 %v523_v47, %v519_v43 }
 0x16e   : > { %v5944_v49 = vpack.c.bf16 %v686_v46, %v685_v45 }
 0x16f   : > { %5115 = vmatprep.subr.msk.bf16.mxu1 %vm751_vm0, %v5942_v48  ;;  %v762_v50 = vsel %vm751_vm0, %v5942_v48, 0  ;;  %v4716_v8 = vpop.f32.mrb[4].mxu1 }
 0x170   : > { %4729 = vmatpush3.bf16.xpose.msra.mxu1 %v762_v50  ;;  %v636_v10 = vpop.f32.mrb[5].mxu1 }
 0x171   : > { %v527_v51 = vpop.f32.mrb[8].mxu0  ;;  %v4717_v12 = vpop.f32.mrb[6].mxu1 }
 0x172   : > { %v529_v52 = vpop.f32.mrb[9].mxu0  ;;  %v687_v54 = vmul.f32 0.088388346, %v527_v51  ;;  %v5974_v14 = vpack.c.bf16 %v4717_v12, %v4716_v8  ;;  %v639_v15 = vpop.f32.mrb[7].mxu1 }
 0x173   : > { %v531_v53 = vpop.f32.mrb[10].mxu0  ;;  %v5976_v16 = vpack.c.bf16 %v639_v15, %v636_v10  ;;  %v723_v10 = vlaneseq }
 0x174   : > { %v688_v55 = vmul.f32 0.088388346, %v531_v53  ;;  %v533_v56 = vpop.f32.mrb[11].mxu0  ;;  %7377 = vst [vmem:[#allocation12_spill] sm:$0xff] %v5974_v14 }
 0x175   : > { %v5950_v58 = vpack.c.bf16 %v533_v56, %v529_v52  ;;  %7378 = vst [vmem:[#allocation13_spill] sm:$0xff] %v5976_v16  ;;  %v724_v12 = vshrl.u32 %v723_v10, 7  ;;  %v729_v15 = vand.u32 127, %v723_v10 }
 0x176   : > { %v5952_v60 = vpack.c.bf16 %v688_v55, %v687_v54 }
 0x177   : > { %4731 = vmatmul.mubr.msk.bf16.vlgmr.msra.gmra.mrb[16].mxu1 %vm751_vm0, %v5944_v49  ;;  %5116 = vmatprep.subr.msk.bf16.mxu1 %vm751_vm0, %v5950_v58  ;;  %v820_v62 = vsel %vm751_vm0, %v5950_v58, 0  ;;  %v4720_v23 = vpop.f32.mrb[8].mxu1  ;;  %vm6042_vm2 = vcmp.le.s32.totalorder %v729_v15, %v724_v12 }
 0x178   : > { %4735 = vmatpush3.bf16.xpose.msra.mxu1 %v820_v62  ;;  %4738 = vmatprep.mubr.msk.bf16.mxu1 %vm751_vm0, %v5952_v60  ;;  %v652_v25 = vpop.f32.mrb[9].mxu1 }
 0x179   : > { %v537_v2 = vpop.f32.mrb[12].mxu0  ;;  %v4721_v27 = vpop.f32.mrb[10].mxu1 }
 0x17a   : > { %v539_v3 = vpop.f32.mrb[13].mxu0  ;;  %v689_v5 = vmul.f32 0.088388346, %v537_v2  ;;  %v5988_v29 = vpack.c.bf16 %v4721_v27, %v4720_v23  ;;  %v655_v30 = vpop.f32.mrb[11].mxu1  ;;  %v7390_v27 = vmov 0 }
 0x17b   : > { %v541_v4 = vpop.f32.mrb[14].mxu0  ;;  %v5992_v31 = vpack.c.bf16 %v655_v30, %v652_v25 }
 0x17c   : > { %v690_v6 = vmul.f32 0.088388346, %v541_v4  ;;  %v543_v7 = vpop.f32.mrb[15].mxu0  ;;  %7379 = vst [vmem:[#allocation14_spill] sm:$0xff] %v5988_v29 }
 0x17d   : > { %v5966_v9 = vpack.c.bf16 %v543_v7, %v539_v3  ;;  %7380 = vst [vmem:[#allocation15_spill] sm:$0xff] %v5992_v31 }
 0x17e   : > { %v5968_v11 = vpack.c.bf16 %v690_v6, %v689_v5 }
 0x17f   : > { %5117 = vmatprep.subr.msk.bf16.mxu1 %vm751_vm0, %v5966_v9  ;;  %v823_v13 = vsel %vm751_vm0, %v5966_v9, 0  ;;  %v4724_v38 = vpop.f32.mrb[12].mxu1 }
 0x180   : > { %4737 = vmatpush3.bf16.xpose.msra.mxu1 %v823_v13  ;;  %v668_v42 = vpop.f32.mrb[13].mxu1  ;;  %v726_v13 = vadd.s32 16, %v724_v12 }
 0x181   : > { %v547_v17 = vpop.f32.mrb[16].mxu0  ;;  %v4725_v44 = vpop.f32.mrb[14].mxu1 }
 0x182   : > { %v549_v18 = vpop.f32.mrb[17].mxu0  ;;  %v691_v20 = vmul.f32 0.088388346, %v547_v17  ;;  %v6002_v46 = vpack.c.bf16 %v4725_v44, %v4724_v38  ;;  %v671_v47 = vpop.f32.mrb[15].mxu1  ;;  %v727_v17 = vadd.s32 24, %v724_v12  ;;  %vm6038_vm1 = vcmp.le.s32.totalorder %v729_v15, %v726_v13 }
 0x183   : > { %v551_v19 = vpop.f32.mrb[18].mxu0  ;;  %v6004_v50 = vpack.c.bf16 %v671_v47, %v668_v42 }
 0x184   : > { %v692_v21 = vmul.f32 0.088388346, %v551_v19  ;;  %v553_v22 = vpop.f32.mrb[19].mxu0  ;;  %v7381_v19 = vmov 0  ;;  %vm6046_vm3 = vcmp.le.s32.totalorder %v729_v15, %v727_v17 }
 0x185   : > { %v5978_v24 = vpack.c.bf16 %v553_v22, %v549_v18  ;;  %v725_v18 = vadd.s32 8, %v724_v12  ;;  %v7382_v19 = vsel %vm6038_vm1, 4294967295, %v7381_v19  ;;  %v7387_v22 = vmov 0 }
 0x186   : > { %v5980_v26 = vpack.c.bf16 %v692_v21, %v691_v20  ;;  %7383 = vst [vmem:[#allocation16_spill] sm:$0xff] %v7382_v19  ;;  %v7384_v20 = vmov 0  ;;  %v7388_v22 = vsel %vm6046_vm3, 4294967295, %v7387_v22 }
 0x187   : > { %4739 = vmatmul.mubr.msk.bf16.vlgmr.msra.gmra.mrb[20].mxu1 %vm751_vm0, %v5968_v11  ;;  %5118 = vmatprep.subr.msk.bf16.mxu0 %vm751_vm0, %v5978_v24  ;;  %v881_v28 = vsel %vm751_vm0, %v5978_v24, 0  ;;  %v7385_v20 = vsel %vm6042_vm2, 4294967295, %v7384_v20  ;;  %7389 = vst [vmem:[#allocation18_spill] sm:$0xff] %v7388_v22  ;;  %vm6054_vm4 = vcmp.le.s32.totalorder %v729_v15, %v725_v18 }
 0x188   : > { %4743 = vmatpush3.bf16.xpose.msra.mxu0 %v881_v28  ;;  %4746 = vmatprep.mubr.msk.bf16.mxu0 %vm751_vm0, %v5980_v26  ;;  %7386 = vst [vmem:[#allocation17_spill] sm:$0xff] %v7385_v20  ;;  %v7391_v27 = vsel %vm6054_vm4, 4294967295, %v7390_v27 }
 0x189   : > { %v557_v32 = vpop.f32.mrb[20].mxu0  ;;  %7392 = vst [vmem:[#allocation19_spill] sm:$0xff] %v7391_v27 }
 0x18a   : > { %v559_v33 = vpop.f32.mrb[21].mxu0  ;;  %v693_v35 = vmul.f32 0.088388346, %v557_v32 }
 0x18b   : > { %v561_v34 = vpop.f32.mrb[22].mxu0 }
 0x18c   : > { %v694_v36 = vmul.f32 0.088388346, %v561_v34  ;;  %v563_v37 = vpop.f32.mrb[23].mxu0 }
 0x18d   : > { %v5994_v41 = vpack.c.bf16 %v563_v37, %v559_v33 }
 0x18e   : > { %v5996_v43 = vpack.c.bf16 %v694_v36, %v693_v35 }
 0x18f   : > { %5119 = vmatprep.subr.msk.bf16.mxu0 %vm751_vm0, %v5994_v41  ;;  %v884_v45 = vsel %vm751_vm0, %v5994_v41, 0 }
 0x190   : > { %4745 = vmatpush3.bf16.xpose.msra.mxu0 %v884_v45 }
 0x191   : > { %v567_v51 = vpop.f32.mrb[24].mxu0  ;;  %4758 = vmatprep.subr.bf16.mxu0 %v5964_v1 }
 0x192   : > { %v695_v52 = vmul.f32 0.088388346, %v567_v51  ;;  %v569_v53 = vpop.f32.mrb[25].mxu0 }
 0x193   : > { %v571_v54 = vpop.f32.mrb[26].mxu0 }
 0x194   : > { %v696_v55 = vmul.f32 0.088388346, %v571_v54  ;;  %v573_v56 = vpop.f32.mrb[27].mxu0 }
 0x195   : > { %v6007_v57 = vpack.c.bf16 %v573_v56, %v569_v53 }
 0x196   : > { %v6009_v59 = vpack.c.bf16 %v696_v55, %v695_v52 }
 0x197   : > { %4747 = vmatmul.mubr.msk.bf16.vlgmr.msra.gmra.mrb[32].mxu0 %vm751_vm0, %v5996_v43  ;;  %5120 = vmatprep.subr.msk.bf16.mxu1 %vm751_vm0, %v6007_v57  ;;  %v942_v61 = vsel %vm751_vm0, %v6007_v57, 0 }
 0x198   : > { %4751 = vmatpush3.bf16.xpose.msra.mxu1 %v942_v61  ;;  %4754 = vmatprep.mubr.msk.bf16.mxu1 %vm751_vm0, %v6009_v59 }
 0x199   : > { %v577_v62 = vpop.f32.mrb[28].mxu0  ;;  %4759 = vmatpush3.bf16.msra.mxu0 %v5964_v1 }
 0x19a   : > { %v697_v0 = vmul.f32 0.088388346, %v577_v62  ;;  %v579_v2 = vpop.f32.mrb[29].mxu0  ;;  %4760 = vmatprep.subr.bf16.mxu0 %v5960_v63 }
 0x19b   : > { %v581_v3 = vpop.f32.mrb[30].mxu0 }
 0x19c   : > { %v698_v4 = vmul.f32 0.088388346, %v581_v3  ;;  %v583_v5 = vpop.f32.mrb[31].mxu0 }
 0x19d   : > { %v6021_v6 = vpack.c.bf16 %v583_v5, %v579_v2  ;;  %4761 = vmatpush3.bf16.msra.mxu0 %v5960_v63 }
 0x19e   : > { %v6024_v7 = vpack.c.bf16 %v698_v4, %v697_v0  ;;  %4774 = vmatprep.subr.bf16.mxu0 %v5992_v31 }
 0x19f   : > { %5121 = vmatprep.subr.msk.bf16.mxu1 %vm751_vm0, %v6021_v6  ;;  %v945_v8 = vsel %vm751_vm0, %v6021_v6, 0 }
 0x1a0   : > { %4753 = vmatpush3.bf16.xpose.msra.mxu1 %v945_v8 }
 0x1a1   : > { %4766 = vmatprep.subr.bf16.mxu1 %v5976_v16 }
 0x1a7   : > { %4755 = vmatmul.mubr.msk.bf16.vlgmr.msra.gmra.mrb[24].mxu1 %vm751_vm0, %v6024_v7 }
 0x1a8   : > { %4767 = vmatpush3.bf16.msra.mxu1 %v5976_v16 }
 0x1a9   : > { %4768 = vmatprep.subr.bf16.mxu1 %v5974_v14 }
 0x1ac   : > { %4769 = vmatpush3.bf16.msra.mxu1 %v5974_v14 }
 0x1ad   : > { %4782 = vmatprep.subr.bf16.mxu1 %v6004_v50 }
 0x24a   : > { %v4732_v21 = vpop.f32.mrb[16].mxu1 }
 0x24b   : > { %v6052_v23 = vsel %vm6038_vm1, %v4732_v21, -1e+30  ;;  %v798_v25 = vpop.f32.mrb[17].mxu1 }
 0x24c   : > { %v6060_v28 = vsel %vm6042_vm2, %v798_v25, -1e+30  ;;  %v4733_v30 = vpop.f32.mrb[18].mxu1  ;;  %v1026_v32 = vsel %vm751_vm0, %v6052_v23, -inf }
 0x24d   : > { %v6066_v33 = vsel %vm6046_vm3, %v4733_v30, -1e+30  ;;  %1027 = vmax.xlane.f32.xlu1 %v1026_v32  ;;  %v801_v34 = vpop.f32.mrb[19].mxu1  ;;  %v1020_v35 = vsel %vm751_vm0, %v6060_v28, -inf }
 0x24e   : > { %v6072_v36 = vsel %vm6054_vm4, %v801_v34, -1e+30  ;;  %1021 = vmax.xlane.f32.xlu0 %v1020_v35  ;;  %v1029_v37 = vsel %vm751_vm0, %v6066_v33, -inf }
 0x24f   : > { %v1023_v38 = vsel %vm751_vm0, %v6072_v36, -inf }
 0x251   : > { %1030 = vmax.xlane.f32.xlu1 %v1029_v37 }
 0x252   : > { %1024 = vmax.xlane.f32.xlu0 %v1023_v38 }
 0x25a   : > { %v4740_v42 = vpop.f32.mrb[20].mxu1 }
 0x25b   : > { %v6080_v44 = vsel %vm6038_vm1, %v4740_v42, -1e+30  ;;  %v859_v45 = vpop.f32.mrb[21].mxu1 }
 0x25c   : > { %v4741_v47 = vpop.f32.mrb[22].mxu1  ;;  %v1038_v51 = vsel %vm751_vm0, %v6080_v44, -inf  ;;  %v6086_v52 = vsel %vm6042_vm2, %v859_v45, -1e+30 }
 0x25d   : > { %v6090_v53 = vsel %vm6046_vm3, %v4741_v47, -1e+30  ;;  %1039 = vmax.xlane.f32.xlu0 %v1038_v51  ;;  %v862_v54 = vpop.f32.mrb[23].mxu1  ;;  %v1032_v61 = vsel %vm751_vm0, %v6086_v52, -inf }
 0x25e   : > { %v1041_v55 = vsel %vm751_vm0, %v6090_v53, -inf  ;;  %v6096_v56 = vsel %vm6054_vm4, %v862_v54, -1e+30 }
 0x25f   : > { %1042 = vmax.xlane.f32.xlu1 %v1041_v55  ;;  %v1035_v62 = vsel %vm751_vm0, %v6096_v56, -inf }
 0x261   : > { %1033 = vmax.xlane.f32.xlu0 %v1032_v61 }
 0x263   : > { %1036 = vmax.xlane.f32.xlu1 %v1035_v62 }
 0x26a   : > { %v4748_v0 = vpop.f32.mrb[32].mxu0 }
 0x26b   : > { %v920_v2 = vpop.f32.mrb[33].mxu0  ;;  %v6114_v12 = vsel %vm6038_vm1, %v4748_v0, -1e+30 }
 0x26c   : > { %v6104_v3 = vsel %vm6042_vm2, %v920_v2, -1e+30  ;;  %v4749_v4 = vpop.f32.mrb[34].mxu0  ;;  %v1050_v17 = vsel %vm751_vm0, %v6114_v12, -inf }
 0x26d   : > { %v6108_v5 = vsel %vm6046_vm3, %v4749_v4, -1e+30  ;;  %v1044_v8 = vsel %vm751_vm0, %v6104_v3, -inf  ;;  %v923_v10 = vpop.f32.mrb[35].mxu0 }
 0x26e   : > { %1045 = vmax.xlane.f32.xlu0 %v1044_v8  ;;  %v1053_v13 = vsel %vm751_vm0, %v6108_v5, -inf  ;;  %v6120_v15 = vsel %vm6054_vm4, %v923_v10, -1e+30 }
 0x26f   : > { %1054 = vmax.xlane.f32.xlu1 %v1053_v13  ;;  %v1047_v18 = vsel %vm751_vm0, %v6120_v15, -inf }
 0x272   : > { %1051 = vmax.xlane.f32.xlu0 %v1050_v17 }
 0x273   : > { %1048 = vmax.xlane.f32.xlu1 %v1047_v18 }
 0x27a   : > { %v4756_v21 = vpop.f32.mrb[24].mxu1 }
 0x27b   : > { %v981_v25 = vpop.f32.mrb[25].mxu1  ;;  %v6128_v30 = vsel %vm6038_vm1, %v4756_v21, -1e+30 }
 0x27c   : > { %v6132_v32 = vsel %vm6042_vm2, %v981_v25, -1e+30  ;;  %v4757_v34 = vpop.f32.mrb[26].mxu1  ;;  %v1062_v47 = vsel %vm751_vm0, %v6128_v30, -inf }
 0x27d   : > { %v6136_v35 = vsel %vm6046_vm3, %v4757_v34, -1e+30  ;;  %v1056_v37 = vsel %vm751_vm0, %v6132_v32, -inf  ;;  %v984_v38 = vpop.f32.mrb[27].mxu1 }
 0x27e   : > { %1057 = vmax.xlane.f32.xlu0 %v1056_v37  ;;  %v1065_v42 = vsel %vm751_vm0, %v6136_v35, -inf  ;;  %v6144_v45 = vsel %vm6054_vm4, %v984_v38, -1e+30 }
 0x27f   : > { %1066 = vmax.xlane.f32.xlu1 %v1065_v42  ;;  %v1059_v51 = vsel %vm751_vm0, %v6144_v45, -inf }
 0x282   : > { %1063 = vmax.xlane.f32.xlu0 %v1062_v47 }
 0x283   : > { %1060 = vmax.xlane.f32.xlu1 %v1059_v51 }
 0x2da   : > { %v1028_v54 = vpop.xlane.xlu1 %1027 }
 0x2db   : > { %v1070_v55 = vsub.f32 %v6052_v23, %v1028_v54  ;;  %v1022_v61 = vpop.xlane.xlu0 %1021 }
 0x2dc   : > { %v1068_v62 = vsub.f32 %v6060_v28, %v1022_v61 }
 0x2dd   : > { %v1088_v0 = vmul.f32 1.442695, %v1070_v55 }
 0x2de   : > { %v1084_v2 = vmul.f32 1.442695, %v1068_v62  ;;  %v1031_v4 = vpop.xlane.xlu1 %1030 }
 0x2df   : > { %5271 = vpow2.f32 %v1088_v0  ;;  %v1071_v8 = vsub.f32 %v6066_v33, %v1031_v4  ;;  %v1025_v10 = vpop.xlane.xlu0 %1024 }
 0x2e0   : > { %v1069_v13 = vsub.f32 %v6072_v36, %v1025_v10  ;;  %5273 = vpow2.f32 %v1084_v2 }
 0x2e1   : > { %v1090_v17 = vmul.f32 1.442695, %v1071_v8 }
 0x2e2   : > { %v1086_v18 = vmul.f32 1.442695, %v1069_v13 }
 0x2e3   : > { %5275 = vpow2.f32 %v1090_v17 }
 0x2e4   : > { %5277 = vpow2.f32 %v1086_v18 }
 0x2e9   : > { %v6154_v21 = vpop.eup %5271 }
 0x2ea   : > { %v1040_v23 = vpop.xlane.xlu0 %1039  ;;  %v1122_v28 = vsel %vm751_vm0, %v6154_v21, 0.0  ;;  %v6158_v25 = vpop.eup %5273 }
 0x2eb   : > { %v1074_v34 = vsub.f32 %v6080_v44, %v1040_v23  ;;  %1123 = vadd.xlane.f32.xlu0 %v1122_v28  ;;  %v1116_v47 = vsel %vm751_vm0, %v6158_v25, 0.0 }
 0x2ec   : > { %v1043_v33 = vpop.xlane.xlu1 %1042 }
 0x2ed   : > { %v6161_v37 = vpop.eup %5275  ;;  %v1096_v36 = vmul.f32 1.442695, %v1074_v34  ;;  %v1075_v38 = vsub.f32 %v6090_v53, %v1043_v33 }
 0x2ee   : > { %v1034_v42 = vpop.xlane.xlu0 %1033  ;;  %v1125_v51 = vsel %vm751_vm0, %v6161_v37, 0.0  ;;  %v6168_v54 = vpop.eup %5277 }
 0x2ef   : > { %5279 = vpow2.f32 %v1096_v36  ;;  %v1098_v55 = vmul.f32 1.442695, %v1075_v38  ;;  %v1072_v44 = vsub.f32 %v6086_v52, %v1034_v42  ;;  %1117 = vadd.xlane.f32.xlu0 %v1116_v47  ;;  %1126 = vadd.xlane.f32.xlu1 %v1125_v51  ;;  %v1119_v0 = vsel %vm751_vm0, %v6168_v54, 0.0 }
 0x2f0   : > { %v1037_v61 = vpop.xlane.xlu1 %1036 }
 0x2f1   : > { %5281 = vpow2.f32 %v1098_v55  ;;  %v1092_v62 = vmul.f32 1.442695, %v1072_v44  ;;  %v1073_v53 = vsub.f32 %v6096_v56, %v1037_v61 }
 0x2f3   : > { %5283 = vpow2.f32 %v1092_v62  ;;  %v1094_v2 = vmul.f32 1.442695, %v1073_v53  ;;  %1120 = vadd.xlane.f32.xlu1 %v1119_v0 }
 0x2f5   : > { %5285 = vpow2.f32 %v1094_v2 }
 0x2f9   : > { %v6174_v4 = vpop.eup %5279 }
 0x2fa   : > { %v1134_v8 = vsel %vm751_vm0, %v6174_v4, 0.0 }
 0x2fb   : > { %v6178_v52 = vpop.eup %5281  ;;  %v1046_v10 = vpop.xlane.xlu0 %1045  ;;  %1135 = vadd.xlane.f32.xlu0 %v1134_v8 }
 0x2fc   : > { %v1055_v13 = vpop.xlane.xlu1 %1054  ;;  %v1137_v56 = vsel %vm751_vm0, %v6178_v52, 0.0  ;;  %v1076_v23 = vsub.f32 %v6104_v3, %v1046_v10 }
 0x2fd   : > { %v6182_v17 = vpop.eup %5283  ;;  %v1079_v18 = vsub.f32 %v6108_v5, %v1055_v13  ;;  %1138 = vadd.xlane.f32.xlu1 %v1137_v56 }
 0x2fe   : > { %v1128_v28 = vsel %vm751_vm0, %v6182_v17, 0.0  ;;  %v1100_v51 = vmul.f32 1.442695, %v1076_v23 }
 0x2ff   : > { %v6188_v34 = vpop.eup %5285  ;;  %v1106_v33 = vmul.f32 1.442695, %v1079_v18  ;;  %v1052_v36 = vpop.xlane.xlu0 %1051  ;;  %1129 = vadd.xlane.f32.xlu0 %v1128_v28 }
 0x300   : > { %v1078_v38 = vsub.f32 %v6114_v12, %v1052_v36  ;;  %v1049_v42 = vpop.xlane.xlu1 %1048  ;;  %v1131_v47 = vsel %vm751_vm0, %v6188_v34, 0.0 }
 0x301   : > { %5287 = vpow2.f32 %v1106_v33  ;;  %v1077_v5 = vsub.f32 %v6120_v15, %v1049_v42  ;;  %1132 = vadd.xlane.f32.xlu1 %v1131_v47 }
 0x302   : > { %v1104_v3 = vmul.f32 1.442695, %v1078_v38 }
 0x303   : > { %v1102_v55 = vmul.f32 1.442695, %v1077_v5 }
 0x304   : > { %5289 = vpow2.f32 %v1104_v3 }
 0x305   : > { %5291 = vpow2.f32 %v1102_v55 }
 0x306   : > { %5293 = vpow2.f32 %v1100_v51 }
 0x30b   : > { %v6194_v44 = vpop.eup %5287  ;;  %v1058_v61 = vpop.xlane.xlu0 %1057 }
 0x30c   : > { %v1149_v12 = vsel %vm751_vm0, %v6194_v44, 0.0  ;;  %v1080_v53 = vsub.f32 %v6132_v32, %v1058_v61  ;;  %v1067_v36 = vpop.xlane.xlu1 %1066 }
 0x30d   : > { %1150 = vadd.xlane.f32.xlu1 %v1149_v12  ;;  %v1083_v38 = vsub.f32 %v6136_v35, %v1067_v36 }
 0x30e   : > { %v6198_v62 = vpop.eup %5289  ;;  %v1108_v56 = vmul.f32 1.442695, %v1080_v53 }
 0x30f   : > { %v6201_v0 = vpop.eup %5291  ;;  %v1064_v15 = vpop.xlane.xlu0 %1063  ;;  %v1146_v2 = vsel %vm751_vm0, %v6198_v62, 0.0  ;;  %v1114_v47 = vmul.f32 1.442695, %v1083_v38 }
 0x310   : > { %v6205_v8 = vpop.eup %5293  ;;  %v1082_v10 = vsub.f32 %v6128_v30, %v1064_v15  ;;  %1147 = vadd.xlane.f32.xlu0 %v1146_v2  ;;  %v1143_v13 = vsel %vm751_vm0, %v6201_v0, 0.0  ;;  %v1061_v42 = vpop.xlane.xlu1 %1060 }
 0x311   : > { %1144 = vadd.xlane.f32.xlu1 %v1143_v13  ;;  %v1140_v32 = vsel %vm751_vm0, %v6205_v8, 0.0  ;;  %v1081_v5 = vsub.f32 %v6144_v45, %v1061_v42 }
 0x312   : > { %v1112_v18 = vmul.f32 1.442695, %v1082_v10 }
 0x313   : > { %v1110_v51 = vmul.f32 1.442695, %v1081_v5 }
 0x314   : > { %5295 = vpow2.f32 %v1112_v18  ;;  %1141 = vadd.xlane.f32.xlu0 %v1140_v32 }
 0x315   : > { %5297 = vpow2.f32 %v1108_v56 }
 0x316   : > { %5299 = vpow2.f32 %v1114_v47 }
 0x317   : > { %5301 = vpow2.f32 %v1110_v51 }
 0x31e   : > { %v6212_v23 = vpop.eup %5295 }
 0x31f   : > { %v1158_v28 = vsel %vm751_vm0, %v6212_v23, 0.0  ;;  %v6216_v33 = vpop.eup %5297 }
 0x320   : > { %1159 = vadd.xlane.f32.xlu0 %v1158_v28  ;;  %v1152_v30 = vsel %vm751_vm0, %v6216_v33, 0.0  ;;  %v6232_v3 = vpop.eup %5299 }
 0x321   : > { %v1161_v35 = vsel %vm751_vm0, %v6232_v3, 0.0  ;;  %v6238_v45 = vpop.eup %5301 }
 0x322   : > { %1442 = vrot.lane.b32.xlu1 %v5942_v48, %s5693_s21  ;;  %v1155_v55 = vsel %vm751_vm0, %v6238_v45, 0.0 }
 0x324   : > { %1153 = vadd.xlane.f32.xlu0 %v1152_v30 }
 0x326   : > { %1513 = vrot.lane.b32.xlu1 %v5950_v58, %s5693_s21 }
 0x33a   : > { %1440 = vrot.lane.b32.xlu0 %v5932_v39, %s5693_s21 }
 0x33e   : > { %1515 = vrot.lane.b32.xlu0 %v5966_v9, %s5693_s21 }
 0x342   : > { %1436 = vrot.lane.b32.xlu0 %v5944_v49, %s5693_s21 }
 0x346   : > { %1509 = vrot.lane.b32.xlu0 %v5968_v11, %s5693_s21 }
 0x34a   : > { %1659 = vrot.lane.b32.xlu0 %v6007_v57, %s5693_s21  ;;  %1162 = vadd.xlane.f32.xlu1 %v1161_v35 }
 0x34e   : > { %1582 = vrot.lane.b32.xlu0 %v5996_v43, %s5693_s21  ;;  %1156 = vadd.xlane.f32.xlu1 %v1155_v55 }
 0x352   : > { %1653 = vrot.lane.b32.xlu0 %v6009_v59, %s5693_s21 }
 0x35f   : > { %1434 = vrot.lane.b32.xlu1 %v5934_v40, %s5693_s21 }
 0x363   : > { %1586 = vrot.lane.b32.xlu1 %v5978_v24, %s5693_s21 }
 0x367   : > { %1507 = vrot.lane.b32.xlu1 %v5952_v60, %s5693_s21 }
 0x36b   : > { %1588 = vrot.lane.b32.xlu1 %v5994_v41, %s5693_s21 }
 0x36f   : > { %1580 = vrot.lane.b32.xlu1 %v5980_v26, %s5693_s21 }
 0x373   : > { %1661 = vrot.lane.b32.xlu1 %v6021_v6, %s5693_s21 }
 0x377   : > { %1655 = vrot.lane.b32.xlu1 %v6024_v7, %s5693_s21 }
 0x378   : > { %v1124_v61 = vpop.xlane.xlu0 %1123 }
 0x37c   : > { %v1118_v12 = vpop.xlane.xlu0 %1117  ;;  %v1127_v53 = vpop.xlane.xlu1 %1126 }
 0x37d   : > { %5303 = vrcp.f32 %v1127_v53 }
 0x37e   : > { %5305 = vrcp.f32 %v1118_v12 }
 0x37f   : > { %5307 = vrcp.f32 %v1124_v61 }
 0x380   : > { %v1121_v15 = vpop.xlane.xlu1 %1120 }
 0x381   : > { %5309 = vrcp.f32 %v1121_v15 }
 0x387   : > { %v5304_v2 = vpop.eup %5303 }
 0x388   : > { %v1136_v10 = vpop.xlane.xlu0 %1135  ;;  %v5306_v13 = vpop.eup %5305  ;;  %v1183_v28 = vmul.f32 %v5304_v2, %v6161_v37 }
 0x389   : > { %v5308_v56 = vpop.eup %5307  ;;  %v1180_v36 = vmul.f32 %v5306_v13, %v6158_v25 }
 0x38a   : > { %v1139_v18 = vpop.xlane.xlu1 %1138  ;;  %v1182_v42 = vmul.f32 %v5308_v56, %v6154_v21 }
 0x38b   : > { %v5310_v32 = vpop.eup %5309  ;;  %5311 = vrcp.f32 %v1139_v18 }
 0x38c   : > { %v1130_v30 = vpop.xlane.xlu0 %1129  ;;  %v1181_v38 = vmul.f32 %v5310_v32, %v6168_v54  ;;  %v1197_v51 = vpack.c.bf16 %v1183_v28, %v1182_v42 }
 0x38d   : > { %5313 = vrcp.f32 %v1130_v30 }
 0x38e   : > { %5315 = vrcp.f32 %v1136_v10  ;;  %v1133_v47 = vpop.xlane.xlu1 %1132  ;;  %v1196_v5 = vpack.c.bf16 %v1181_v38, %v1180_v36 }
 0x38f   : > { %5317 = vrcp.f32 %v1133_v47 }
 0x390   : > { %4762 = vmatprep.mubr.msk.bf16.mxu0 %vm751_vm0, %v1196_v5 }
 0x391   : > { %4763 = vmatmul.mubr.msk.bf16.vlgmr.msra.gmra.mrb[36].mxu0 %vm751_vm0, %v1197_v51 }
 0x392   : > { %4775 = vmatpush3.bf16.msra.mxu0 %v5992_v31 }
 0x393   : > { %4776 = vmatprep.subr.bf16.mxu0 %v5988_v29 }
 0x395   : > { %v5312_v37 = vpop.eup %5311 }
 0x396   : > { %4777 = vmatpush3.bf16.msra.mxu0 %v5988_v29  ;;  %v1187_v35 = vmul.f32 %v5312_v37, %v6178_v52 }
 0x397   : > { %v5314_v25 = vpop.eup %5313 }
 0x398   : > { %v5316_v54 = vpop.eup %5315  ;;  %v1184_v61 = vmul.f32 %v5314_v25, %v6182_v17 }
 0x399   : > { %v5318_v21 = vpop.eup %5317  ;;  %v1186_v53 = vmul.f32 %v5316_v54, %v6174_v4 }
 0x39a   : > { %v1151_v55 = vpop.xlane.xlu1 %1150  ;;  %v1185_v12 = vmul.f32 %v5318_v21, %v6188_v34 }
 0x39b   : > { %v1199_v10 = vpack.c.bf16 %v1187_v35, %v1186_v53 }
 0x39c   : > { %v1198_v15 = vpack.c.bf16 %v1185_v12, %v1184_v61 }
 0x39d   : > { %v1148_v2 = vpop.xlane.xlu0 %1147 }
 0x39e   : > { %4770 = vmatprep.mubr.msk.bf16.mxu1 %vm751_vm0, %v1198_v15  ;;  %v1145_v13 = vpop.xlane.xlu1 %1144  ;;  %5319 = vrcp.f32 %v1148_v2 }
 0x39f   : > { %4771 = vmatmul.mubr.msk.bf16.vlgmr.msra.gmra.mrb[28].mxu1 %vm751_vm0, %v1199_v10  ;;  %5321 = vrcp.f32 %v1145_v13 }
 0x3a0   : > { %4783 = vmatpush3.bf16.msra.mxu1 %v6004_v50  ;;  %5323 = vrcp.f32 %v1151_v55 }
 0x3a1   : > { %4784 = vmatprep.subr.bf16.mxu1 %v6002_v46  ;;  %v1142_v52 = vpop.xlane.xlu0 %1141 }
 0x3a2   : > { %5325 = vrcp.f32 %v1142_v52  ;;  %v1443_v17 = vpop.permute.xlu1 %1442 }
 0x3a4   : > { %4785 = vmatpush3.bf16.msra.mxu1 %v6002_v46 }
 0x3a6   : > { %v1514_v4 = vpop.permute.xlu1 %1513 }
 0x3a7   : > { %5124 = vmatprep.subr.msk.bf16.mxu1 %vm751_vm0, %v1514_v4 }
 0x3a8   : > { %v5320_v34 = vpop.eup %5319 }
 0x3a9   : > { %v5322_v56 = vpop.eup %5321  ;;  %v1190_v28 = vmul.f32 %v5320_v34, %v6198_v62  ;;  %v1454_v62 = vsel %vm751_vm0, %v1443_v17, 0 }
 0x3aa   : > { %v5324_v18 = vpop.eup %5323  ;;  %v1189_v38 = vmul.f32 %v5322_v56, %v6201_v0 }
 0x3ab   : > { %v1191_v42 = vmul.f32 %v5324_v18, %v6194_v44 }
 0x3ac   : > { %v5326_v32 = vpop.eup %5325 }
 0x3ad   : > { %v1160_v30 = vpop.xlane.xlu0 %1159  ;;  %v1188_v36 = vmul.f32 %v5326_v32, %v6205_v8  ;;  %v1201_v5 = vpack.c.bf16 %v1191_v42, %v1190_v28  ;;  %v1524_v28 = vsel %vm751_vm0, %v1514_v4, 0 }
 0x3af   : > { %v1200_v47 = vpack.c.bf16 %v1189_v38, %v1188_v36 }
 0x3b1   : > { %v1154_v51 = vpop.xlane.xlu0 %1153  ;;  %4778 = vmatprep.mubr.msk.bf16.mxu0 %vm751_vm0, %v1200_v47 }
 0x3b2   : > { %4779 = vmatmul.mubr.msk.bf16.vlgmr.msra.gmra.mrb[40].mxu0 %vm751_vm0, %v1201_v5 }
 0x3b5   : > { %v1441_v37 = vpop.permute.xlu0 %1440 }
 0x3b6   : > { %5122 = vmatprep.subr.msk.bf16.mxu0 %vm751_vm0, %v1441_v37  ;;  %v1451_v25 = vsel %vm751_vm0, %v1441_v37, 0 }
 0x3b7   : > { %4791 = vmatpush3.bf16.xpose.msra.mxu0 %v1451_v25 }
 0x3b8   : > { %5123 = vmatprep.subr.msk.bf16.mxu0 %vm751_vm0, %v1443_v17 }
 0x3b9   : > { %v1516_v44 = vpop.permute.xlu0 %1515 }
 0x3bd   : > { %v1437_v21 = vpop.permute.xlu0 %1436 }
 0x3bf   : > { %4793 = vmatpush3.bf16.xpose.msra.mxu0 %v1454_v62 }
 0x3c1   : > { %v1510_v34 = vpop.permute.xlu0 %1509 }
 0x3d7   : > { %v1163_v0 = vpop.xlane.xlu1 %1162 }
 0x3d8   : > { %5327 = vrcp.f32 %v1163_v0 }
 0x3d9   : > { %5329 = vrcp.f32 %v1154_v51 }
 0x3da   : > { %5331 = vrcp.f32 %v1160_v30  ;;  %v1527_v30 = vsel %vm751_vm0, %v1516_v44, 0 }
 0x3db   : > { %v1157_v8 = vpop.xlane.xlu1 %1156 }
 0x3dc   : > { %5333 = vrcp.f32 %v1157_v8 }
 0x3df   : > { %v1435_v54 = vpop.permute.xlu1 %1434 }
 0x3e0   : > { %4794 = vmatprep.mubr.msk.bf16.mxu0 %vm751_vm0, %v1435_v54 }
 0x3e1   : > { %4795 = vmatmul.mubr.msk.bf16.vlgmr.msra.gmra.mrb[44].mxu0 %vm751_vm0, %v1437_v21 }
 0x3e2   : > { %v5328_v35 = vpop.eup %5327 }
 0x3e3   : > { %v1587_v55 = vpop.permute.xlu1 %1586  ;;  %v5330_v61 = vpop.eup %5329  ;;  %v1195_v2 = vmul.f32 %v5328_v35, %v6232_v3 }
 0x3e4   : > { %5126 = vmatprep.subr.msk.bf16.mxu0 %vm751_vm0, %v1587_v55  ;;  %v1597_v12 = vsel %vm751_vm0, %v1587_v55, 0  ;;  %v5332_v53 = vpop.eup %5331  ;;  %v1192_v13 = vmul.f32 %v5330_v61, %v6216_v33  ;;  %v1660_v33 = vpop.permute.xlu0 %1659 }
 0x3e5   : > { %4807 = vmatpush3.bf16.xpose.msra.mxu0 %v1597_v12  ;;  %v1194_v17 = vmul.f32 %v5332_v53, %v6212_v23  ;;  %v1670_v36 = vsel %vm751_vm0, %v1660_v33, 0 }
 0x3e6   : > { %v5334_v15 = vpop.eup %5333 }
 0x3e7   : > { %v1508_v10 = vpop.permute.xlu1 %1507  ;;  %v1193_v52 = vmul.f32 %v5334_v15, %v6238_v45  ;;  %v1203_v18 = vpack.c.bf16 %v1195_v2, %v1194_v17 }
 0x3e8   : > { %v1583_v45 = vpop.permute.xlu0 %1582 }
 0x3e9   : > { %v1202_v56 = vpack.c.bf16 %v1193_v52, %v1192_v13 }
 0x3eb   : > { %4786 = vmatprep.mubr.msk.bf16.mxu1 %vm751_vm0, %v1202_v56  ;;  %v1589_v32 = vpop.permute.xlu1 %1588 }
 0x3ec   : > { %4787 = vmatmul.mubr.msk.bf16.vlgmr.msra.gmra.mrb[32].mxu1 %vm751_vm0, %v1203_v18  ;;  %5127 = vmatprep.subr.msk.bf16.mxu0 %vm751_vm0, %v1589_v32  ;;  %v1600_v3 = vsel %vm751_vm0, %v1589_v32, 0  ;;  %v1654_v4 = vpop.permute.xlu0 %1653 }
 0x3ed   : > { %4799 = vmatpush3.bf16.xpose.msra.mxu1 %v1524_v28  ;;  %4802 = vmatprep.mubr.msk.bf16.mxu1 %vm751_vm0, %v1508_v10 }
 0x3ee   : > { %5125 = vmatprep.subr.msk.bf16.mxu1 %vm751_vm0, %v1516_v44  ;;  %4809 = vmatpush3.bf16.xpose.msra.mxu0 %v1600_v3 }
 0x3ef   : > { %v1581_v23 = vpop.permute.xlu1 %1580 }
 0x3f0   : > { %4810 = vmatprep.mubr.msk.bf16.mxu0 %vm751_vm0, %v1581_v23 }
 0x3f3   : > { %v1662_v38 = vpop.permute.xlu1 %1661 }
 0x3f4   : > { %v1673_v42 = vsel %vm751_vm0, %v1662_v38, 0 }
 0x3f5   : > { %4801 = vmatpush3.bf16.xpose.msra.mxu1 %v1527_v30  ;;  %4811 = vmatmul.mubr.msk.bf16.vlgmr.msra.gmra.mrb[48].mxu0 %vm751_vm0, %v1583_v45 }
 0x3f6   : > { %5128 = vmatprep.subr.msk.bf16.mxu1 %vm751_vm0, %v1660_v33 }
 0x3f7   : > { %v1656_v47 = vpop.permute.xlu1 %1655 }
 0x3fc   : > { %4803 = vmatmul.mubr.msk.bf16.vlgmr.msra.gmra.mrb[36].mxu1 %vm751_vm0, %v1510_v34 }
 0x3fd   : > { %4815 = vmatpush3.bf16.xpose.msra.mxu1 %v1670_v36  ;;  %4818 = vmatprep.mubr.msk.bf16.mxu1 %vm751_vm0, %v1654_v4 }
 0x3fe   : > { %5129 = vmatprep.subr.msk.bf16.mxu1 %vm751_vm0, %v1662_v38 }
 0x405   : > { %4817 = vmatpush3.bf16.xpose.msra.mxu1 %v1673_v42 }
 0x40c   : > { %4819 = vmatmul.mubr.msk.bf16.vlgmr.msra.gmra.mrb[40].mxu1 %vm751_vm0, %v1656_v47 }
 0x464   : > { %v6316_v5 = vpop.f32.mrb[36].mxu0 }
 0x465   : > { %v6318_v51 = vpop.f32.mrb[37].mxu0 }
 0x466   : > { %v6320_v37 = vpop.f32.mrb[38].mxu0 }
 0x467   : > { %v6324_v62 = vpop.f32.mrb[39].mxu0 }
 0x472   : > { %v6328_v44 = vpop.f32.mrb[28].mxu1 }
 0x473   : > { %v6330_v8 = vpop.f32.mrb[29].mxu1 }
 0x474   : > { %v6332_v54 = vpop.f32.mrb[30].mxu1 }
 0x475   : > { %v6336_v35 = vpop.f32.mrb[31].mxu1 }
 0x485   : > { %v6340_v61 = vpop.f32.mrb[40].mxu0 }
 0x486   : > { %v6342_v12 = vpop.f32.mrb[41].mxu0 }
 0x487   : > { %v6344_v53 = vpop.f32.mrb[42].mxu0 }
 0x488   : > { %v6348_v2 = vpop.f32.mrb[43].mxu0 }
 0x4b4   : > { %v4796_v13 = vpop.f32.mrb[44].mxu0 }
 0x4b5   : > { %v6354_v52 = vsel %vm6038_vm1, %v4796_v13, -1e+30  ;;  %v1490_v17 = vpop.f32.mrb[45].mxu0 }
 0x4b6   : > { %v4797_v34 = vpop.f32.mrb[46].mxu0  ;;  %v1746_v56 = vsel %vm751_vm0, %v6354_v52, -inf  ;;  %v6360_v18 = vsel %vm6042_vm2, %v1490_v17, -1e+30 }
 0x4b7   : > { %v6364_v32 = vsel %vm6046_vm3, %v4797_v34, -1e+30  ;;  %1747 = vmax.xlane.f32.xlu0 %v1746_v56  ;;  %v1493_v28 = vpop.f32.mrb[47].mxu0  ;;  %v1740_v23 = vsel %vm751_vm0, %v6360_v18, -inf }
 0x4b8   : > { %v1749_v3 = vsel %vm751_vm0, %v6364_v32, -inf  ;;  %v6370_v33 = vsel %vm6054_vm4, %v1493_v28, -1e+30 }
 0x4b9   : > { %1750 = vmax.xlane.f32.xlu1 %v1749_v3  ;;  %v1743_v45 = vsel %vm751_vm0, %v6370_v33, -inf }
 0x4bb   : > { %1741 = vmax.xlane.f32.xlu0 %v1740_v23 }
 0x4bd   : > { %1744 = vmax.xlane.f32.xlu1 %v1743_v45 }
 0x4bf   : > { %v6376_v30 = vpop.f32.mrb[32].mxu1 }
 0x4c0   : > { %7393 = vst [vmem:[#allocation20_spill] sm:$0xff] %v6376_v30  ;;  %v6378_v4 = vpop.f32.mrb[33].mxu1 }
 0x4c1   : > { %v6380_v36 = vpop.f32.mrb[34].mxu1 }
 0x4c2   : > { %7394 = vst [vmem:[#allocation21_spill] sm:$0xff] %v6380_v36  ;;  %v6384_v42 = vpop.f32.mrb[35].mxu1 }
 0x4c8   : > { %v4812_v13 = vpop.f32.mrb[48].mxu0 }
 0x4c9   : > { %v1636_v17 = vpop.f32.mrb[49].mxu0  ;;  %v6396_v38 = vsel %vm6038_vm1, %v4812_v13, -1e+30 }
 0x4ca   : > { %v4813_v34 = vpop.f32.mrb[50].mxu0  ;;  %v1770_v55 = vsel %vm751_vm0, %v6396_v38, -inf }
 0x4cb   : > { %v1639_v56 = vpop.f32.mrb[51].mxu0 }
 0x4cf   : > { %v4804_v28 = vpop.f32.mrb[36].mxu1 }
 0x4d0   : > { %v6390_v3 = vsel %vm6038_vm1, %v4804_v28, -1e+30  ;;  %v1563_v23 = vpop.f32.mrb[37].mxu1  ;;  %v6406_v28 = vsel %vm6046_vm3, %v4813_v34, -1e+30 }
 0x4d1   : > { %v4805_v45 = vpop.f32.mrb[38].mxu1  ;;  %v1758_v15 = vsel %vm751_vm0, %v6390_v3, -inf  ;;  %v6412_v13 = vsel %vm6042_vm2, %v1563_v23, -1e+30  ;;  %v6420_v34 = vsel %vm6042_vm2, %v1636_v17, -1e+30 }
 0x4d2   : > { %v6400_v47 = vsel %vm6046_vm3, %v4805_v45, -1e+30  ;;  %1759 = vmax.xlane.f32.xlu0 %v1758_v15  ;;  %v1566_v10 = vpop.f32.mrb[39].mxu1  ;;  %v1773_v15 = vsel %vm751_vm0, %v6406_v28, -inf  ;;  %v1752_v45 = vsel %vm751_vm0, %v6412_v13, -inf }
 0x4d3   : > { %v1761_v21 = vsel %vm751_vm0, %v6400_v47, -inf  ;;  %v6426_v23 = vsel %vm6054_vm4, %v1566_v10, -1e+30  ;;  %v6440_v10 = vsel %vm6054_vm4, %v1639_v56, -1e+30 }
 0x4d4   : > { %1762 = vmax.xlane.f32.xlu1 %v1761_v21  ;;  %v1764_v21 = vsel %vm751_vm0, %v6420_v34, -inf }
 0x4d6   : > { %1771 = vmax.xlane.f32.xlu0 %v1770_v55 }
 0x4d8   : > { %1774 = vmax.xlane.f32.xlu1 %v1773_v15  ;;  %v1755_v15 = vsel %vm751_vm0, %v6426_v23, -inf }
 0x4da   : > { %1753 = vmax.xlane.f32.xlu0 %v1752_v45  ;;  %v1767_v45 = vsel %vm751_vm0, %v6440_v10, -inf }
 0x4de   : > { %1765 = vmax.xlane.f32.xlu0 %v1764_v21 }
 0x4df   : > { %v4820_v55 = vpop.f32.mrb[40].mxu1 }
 0x4e0   : > { %v1709_v25 = vpop.f32.mrb[41].mxu1  ;;  %v6444_v17 = vsel %vm6038_vm1, %v4820_v55, -1e+30 }
 0x4e1   : > { %v4821_v0 = vpop.f32.mrb[42].mxu1 }
 0x4e2   : > { %1756 = vmax.xlane.f32.xlu0 %v1755_v15  ;;  %v1712_v30 = vpop.f32.mrb[43].mxu1  ;;  %v6450_v21 = vsel %vm6046_vm3, %v4821_v0, -1e+30  ;;  %v1782_v15 = vsel %vm751_vm0, %v6444_v17, -inf }
 0x4e3   : > { %v1785_v56 = vsel %vm751_vm0, %v6450_v21, -inf  ;;  %v6462_v55 = vsel %vm6054_vm4, %v1712_v30, -1e+30 }
 0x4e9   : > { %1989 = vrot.lane.b32.xlu1 %v5976_v16, %s5693_s21 }
 0x4ed   : > { %1928 = vrot.lane.b32.xlu1 %v5960_v63, %s5693_s21 }
 0x4f1   : > { %1991 = vrot.lane.b32.xlu1 %v5974_v14, %s5693_s21  ;;  %v6456_v14 = vsel %vm6042_vm2, %v1709_v25, -1e+30 }
 0x4f2   : > { %v1776_v0 = vsel %vm751_vm0, %v6456_v14, -inf }
 0x4f8   : > { %1926 = vrot.lane.b32.xlu0 %v5964_v1, %s5693_s21 }
 0x515   : > { %1768 = vmax.xlane.f32.xlu1 %v1767_v45  ;;  %v1779_v45 = vsel %vm751_vm0, %v6462_v55, -inf }
 0x517   : > { %1783 = vmax.xlane.f32.xlu0 %v1782_v15 }
 0x519   : > { %1786 = vmax.xlane.f32.xlu1 %v1785_v56 }
 0x51b   : > { %1777 = vmax.xlane.f32.xlu0 %v1776_v0 }
 0x51d   : > { %1780 = vmax.xlane.f32.xlu1 %v1779_v45 }
 0x52e   : > { %2054 = vrot.lane.b32.xlu1 %v5988_v29, %s5693_s21 }
 0x531   : > { %2052 = vrot.lane.b32.xlu0 %v5992_v31, %s5693_s21 }
 0x544   : > { %v1748_v25 = vpop.xlane.xlu0 %1747 }
 0x545   : > { %v1790_v15 = vsub.f32 %v6354_v52, %v1748_v25 }
 0x546   : > { %v1751_v30 = vpop.xlane.xlu1 %1750 }
 0x547   : > { %v1808_v16 = vmul.f32 1.442695, %v1790_v15  ;;  %v1791_v56 = vsub.f32 %v6364_v32, %v1751_v30 }
 0x548   : > { %v1742_v22 = vpop.xlane.xlu0 %1741 }
 0x549   : > { %5335 = vpow2.f32 %v1808_v16  ;;  %v1810_v0 = vmul.f32 1.442695, %v1791_v56  ;;  %v1788_v27 = vsub.f32 %v6360_v18, %v1742_v22 }
 0x54a   : > { %v1745_v20 = vpop.xlane.xlu1 %1744 }
 0x54b   : > { %5337 = vpow2.f32 %v1810_v0  ;;  %v1804_v45 = vmul.f32 1.442695, %v1788_v27  ;;  %v1789_v29 = vsub.f32 %v6370_v33, %v1745_v20 }
 0x54d   : > { %5339 = vpow2.f32 %v1804_v45  ;;  %v1806_v19 = vmul.f32 1.442695, %v1789_v29 }
 0x54f   : > { %5341 = vpow2.f32 %v1806_v19 }
 0x553   : > { %v6476_v31 = vpop.eup %5335 }
 0x554   : > { %v1842_v52 = vsel %vm751_vm0, %v6476_v31, 0.0 }
 0x555   : > { %v6480_v25 = vpop.eup %5337  ;;  %1843 = vadd.xlane.f32.xlu0 %v1842_v52 }
 0x556   : > { %v1845_v16 = vsel %vm751_vm0, %v6480_v25, 0.0 }
 0x557   : > { %v6484_v22 = vpop.eup %5339  ;;  %1846 = vadd.xlane.f32.xlu1 %v1845_v16 }
 0x558   : > { %v1836_v20 = vsel %vm751_vm0, %v6484_v22, 0.0 }
 0x559   : > { %v6488_v27 = vpop.eup %5341  ;;  %1837 = vadd.xlane.f32.xlu0 %v1836_v20 }
 0x55a   : > { %v1839_v29 = vsel %vm751_vm0, %v6488_v27, 0.0 }
 0x55b   : > { %1840 = vadd.xlane.f32.xlu1 %v1839_v29 }
 0x55f   : > { %v1760_v19 = vpop.xlane.xlu0 %1759 }
 0x560   : > { %v1794_v18 = vsub.f32 %v6390_v3, %v1760_v19 }
 0x561   : > { %v1763_v32 = vpop.xlane.xlu1 %1762 }
 0x562   : > { %v1816_v33 = vmul.f32 1.442695, %v1794_v18  ;;  %v1795_v15 = vsub.f32 %v6400_v47, %v1763_v32 }
 0x563   : > { %v1772_v30 = vpop.xlane.xlu0 %1771 }
 0x564   : > { %5343 = vpow2.f32 %v1816_v33  ;;  %v1818_v56 = vmul.f32 1.442695, %v1795_v15  ;;  %v1798_v0 = vsub.f32 %v6396_v38, %v1772_v30 }
 0x565   : > { %v1775_v45 = vpop.xlane.xlu1 %1774 }
 0x566   : > { %5345 = vpow2.f32 %v1818_v56  ;;  %v1824_v52 = vmul.f32 1.442695, %v1798_v0  ;;  %v1799_v16 = vsub.f32 %v6406_v28, %v1775_v45 }
 0x567   : > { %v1754_v20 = vpop.xlane.xlu0 %1753 }
 0x568   : > { %5347 = vpow2.f32 %v1824_v52  ;;  %v1826_v29 = vmul.f32 1.442695, %v1799_v16  ;;  %v1792_v36 = vsub.f32 %v6412_v13, %v1754_v20 }
 0x569   : > { %v1990_v3 = vpop.permute.xlu1 %1989 }
 0x56a   : > { %5349 = vpow2.f32 %v1826_v29  ;;  %v1812_v19 = vmul.f32 1.442695, %v1792_v36  ;;  %4830 = vmatprep.subr.bf16.mxu1 %v1990_v3 }
 0x56b   : > { %v1766_v47 = vpop.xlane.xlu0 %1765  ;;  %4831 = vmatpush3.bf16.msra.mxu1 %v1990_v3 }
 0x56c   : > { %5351 = vpow2.f32 %v1812_v19  ;;  %v1796_v18 = vsub.f32 %v6420_v34, %v1766_v47 }
 0x56d   : > { %v1929_v38 = vpop.permute.xlu1 %1928 }
 0x56e   : > { %v6498_v32 = vpop.eup %5343  ;;  %v1820_v33 = vmul.f32 1.442695, %v1796_v18 }
 0x56f   : > { %v1757_v15 = vpop.xlane.xlu0 %1756  ;;  %v1854_v28 = vsel %vm751_vm0, %v6498_v32, 0.0 }
 0x570   : > { %v6502_v30 = vpop.eup %5345  ;;  %5353 = vpow2.f32 %v1820_v33  ;;  %v1793_v13 = vsub.f32 %v6426_v23, %v1757_v15  ;;  %1855 = vadd.xlane.f32.xlu0 %v1854_v28 }
 0x571   : > { %v1992_v36 = vpop.permute.xlu1 %1991  ;;  %v1857_v56 = vsel %vm751_vm0, %v6502_v30, 0.0 }
 0x572   : > { %v6507_v0 = vpop.eup %5347  ;;  %v1814_v34 = vmul.f32 1.442695, %v1793_v13  ;;  %1858 = vadd.xlane.f32.xlu1 %v1857_v56  ;;  %4832 = vmatprep.subr.bf16.mxu1 %v1992_v36 }
 0x573   : > { %v1927_v45 = vpop.permute.xlu0 %1926  ;;  %4833 = vmatpush3.bf16.msra.mxu1 %v1992_v36  ;;  %v1866_v52 = vsel %vm751_vm0, %v6507_v0, 0.0 }
 0x574   : > { %v6511_v16 = vpop.eup %5349  ;;  %5355 = vpow2.f32 %v1814_v34  ;;  %4822 = vmatprep.subr.bf16.mxu0 %v1927_v45  ;;  %1867 = vadd.xlane.f32.xlu0 %v1866_v52 }
 0x575   : > { %4823 = vmatpush3.bf16.msra.mxu0 %v1927_v45  ;;  %v1869_v23 = vsel %vm751_vm0, %v6511_v16, 0.0 }
 0x576   : > { %v6515_v20 = vpop.eup %5351  ;;  %1870 = vadd.xlane.f32.xlu1 %v1869_v23  ;;  %4824 = vmatprep.subr.bf16.mxu0 %v1929_v38 }
 0x577   : > { %v1848_v29 = vsel %vm751_vm0, %v6515_v20, 0.0 }
 0x578   : > { %1849 = vadd.xlane.f32.xlu0 %v1848_v29 }
 0x579   : > { %4825 = vmatpush3.bf16.msra.mxu0 %v1929_v38 }
 0x57a   : > { %v6519_v3 = vpop.eup %5353 }
 0x57b   : > { %v1860_v19 = vsel %vm751_vm0, %v6519_v3, 0.0 }
 0x57c   : > { %1861 = vadd.xlane.f32.xlu0 %v1860_v19 }
 0x57e   : > { %v6523_v47 = vpop.eup %5355 }
 0x57f   : > { %v1851_v18 = vsel %vm751_vm0, %v6523_v47, 0.0 }
 0x580   : > { %1852 = vadd.xlane.f32.xlu1 %v1851_v18 }
 0x5a2   : > { %v1769_v33 = vpop.xlane.xlu1 %1768 }
 0x5a3   : > { %v1797_v15 = vsub.f32 %v6440_v10, %v1769_v33 }
 0x5a4   : > { %v1784_v28 = vpop.xlane.xlu0 %1783 }
 0x5a5   : > { %v1822_v13 = vmul.f32 1.442695, %v1797_v15  ;;  %v1802_v36 = vsub.f32 %v6444_v17, %v1784_v28 }
 0x5a6   : > { %v1787_v38 = vpop.xlane.xlu1 %1786 }
 0x5a7   : > { %5357 = vpow2.f32 %v1822_v13  ;;  %v1832_v56 = vmul.f32 1.442695, %v1802_v36  ;;  %v1803_v34 = vsub.f32 %v6450_v21, %v1787_v38 }
 0x5a8   : > { %v1778_v45 = vpop.xlane.xlu0 %1777 }
 0x5a9   : > { %5359 = vpow2.f32 %v1832_v56  ;;  %v1834_v52 = vmul.f32 1.442695, %v1803_v34  ;;  %v1800_v23 = vsub.f32 %v6456_v14, %v1778_v45 }
 0x5aa   : > { %v1781_v29 = vpop.xlane.xlu1 %1780 }
 0x5ab   : > { %5361 = vpow2.f32 %v1834_v52  ;;  %v1828_v19 = vmul.f32 1.442695, %v1800_v23  ;;  %v1801_v18 = vsub.f32 %v6462_v55, %v1781_v29 }
 0x5ac   : > { %v2053_v10 = vpop.permute.xlu0 %2052 }
 0x5ad   : > { %5363 = vpow2.f32 %v1828_v19  ;;  %v1830_v33 = vmul.f32 1.442695, %v1801_v18  ;;  %4838 = vmatprep.subr.bf16.mxu0 %v2053_v10 }
 0x5ae   : > { %v2055_v34 = vpop.permute.xlu1 %2054 }
 0x5af   : > { %5365 = vpow2.f32 %v1830_v33 }
 0x5b1   : > { %v6532_v17 = vpop.eup %5357 }
 0x5b2   : > { %v1863_v21 = vsel %vm751_vm0, %v6532_v17, 0.0 }
 0x5b3   : > { %v6536_v15 = vpop.eup %5359  ;;  %1864 = vadd.xlane.f32.xlu1 %v1863_v21 }
 0x5b4   : > { %v1878_v14 = vsel %vm751_vm0, %v6536_v15, 0.0 }
 0x5b5   : > { %v6540_v28 = vpop.eup %5361  ;;  %1879 = vadd.xlane.f32.xlu0 %v1878_v14 }
 0x5b6   : > { %v1881_v55 = vsel %vm751_vm0, %v6540_v28, 0.0 }
 0x5b7   : > { %v6544_v13 = vpop.eup %5363  ;;  %1882 = vadd.xlane.f32.xlu1 %v1881_v55 }
 0x5b8   : > { %v1872_v36 = vsel %vm751_vm0, %v6544_v13, 0.0 }
 0x5b9   : > { %v6548_v38 = vpop.eup %5365  ;;  %1873 = vadd.xlane.f32.xlu0 %v1872_v36 }
 0x5ba   : > { %v1875_v56 = vsel %vm751_vm0, %v6548_v38, 0.0 }
 0x5bb   : > { %1876 = vadd.xlane.f32.xlu1 %v1875_v56 }
 0x5cc   : > { %2117 = vrot.lane.b32.xlu1 %v6002_v46, %s5693_s21 }
 0x5cf   : > { %2115 = vrot.lane.b32.xlu0 %v6004_v50, %s5693_s21 }
 0x5d0   : > { %2456 = vrot.lane.b32.xlu1 %v5942_v48, %s5694_s23 }
 0x5d3   : > { %2454 = vrot.lane.b32.xlu0 %v5932_v39, %s5694_s23 }
 0x5d4   : > { %2523 = vrot.lane.b32.xlu1 %v5950_v58, %s5694_s23 }
 0x5d7   : > { %2450 = vrot.lane.b32.xlu0 %v5934_v40, %s5694_s23 }
 0x5d8   : > { %2525 = vrot.lane.b32.xlu1 %v5966_v9, %s5694_s23 }
 0x5db   : > { %2452 = vrot.lane.b32.xlu0 %v5944_v49, %s5694_s23 }
 0x5dc   : > { %2592 = vrot.lane.b32.xlu1 %v5978_v24, %s5694_s23 }
 0x5df   : > { %2519 = vrot.lane.b32.xlu0 %v5952_v60, %s5694_s23 }
 0x5e0   : > { %2594 = vrot.lane.b32.xlu1 %v5994_v41, %s5694_s23 }
 0x5e2   : > { %v1844_v45 = vpop.xlane.xlu0 %1843 }
 0x5e3   : > { %2521 = vrot.lane.b32.xlu0 %v5968_v11, %s5694_s23 }
 0x5e4   : > { %2661 = vrot.lane.b32.xlu1 %v6007_v57, %s5694_s23  ;;  %v1847_v52 = vpop.xlane.xlu1 %1846 }
 0x5e5   : > { %5367 = vrcp.f32 %v1847_v52 }
 0x5e6   : > { %v1838_v23 = vpop.xlane.xlu0 %1837 }
 0x5e7   : > { %2588 = vrot.lane.b32.xlu0 %v5980_v26, %s5694_s23  ;;  %5369 = vrcp.f32 %v1838_v23 }
 0x5e8   : > { %5371 = vrcp.f32 %v1844_v45  ;;  %2663 = vrot.lane.b32.xlu1 %v6021_v6, %s5694_s23  ;;  %v1841_v29 = vpop.xlane.xlu1 %1840 }
 0x5e9   : > { %5373 = vrcp.f32 %v1841_v29  ;;  %v6598_v29 = vld [vmem:[#allocation7 + $0x10] sm:$0xff]  }
 0x5eb   : > { %2590 = vrot.lane.b32.xlu0 %v5996_v43, %s5694_s23 }
 0x5ec   : > { %2659 = vrot.lane.b32.xlu1 %v6024_v7, %s5694_s23 }
 0x5ef   : > { %2657 = vrot.lane.b32.xlu0 %v6009_v59, %s5694_s23  ;;  %v5368_v19 = vpop.eup %5367 }
 0x5f0   : > { %2928 = vrot.lane.b32.xlu1 %v5960_v63, %s5694_s23  ;;  %v1903_v14 = vmul.f32 %v5368_v19, %v6480_v25 }
 0x5f1   : > { %v5370_v18 = vpop.eup %5369 }
 0x5f2   : > { %v5372_v33 = vpop.eup %5371  ;;  %v1900_v55 = vmul.f32 %v5370_v18, %v6484_v22 }
 0x5f3   : > { %v5374_v21 = vpop.eup %5373  ;;  %2926 = vrot.lane.b32.xlu0 %v5964_v1, %s5694_s23  ;;  %v1902_v56 = vmul.f32 %v5372_v33, %v6476_v31 }
 0x5f4   : > { %v1901_v36 = vmul.f32 %v5374_v21, %v6488_v27 }
 0x5f5   : > { %v1917_v52 = vpack.c.bf16 %v1903_v14, %v1902_v56 }
 0x5f6   : > { %v1916_v45 = vpack.c.bf16 %v1901_v36, %v1900_v55 }
 0x5f8   : > { %4826 = vmatprep.mubr.msk.bf16.mxu0 %vm751_vm0, %v1916_v45 }
 0x5f9   : > { %4827 = vmatmul.mubr.msk.bf16.vlgmr.msra.gmra.mrb[52].mxu0 %vm751_vm0, %v1917_v52 }
 0x5fa   : > { %4839 = vmatpush3.bf16.msra.mxu0 %v2053_v10 }
 0x5fb   : > { %4840 = vmatprep.subr.bf16.mxu0 %v2055_v34 }
 0x5fd   : > { %v1856_v23 = vpop.xlane.xlu0 %1855 }
 0x5fe   : > { %4841 = vmatpush3.bf16.msra.mxu0 %v2055_v34 }
 0x5ff   : > { %4854 = vmatprep.subr.bf16.mxu0 %v6598_v29  ;;  %v1859_v25 = vpop.xlane.xlu1 %1858 }
 0x600   : > { %5375 = vrcp.f32 %v1859_v25 }
 0x601   : > { %v1868_v22 = vpop.xlane.xlu0 %1867 }
 0x603   : > { %v1871_v19 = vpop.xlane.xlu1 %1870 }
 0x605   : > { %v1850_v27 = vpop.xlane.xlu0 %1849 }
 0x606   : > { %5377 = vrcp.f32 %v1850_v27 }
 0x607   : > { %5379 = vrcp.f32 %v1856_v23 }
 0x609   : > { %v1862_v52 = vpop.xlane.xlu0 %1861 }
 0x60a   : > { %v5376_v18 = vpop.eup %5375 }
 0x60b   : > { %v1907_v14 = vmul.f32 %v5376_v18, %v6502_v30 }
 0x60d   : > { %v1853_v31 = vpop.xlane.xlu1 %1852 }
 0x60e   : > { %5381 = vrcp.f32 %v1853_v31 }
 0x60f   : > { %5383 = vrcp.f32 %v1871_v19 }
 0x610   : > { %v5378_v33 = vpop.eup %5377  ;;  %5385 = vrcp.f32 %v1862_v52 }
 0x611   : > { %v5380_v21 = vpop.eup %5379  ;;  %v1904_v55 = vmul.f32 %v5378_v33, %v6515_v20  ;;  %5387 = vrcp.f32 %v1868_v22 }
 0x612   : > { %v1906_v36 = vmul.f32 %v5380_v21, %v6498_v32 }
 0x614   : > { %v1919_v45 = vpack.c.bf16 %v1907_v14, %v1906_v36 }
 0x618   : > { %v5382_v10 = vpop.eup %5381 }
 0x619   : > { %v1905_v34 = vmul.f32 %v5382_v10, %v6523_v47  ;;  %v5384_v47 = vpop.eup %5383 }
 0x61a   : > { %v5386_v27 = vpop.eup %5385  ;;  %v1911_v21 = vmul.f32 %v5384_v47, %v6511_v16  ;;  %v5264_v16 = vld [vmem:[#allocation7 + $0x18] sm:$0xff]  }
 0x61b   : > { %v1918_v56 = vpack.c.bf16 %v1905_v34, %v1904_v55  ;;  %v5388_v31 = vpop.eup %5387  ;;  %v1908_v19 = vmul.f32 %v5386_v27, %v6519_v3 }
 0x61c   : > { %v1910_v14 = vmul.f32 %v5388_v31, %v6507_v0  ;;  %v5265_v0 = vld [vmem:[#allocation7] sm:$0xff]  }
 0x61d   : > { %4834 = vmatprep.mubr.msk.bf16.mxu1 %vm751_vm0, %v1918_v56 }
 0x61e   : > { %4835 = vmatmul.mubr.msk.bf16.vlgmr.msra.gmra.mrb[44].mxu1 %vm751_vm0, %v1919_v45  ;;  %v1921_v34 = vpack.c.bf16 %v1911_v21, %v1910_v14 }
 0x640   : > { %v1865_v23 = vpop.xlane.xlu1 %1864 }
 0x641   : > { %5389 = vrcp.f32 %v1865_v23 }
 0x642   : > { %v1880_v25 = vpop.xlane.xlu0 %1879 }
 0x644   : > { %v1883_v30 = vpop.xlane.xlu1 %1882 }
 0x645   : > { %5391 = vrcp.f32 %v1883_v30 }
 0x646   : > { %v1874_v20 = vpop.xlane.xlu0 %1873 }
 0x647   : > { %5393 = vrcp.f32 %v1874_v20 }
 0x648   : > { %5395 = vrcp.f32 %v1880_v25  ;;  %v1877_v32 = vpop.xlane.xlu1 %1876 }
 0x649   : > { %5397 = vrcp.f32 %v1877_v32 }
 0x64a   : > { %v2116_v18 = vpop.permute.xlu0 %2115 }
 0x64b   : > { %v5390_v33 = vpop.eup %5389  ;;  %4846 = vmatprep.subr.bf16.mxu1 %v2116_v18 }
 0x64c   : > { %4847 = vmatpush3.bf16.msra.mxu1 %v2116_v18  ;;  %v2118_v22 = vpop.permute.xlu1 %2117  ;;  %v1909_v10 = vmul.f32 %v5390_v33, %v6532_v17 }
 0x64d   : > { %4848 = vmatprep.subr.bf16.mxu1 %v2118_v22 }
 0x64e   : > { %v1920_v55 = vpack.c.bf16 %v1909_v10, %v1908_v19 }
 0x64f   : > { %v5392_v36 = vpop.eup %5391 }
 0x650   : > { %4842 = vmatprep.mubr.msk.bf16.mxu0 %vm751_vm0, %v1920_v55  ;;  %4849 = vmatpush3.bf16.msra.mxu1 %v2118_v22  ;;  %v1915_v17 = vmul.f32 %v5392_v36, %v6540_v28  ;;  %v2455_v28 = vpop.permute.xlu0 %2454 }
 0x651   : > { %v5394_v56 = vpop.eup %5393  ;;  %4843 = vmatmul.mubr.msk.bf16.vlgmr.msra.gmra.mrb[56].mxu0 %vm751_vm0, %v1921_v34  ;;  %5062 = vmatprep.subr.bf16.mxu1 %v6598_v29 }
 0x652   : > { %v5396_v45 = vpop.eup %5395  ;;  %4855 = vmatpush3.bf16.msra.mxu0 %v6598_v29  ;;  %v1912_v52 = vmul.f32 %v5394_v56, %v6544_v13  ;;  %v5266_v56 = vld [vmem:[#allocation7 + $0x8] sm:$0xff]  }
 0x653   : > { %v5398_v3 = vpop.eup %5397  ;;  %4856 = vmatprep.subr.bf16.mxu0 %v5264_v16  ;;  %v1914_v25 = vmul.f32 %v5396_v45, %v6536_v15 }
 0x654   : > { %v1913_v23 = vmul.f32 %v5398_v3, %v6548_v38  ;;  %v6623_v13 = vpop.permute.xlu0 %2450  ;;  %v2457_v38 = vpop.permute.xlu1 %2456  ;;  %v7395_v3 = vpack.c.bf16 %v6324_v62, %v6318_v51  ;;  %v7398_v51 = vpack.c.bf16 %v6332_v54, %v6328_v44  ;;  %v7399_v62 = vpack.c.bf16 %v6348_v2, %v6342_v12  ;;  %v7402_v12 = vld [vmem:[#allocation21_spill] sm:$0xff]  ;;  %v7403_v2 = vld [vmem:[#allocation20_spill] sm:$0xff] }
 0x655   : > { %v1923_v20 = vpack.c.bf16 %v1915_v17, %v1914_v25 }
 0x656   : > { %v1922_v30 = vpack.c.bf16 %v1913_v23, %v1912_v52  ;;  %4857 = vmatpush3.bf16.msra.mxu0 %v5264_v16  ;;  %v7396_v23 = vpack.c.bf16 %v6320_v37, %v6316_v5  ;;  %v7400_v5 = vpack.c.bf16 %v6344_v53, %v6340_v61  ;;  %v7401_v37 = vpack.c.bf16 %v6384_v42, %v6378_v4 }
 0x657   : > { %4874 = vmatprep.subr.bf16.mxu0 %v5265_v0  ;;  %v2465_v61 = vsel %vm751_vm0, %v2455_v28, 0  ;;  %v2468_v53 = vsel %vm751_vm0, %v2457_v38, 0 }
 0x658   : > { %4850 = vmatprep.mubr.msk.bf16.mxu1 %vm751_vm0, %v1922_v30  ;;  %v6625_v47 = vpop.permute.xlu0 %2452  ;;  %v6627_v15 = vpop.permute.xlu1 %2523 }
 0x659   : > { %4851 = vmatmul.mubr.msk.bf16.vlgmr.msra.gmra.mrb[48].mxu1 %vm751_vm0, %v1923_v20 }
 0x65a   : > { %5064 = vmatpush3.bf16.msra.mxu1 %v6598_v29 }
 0x65b   : > { %5063 = vmatprep.subr.bf16.mxu1 %v5264_v16 }
 0x65c   : > { %v6629_v32 = vpop.permute.xlu0 %2519  ;;  %v6631_v27 = vpop.permute.xlu1 %2525 }
 0x65e   : > { %5065 = vmatpush3.bf16.msra.mxu1 %v5264_v16 }
 0x65f   : > { %5130 = vmatprep.subr.msk.bf16.mxu1 %vm751_vm0, %v2455_v28 }
 0x660   : > { %v6633_v31 = vpop.permute.xlu0 %2521  ;;  %v6635_v18 = vpop.permute.xlu1 %2592 }
 0x664   : > { %v6637_v29 = vpop.permute.xlu0 %2588  ;;  %v6639_v33 = vpop.permute.xlu1 %2594 }
 0x668   : > { %v6641_v21 = vpop.permute.xlu0 %2590  ;;  %v6643_v10 = vpop.permute.xlu1 %2661 }
 0x66c   : > { %v6645_v16 = vpop.permute.xlu0 %2657  ;;  %v6649_v45 = vpop.permute.xlu1 %2663 }
 0x670   : > { %v2927_v17 = vpop.permute.xlu0 %2926  ;;  %v6655_v52 = vpop.permute.xlu1 %2659 }
 0x674   : > { %v2929_v25 = vpop.permute.xlu1 %2928 }
 0x6cc   : > { %v4828_v22 = vpop.f32.mrb[52].mxu0 }
 0x6cd   : > { %v1972_v19 = vpop.f32.mrb[53].mxu0 }
 0x6ce   : > { %v4829_v14 = vpop.f32.mrb[54].mxu0 }
 0x6cf   : > { %v2177_v55 = vpack.c.bf16 %v4829_v14, %v4828_v22  ;;  %v1975_v34 = vpop.f32.mrb[55].mxu0  ;;  %v7404_v22 = vpack.c.bf16 %v7402_v12, %v7403_v2 }
 0x6d0   : > { %v2176_v36 = vpack.c.bf16 %v1975_v34, %v1972_v19 }
 0x6d2   : > { %4858 = vmatprep.mubr.msk.bf16.mxu0 %vm751_vm0, %v2176_v36 }
 0x6d3   : > { %4859 = vmatmul.mubr.msk.bf16.vlgmr.msra.gmra.mrb[60].mxu0 %vm751_vm0, %v2177_v55 }
 0x6d4   : > { %4875 = vmatpush3.bf16.msra.mxu0 %v5265_v0  ;;  %4878 = vmatprep.mubr.msk.bf16.mxu0 %vm751_vm0, %v7395_v3  ;;  %v7397_v0 = vpack.c.bf16 %v6336_v35, %v6330_v8 }
 0x6d5   : > { %4876 = vmatprep.subr.bf16.mxu0 %v5266_v56 }
 0x6d8   : > { %4877 = vmatpush3.bf16.msra.mxu0 %v5266_v56 }
 0x6d9   : > { %4926 = vmatprep.subr.bf16.mxu0 %v2927_v17 }
 0x6df   : > { %4879 = vmatmul.mubr.msk.bf16.vlgmr.msra.gmra.mrb[60].mxu0 %vm751_vm0, %v7396_v23  ;;  %v2534_v23 = vsel %vm751_vm0, %v6627_v15, 0 }
 0x6e0   : > { %4927 = vmatpush3.bf16.msra.mxu0 %v2927_v17  ;;  %4882 = vmatprep.mubr.msk.bf16.mxu0 %vm751_vm0, %v7397_v0 }
 0x6e1   : > { %4928 = vmatprep.subr.bf16.mxu0 %v2929_v25 }
 0x6e4   : > { %4929 = vmatpush3.bf16.msra.mxu0 %v2929_v25  ;;  %v2537_v25 = vsel %vm751_vm0, %v6631_v27, 0 }
 0x6e7   : > { %4883 = vmatmul.mubr.msk.bf16.gmra.mrb[64].mxu0 %vm751_vm0, %v7398_v51 }
 0x6e8   : > { %4886 = vmatprep.mubr.msk.bf16.mxu0 %vm751_vm0, %v7399_v62 }
 0x6ef   : > { %4887 = vmatmul.mubr.msk.bf16.gmra.mrb[68].mxu0 %vm751_vm0, %v7400_v5 }
 0x6f0   : > { %4890 = vmatprep.mubr.msk.bf16.mxu0 %vm751_vm0, %v7401_v37 }
 0x6f1   : > { %v4836_v8 = vpop.f32.mrb[44].mxu1 }
 0x6f2   : > { %v2035_v35 = vpop.f32.mrb[45].mxu1 }
 0x6f3   : > { %v4837_v44 = vpop.f32.mrb[46].mxu1 }
 0x6f4   : > { %v2179_v54 = vpack.c.bf16 %v4837_v44, %v4836_v8  ;;  %v2038_v30 = vpop.f32.mrb[47].mxu1 }
 0x6f5   : > { %v2178_v20 = vpack.c.bf16 %v2038_v30, %v2035_v35 }
 0x6f7   : > { %4862 = vmatprep.mubr.msk.bf16.mxu1 %vm751_vm0, %v2178_v20  ;;  %4891 = vmatmul.mubr.msk.bf16.gmra.mrb[72].mxu0 %vm751_vm0, %v7404_v22 }
 0x6f8   : > { %4863 = vmatmul.mubr.msk.bf16.vlgmr.msra.gmra.mrb[52].mxu1 %vm751_vm0, %v2179_v54 }
 0x6f9   : > { %4895 = vmatpush3.bf16.xpose.msra.mxu1 %v2465_v61 }
 0x6fa   : > { %5131 = vmatprep.subr.msk.bf16.mxu1 %vm751_vm0, %v2457_v38 }
 0x701   : > { %4897 = vmatpush3.bf16.xpose.msra.mxu1 %v2468_v53 }
 0x702   : > { %5132 = vmatprep.subr.msk.bf16.mxu1 %vm751_vm0, %v6627_v15  ;;  %v2672_v15 = vsel %vm751_vm0, %v6643_v10, 0 }
 0x724   : > { %v4844_v4 = vpop.f32.mrb[56].mxu0 }
 0x725   : > { %v2098_v42 = vpop.f32.mrb[57].mxu0 }
 0x726   : > { %v4845_v19 = vpop.f32.mrb[58].mxu0 }
 0x727   : > { %v2181_v14 = vpack.c.bf16 %v4845_v19, %v4844_v4  ;;  %v2101_v55 = vpop.f32.mrb[59].mxu0 }
 0x728   : > { %v2180_v34 = vpack.c.bf16 %v2101_v55, %v2098_v42 }
 0x72a   : > { %4866 = vmatprep.mubr.msk.bf16.mxu1 %vm751_vm0, %v2180_v34 }
 0x72b   : > { %4867 = vmatmul.mubr.msk.bf16.gmra.mrb[56].mxu1 %vm751_vm0, %v2181_v14 }
 0x72c   : > { %v4852_v28 = vpop.f32.mrb[48].mxu1 }
 0x72d   : > { %v2161_v36 = vpop.f32.mrb[49].mxu1 }
 0x72e   : > { %v4853_v56 = vpop.f32.mrb[50].mxu1 }
 0x72f   : > { %v2183_v3 = vpack.c.bf16 %v4853_v56, %v4852_v28  ;;  %v2164_v17 = vpop.f32.mrb[51].mxu1 }
 0x730   : > { %v2182_v38 = vpack.c.bf16 %v2164_v17, %v2161_v36 }
 0x732   : > { %4870 = vmatprep.mubr.msk.bf16.mxu1 %vm751_vm0, %v2182_v38 }
 0x733   : > { %4871 = vmatmul.mubr.msk.bf16.gmra.mrb[60].mxu1 %vm751_vm0, %v2183_v3 }
 0x734   : > { %4898 = vmatprep.mubr.msk.bf16.mxu1 %vm751_vm0, %v6623_v13  ;;  %v2603_v13 = vsel %vm751_vm0, %v6635_v18, 0 }
 0x73b   : > { %4899 = vmatmul.mubr.msk.bf16.vlgmr.msra.gmra.mrb[64].mxu1 %vm751_vm0, %v6625_v47  ;;  %v2606_v47 = vsel %vm751_vm0, %v6639_v33, 0 }
 0x73c   : > { %4903 = vmatpush3.bf16.xpose.msra.mxu1 %v2534_v23  ;;  %4906 = vmatprep.mubr.msk.bf16.mxu1 %vm751_vm0, %v6629_v32  ;;  %v2675_v32 = vsel %vm751_vm0, %v6649_v45, 0 }
 0x73d   : > { %5133 = vmatprep.subr.msk.bf16.mxu1 %vm751_vm0, %v6631_v27 }
 0x744   : > { %4905 = vmatpush3.bf16.xpose.msra.mxu1 %v2537_v25 }
 0x745   : > { %5134 = vmatprep.subr.msk.bf16.mxu1 %vm751_vm0, %v6635_v18 }
 0x74b   : > { %4907 = vmatmul.mubr.msk.bf16.vlgmr.msra.gmra.mrb[68].mxu1 %vm751_vm0, %v6633_v31 }
 0x74c   : > { %4911 = vmatpush3.bf16.xpose.msra.mxu1 %v2603_v13  ;;  %4914 = vmatprep.mubr.msk.bf16.mxu1 %vm751_vm0, %v6637_v29 }
 0x74d   : > { %5135 = vmatprep.subr.msk.bf16.mxu1 %vm751_vm0, %v6639_v33 }
 0x754   : > { %4913 = vmatpush3.bf16.xpose.msra.mxu1 %v2606_v47 }
 0x755   : > { %5136 = vmatprep.subr.msk.bf16.mxu1 %vm751_vm0, %v6643_v10 }
 0x75b   : > { %4915 = vmatmul.mubr.msk.bf16.vlgmr.msra.gmra.mrb[72].mxu1 %vm751_vm0, %v6641_v21 }
 0x75c   : > { %4919 = vmatpush3.bf16.xpose.msra.mxu1 %v2672_v15  ;;  %4922 = vmatprep.mubr.msk.bf16.mxu1 %vm751_vm0, %v6645_v16 }
 0x75d   : > { %5137 = vmatprep.subr.msk.bf16.mxu1 %vm751_vm0, %v6649_v45 }
 0x764   : > { %4921 = vmatpush3.bf16.xpose.msra.mxu1 %v2675_v32 }
 0x76b   : > { %4923 = vmatmul.mubr.msk.bf16.vlgmr.msra.gmra.mrb[76].mxu1 %vm751_vm0, %v6655_v52 }
 0x7cb   : > { %v6734_v27 = vpop.f32.mrb[52].mxu1 }
 0x7cc   : > { %v6736_v31 = vpop.f32.mrb[53].mxu1 }
 0x7cd   : > { %v6738_v18 = vpop.f32.mrb[54].mxu1 }
 0x7ce   : > { %v6740_v29 = vpop.f32.mrb[55].mxu1 }
 0x7fe   : > { %v6742_v33 = vpop.f32.mrb[56].mxu1 }
 0x7ff   : > { %v6744_v21 = vpop.f32.mrb[57].mxu1 }
 0x800   : > { %v6746_v10 = vpop.f32.mrb[58].mxu1 }
 0x801   : > { %v6748_v16 = vpop.f32.mrb[59].mxu1 }
 0x802   : > { %7405 = vst [vmem:[#allocation21_spill] sm:$0xff] %v6748_v16 }
 0x806   : > { %v6750_v45 = vpop.f32.mrb[60].mxu1 }
 0x807   : > { %7406 = vst [vmem:[#allocation20_spill] sm:$0xff] %v6750_v45  ;;  %v6752_v0 = vpop.f32.mrb[61].mxu1 }
 0x808   : > { %7407 = vst [vmem:[#allocation22_spill] sm:$0xff] %v6752_v0  ;;  %v6754_v52 = vpop.f32.mrb[62].mxu1 }
 0x809   : > { %7408 = vst [vmem:[#allocation23_spill] sm:$0xff] %v6754_v52  ;;  %v6756_v51 = vpop.f32.mrb[63].mxu1 }
 0x80a   : > { %7409 = vst [vmem:[#allocation24_spill] sm:$0xff] %v6756_v51 }
 0x80e   : > { %v4900_v62 = vpop.f32.mrb[64].mxu1 }
 0x80f   : > { %v6760_v37 = vsel %vm6038_vm1, %v4900_v62, -1e+30  ;;  %v2504_v8 = vpop.f32.mrb[65].mxu1 }
 0x810   : > { %v2748_v35 = vsel %vm751_vm0, %v6760_v37, -inf  ;;  %v4901_v44 = vpop.f32.mrb[66].mxu1  ;;  %v6766_v30 = vsel %vm6042_vm2, %v2504_v8, -1e+30 }
 0x811   : > { %2749 = vmax.xlane.f32.xlu0 %v2748_v35  ;;  %v2507_v20 = vpop.f32.mrb[67].mxu1  ;;  %v2742_v61 = vsel %vm751_vm0, %v6766_v30, -inf  ;;  %v6778_v4 = vsel %vm6046_vm3, %v4901_v44, -1e+30 }
 0x812   : > { %v6770_v2 = vsel %vm6054_vm4, %v2507_v20, -1e+30  ;;  %v2751_v42 = vsel %vm751_vm0, %v6778_v4, -inf }
 0x813   : > { %v2745_v22 = vsel %vm751_vm0, %v6770_v2, -inf }
 0x814   : > { %2746 = vmax.xlane.f32.xlu1 %v2745_v22 }
 0x815   : > { %2743 = vmax.xlane.f32.xlu0 %v2742_v61 }
 0x819   : > { %2752 = vmax.xlane.f32.xlu0 %v2751_v42 }
 0x81e   : > { %v4908_v19 = vpop.f32.mrb[68].mxu1 }
 0x81f   : > { %v6784_v14 = vsel %vm6038_vm1, %v4908_v19, -1e+30  ;;  %v2573_v55 = vpop.f32.mrb[69].mxu1 }
 0x820   : > { %v2760_v34 = vsel %vm751_vm0, %v6784_v14, -inf  ;;  %v4909_v28 = vpop.f32.mrb[70].mxu1  ;;  %v6790_v36 = vsel %vm6042_vm2, %v2573_v55, -1e+30 }
 0x821   : > { %v6794_v56 = vsel %vm6046_vm3, %v4909_v28, -1e+30  ;;  %2761 = vmax.xlane.f32.xlu0 %v2760_v34  ;;  %v2576_v3 = vpop.f32.mrb[71].mxu1  ;;  %v2754_v23 = vsel %vm751_vm0, %v6790_v36, -inf }
 0x822   : > { %v2763_v17 = vsel %vm751_vm0, %v6794_v56, -inf  ;;  %v6800_v38 = vsel %vm6054_vm4, %v2576_v3, -1e+30 }
 0x823   : > { %2764 = vmax.xlane.f32.xlu1 %v2763_v17  ;;  %v2757_v25 = vsel %vm751_vm0, %v6800_v38, -inf }
 0x825   : > { %2755 = vmax.xlane.f32.xlu0 %v2754_v23 }
 0x827   : > { %2758 = vmax.xlane.f32.xlu1 %v2757_v25 }
 0x82e   : > { %v4916_v13 = vpop.f32.mrb[72].mxu1 }
 0x82f   : > { %v6808_v47 = vsel %vm6038_vm1, %v4916_v13, -1e+30  ;;  %v2642_v15 = vpop.f32.mrb[73].mxu1 }
 0x830   : > { %v2772_v32 = vsel %vm751_vm0, %v6808_v47, -inf  ;;  %v4917_v62 = vpop.f32.mrb[74].mxu1  ;;  %v6814_v8 = vsel %vm6042_vm2, %v2642_v15, -1e+30 }
 0x831   : > { %v6818_v35 = vsel %vm6046_vm3, %v4917_v62, -1e+30  ;;  %2773 = vmax.xlane.f32.xlu0 %v2772_v32  ;;  %v2645_v44 = vpop.f32.mrb[75].mxu1  ;;  %v2766_v61 = vsel %vm751_vm0, %v6814_v8, -inf }
 0x832   : > { %v2775_v20 = vsel %vm751_vm0, %v6818_v35, -inf  ;;  %v6824_v22 = vsel %vm6054_vm4, %v2645_v44, -1e+30  ;;  %v7414_v44 = vld [vmem:[#allocation14_spill] sm:$0xff] }
 0x833   : > { %2776 = vmax.xlane.f32.xlu1 %v2775_v20  ;;  %v2769_v42 = vsel %vm751_vm0, %v6824_v22, -inf  ;;  %v7415_v20 = vld [vmem:[#allocation13_spill] sm:$0xff] }
 0x835   : > { %2767 = vmax.xlane.f32.xlu0 %v2766_v61  ;;  %v7416_v61 = vld [vmem:[#allocation12_spill] sm:$0xff] }
 0x837   : > { %2770 = vmax.xlane.f32.xlu1 %v2769_v42  ;;  %v7417_v42 = vld [vmem:[#allocation15_spill] sm:$0xff] }
 0x83e   : > { %v4924_v19 = vpop.f32.mrb[76].mxu1 }
 0x83f   : > { %v6832_v55 = vsel %vm6038_vm1, %v4924_v19, -1e+30  ;;  %v2711_v34 = vpop.f32.mrb[77].mxu1 }
 0x840   : > { %v2784_v28 = vsel %vm751_vm0, %v6832_v55, -inf  ;;  %v4925_v3 = vpop.f32.mrb[78].mxu1  ;;  %v6838_v17 = vsel %vm6042_vm2, %v2711_v34, -1e+30 }
 0x841   : > { %v6842_v23 = vsel %vm6046_vm3, %v4925_v3, -1e+30  ;;  %2785 = vmax.xlane.f32.xlu0 %v2784_v28  ;;  %v2714_v25 = vpop.f32.mrb[79].mxu1  ;;  %v2778_v32 = vsel %vm751_vm0, %v6838_v17, -inf }
 0x842   : > { %v2787_v13 = vsel %vm751_vm0, %v6842_v23, -inf  ;;  %v6848_v15 = vsel %vm6054_vm4, %v2714_v25, -1e+30 }
 0x843   : > { %2788 = vmax.xlane.f32.xlu1 %v2787_v13  ;;  %v2781_v62 = vsel %vm751_vm0, %v6848_v15, -inf }
 0x845   : > { %2779 = vmax.xlane.f32.xlu0 %v2778_v32 }
 0x847   : > { %2782 = vmax.xlane.f32.xlu1 %v2781_v62 }
 0x858   : > { %3050 = vrot.lane.b32.xlu1 %v7414_v44, %s5694_s23 }
 0x85b   : > { %2987 = vrot.lane.b32.xlu0 %v7415_v20, %s5694_s23 }
 0x85f   : > { %2989 = vrot.lane.b32.xlu0 %v7416_v61, %s5694_s23 }
 0x863   : > { %3048 = vrot.lane.b32.xlu0 %v7417_v42, %s5694_s23 }
 0x89e   : > { %v2750_v19 = vpop.xlane.xlu0 %2749 }
 0x89f   : > { %v2792_v34 = vsub.f32 %v6760_v37, %v2750_v19 }
 0x8a1   : > { %v2810_v28 = vmul.f32 1.442695, %v2792_v34  ;;  %v2747_v3 = vpop.xlane.xlu1 %2746 }
 0x8a2   : > { %v2744_v25 = vpop.xlane.xlu0 %2743  ;;  %v2791_v32 = vsub.f32 %v6770_v2, %v2747_v3 }
 0x8a3   : > { %5399 = vpow2.f32 %v2810_v28  ;;  %v2790_v13 = vsub.f32 %v6766_v30, %v2744_v25 }
 0x8a4   : > { %v2808_v0 = vmul.f32 1.442695, %v2791_v32 }
 0x8a5   : > { %v2806_v62 = vmul.f32 1.442695, %v2790_v13 }
 0x8a6   : > { %v2753_v51 = vpop.xlane.xlu0 %2752 }
 0x8a7   : > { %5401 = vpow2.f32 %v2806_v62  ;;  %v2793_v52 = vsub.f32 %v6778_v4, %v2753_v51 }
 0x8a9   : > { %v2812_v45 = vmul.f32 1.442695, %v2793_v52 }
 0x8ab   : > { %5403 = vpow2.f32 %v2812_v45 }
 0x8ac   : > { %5405 = vpow2.f32 %v2808_v0 }
 0x8ad   : > { %v6866_v16 = vpop.eup %5399 }
 0x8ae   : > { %v2762_v37 = vpop.xlane.xlu0 %2761  ;;  %v2844_v19 = vsel %vm751_vm0, %v6866_v16, 0.0 }
 0x8af   : > { %v2796_v34 = vsub.f32 %v6784_v14, %v2762_v37  ;;  %2845 = vadd.xlane.f32.xlu0 %v2844_v19 }
 0x8b0   : > { %v2765_v30 = vpop.xlane.xlu1 %2764 }
 0x8b1   : > { %v6871_v2 = vpop.eup %5401  ;;  %v2818_v28 = vmul.f32 1.442695, %v2796_v34  ;;  %v2797_v3 = vsub.f32 %v6794_v56, %v2765_v30 }
 0x8b2   : > { %v2756_v51 = vpop.xlane.xlu0 %2755  ;;  %v2838_v45 = vsel %vm751_vm0, %v6871_v2, 0.0 }
 0x8b3   : > { %5407 = vpow2.f32 %v2818_v28  ;;  %v2820_v52 = vmul.f32 1.442695, %v2797_v3  ;;  %v2794_v0 = vsub.f32 %v6790_v36, %v2756_v51  ;;  %2839 = vadd.xlane.f32.xlu0 %v2838_v45 }
 0x8b4   : > { %v2759_v4 = vpop.xlane.xlu1 %2758 }
 0x8b5   : > { %v6877_v25 = vpop.eup %5403  ;;  %5409 = vpow2.f32 %v2820_v52  ;;  %v2814_v14 = vmul.f32 1.442695, %v2794_v0  ;;  %v2795_v13 = vsub.f32 %v6800_v38, %v2759_v4 }
 0x8b6   : > { %v2847_v32 = vsel %vm751_vm0, %v6877_v25, 0.0  ;;  %v6882_v56 = vpop.eup %5405 }
 0x8b7   : > { %5411 = vpow2.f32 %v2814_v14  ;;  %v2816_v62 = vmul.f32 1.442695, %v2795_v13  ;;  %2848 = vadd.xlane.f32.xlu1 %v2847_v32  ;;  %v2841_v36 = vsel %vm751_vm0, %v6882_v56, 0.0 }
 0x8b9   : > { %5413 = vpow2.f32 %v2816_v62 }
 0x8bb   : > { %2842 = vadd.xlane.f32.xlu1 %v2841_v36 }
 0x8bd   : > { %v6886_v37 = vpop.eup %5407 }
 0x8be   : > { %v2774_v19 = vpop.xlane.xlu0 %2773  ;;  %v2856_v34 = vsel %vm751_vm0, %v6886_v37, 0.0 }
 0x8bf   : > { %v6890_v38 = vpop.eup %5409  ;;  %v2800_v30 = vsub.f32 %v6808_v47, %v2774_v19  ;;  %2857 = vadd.xlane.f32.xlu0 %v2856_v34 }
 0x8c0   : > { %v2777_v28 = vpop.xlane.xlu1 %2776  ;;  %v2859_v3 = vsel %vm751_vm0, %v6890_v38, 0.0 }
 0x8c1   : > { %v6895_v51 = vpop.eup %5411  ;;  %v2826_v45 = vmul.f32 1.442695, %v2800_v30  ;;  %v2801_v52 = vsub.f32 %v6818_v35, %v2777_v28  ;;  %2860 = vadd.xlane.f32.xlu1 %v2859_v3 }
 0x8c2   : > { %v2768_v0 = vpop.xlane.xlu0 %2767  ;;  %v2850_v4 = vsel %vm751_vm0, %v6895_v51, 0.0 }
 0x8c3   : > { %v6900_v14 = vpop.eup %5413  ;;  %5415 = vpow2.f32 %v2826_v45  ;;  %v2828_v13 = vmul.f32 1.442695, %v2801_v52  ;;  %v2798_v47 = vsub.f32 %v6814_v8, %v2768_v0  ;;  %2851 = vadd.xlane.f32.xlu0 %v2850_v4 }
 0x8c4   : > { %v2771_v32 = vpop.xlane.xlu1 %2770  ;;  %v2853_v62 = vsel %vm751_vm0, %v6900_v14, 0.0 }
 0x8c5   : > { %5417 = vpow2.f32 %v2828_v13  ;;  %v2822_v36 = vmul.f32 1.442695, %v2798_v47  ;;  %v2799_v35 = vsub.f32 %v6824_v22, %v2771_v32  ;;  %2854 = vadd.xlane.f32.xlu1 %v2853_v62 }
 0x8c7   : > { %5419 = vpow2.f32 %v2822_v36  ;;  %v2824_v19 = vmul.f32 1.442695, %v2799_v35 }
 0x8c9   : > { %5421 = vpow2.f32 %v2824_v19 }
 0x8cd   : > { %v6906_v34 = vpop.eup %5415 }
 0x8ce   : > { %v2786_v30 = vpop.xlane.xlu0 %2785  ;;  %v2868_v28 = vsel %vm751_vm0, %v6906_v34, 0.0 }
 0x8cf   : > { %v6910_v8 = vpop.eup %5417  ;;  %v2804_v3 = vsub.f32 %v6832_v55, %v2786_v30  ;;  %2869 = vadd.xlane.f32.xlu0 %v2868_v28 }
 0x8d0   : > { %v2789_v45 = vpop.xlane.xlu1 %2788  ;;  %v2871_v52 = vsel %vm751_vm0, %v6910_v8, 0.0 }
 0x8d1   : > { %v6915_v22 = vpop.eup %5419  ;;  %v2834_v0 = vmul.f32 1.442695, %v2804_v3  ;;  %v2805_v4 = vsub.f32 %v6842_v23, %v2789_v45  ;;  %2872 = vadd.xlane.f32.xlu1 %v2871_v52 }
 0x8d2   : > { %v2780_v13 = vpop.xlane.xlu0 %2779  ;;  %v2862_v47 = vsel %vm751_vm0, %v6915_v22, 0.0 }
 0x8d3   : > { %v6920_v32 = vpop.eup %5421  ;;  %5423 = vpow2.f32 %v2834_v0  ;;  %v2802_v55 = vsub.f32 %v6838_v17, %v2780_v13  ;;  %2863 = vadd.xlane.f32.xlu0 %v2862_v47  ;;  %v2836_v35 = vmul.f32 1.442695, %v2805_v4 }
 0x8d4   : > { %v2783_v62 = vpop.xlane.xlu1 %2782  ;;  %v2865_v36 = vsel %vm751_vm0, %v6920_v32, 0.0 }
 0x8d5   : > { %v2830_v19 = vmul.f32 1.442695, %v2802_v55  ;;  %v2803_v30 = vsub.f32 %v6848_v15, %v2783_v62  ;;  %2866 = vadd.xlane.f32.xlu1 %v2865_v36 }
 0x8d6   : > { %v2988_v23 = vpop.permute.xlu0 %2987 }
 0x8d7   : > { %5425 = vpow2.f32 %v2830_v19  ;;  %4934 = vmatprep.subr.bf16.mxu1 %v2988_v23  ;;  %v2832_v28 = vmul.f32 1.442695, %v2803_v30 }
 0x8d8   : > { %4935 = vmatpush3.bf16.msra.mxu1 %v2988_v23  ;;  %5427 = vpow2.f32 %v2836_v35  ;;  %v5267_v23 = vld [vmem:[#allocation7 + $0x20] sm:$0xff]  }
 0x8d9   : > { %5429 = vpow2.f32 %v2832_v28 }
 0x8da   : > { %v2990_v3 = vpop.permute.xlu0 %2989 }
 0x8db   : > { %4936 = vmatprep.subr.bf16.mxu1 %v2990_v3 }
 0x8dc   : > { %4937 = vmatpush3.bf16.msra.mxu1 %v2990_v3 }
 0x8dd   : > { %v6926_v17 = vpop.eup %5423 }
 0x8de   : > { %v3049_v45 = vpop.permute.xlu0 %3048  ;;  %v2880_v52 = vsel %vm751_vm0, %v6926_v17, 0.0 }
 0x8df   : > { %4942 = vmatprep.subr.bf16.mxu0 %v3049_v45  ;;  %2881 = vadd.xlane.f32.xlu1 %v2880_v52 }
 0x8e1   : > { %v6930_v15 = vpop.eup %5425 }
 0x8e2   : > { %v2874_v0 = vsel %vm751_vm0, %v6930_v15, 0.0  ;;  %v6934_v4 = vpop.eup %5427 }
 0x8e3   : > { %2875 = vadd.xlane.f32.xlu1 %v2874_v0  ;;  %v2883_v13 = vsel %vm751_vm0, %v6934_v4, 0.0  ;;  %v6938_v47 = vpop.eup %5429 }
 0x8e4   : > { %v2877_v55 = vsel %vm751_vm0, %v6938_v47, 0.0 }
 0x8e7   : > { %2884 = vadd.xlane.f32.xlu1 %v2883_v13 }
 0x8e9   : > { %3109 = vrot.lane.b32.xlu0 %v6004_v50, %s5694_s23 }
 0x8eb   : > { %2878 = vadd.xlane.f32.xlu1 %v2877_v55 }
 0x8ed   : > { %3331 = vrot.lane.b32.xlu0 %v5932_v39, %s5695_s7 }
 0x8f1   : > { %3327 = vrot.lane.b32.xlu0 %v5934_v40, %s5695_s7  ;;  %v3051_v40 = vpop.permute.xlu1 %3050 }
 0x8f5   : > { %3329 = vrot.lane.b32.xlu0 %v5944_v49, %s5695_s7 }
 0x8f9   : > { %3469 = vrot.lane.b32.xlu0 %v5978_v24, %s5695_s7 }
 0x8fc   : > { %3111 = vrot.lane.b32.xlu1 %v6002_v46, %s5694_s23 }
 0x8fd   : > { %3398 = vrot.lane.b32.xlu0 %v5968_v11, %s5695_s7 }
 0x900   : > { %3333 = vrot.lane.b32.xlu1 %v5942_v48, %s5695_s7 }
 0x901   : > { %3538 = vrot.lane.b32.xlu0 %v6007_v57, %s5695_s7 }
 0x904   : > { %3400 = vrot.lane.b32.xlu1 %v5950_v58, %s5695_s7 }
 0x905   : > { %3467 = vrot.lane.b32.xlu0 %v5996_v43, %s5695_s7 }
 0x908   : > { %3402 = vrot.lane.b32.xlu1 %v5966_v9, %s5695_s7 }
 0x909   : > { %3534 = vrot.lane.b32.xlu0 %v6009_v59, %s5695_s7 }
 0x90c   : > { %3396 = vrot.lane.b32.xlu1 %v5952_v60, %s5695_s7 }
 0x910   : > { %3471 = vrot.lane.b32.xlu1 %v5994_v41, %s5695_s7 }
 0x914   : > { %3465 = vrot.lane.b32.xlu1 %v5980_v26, %s5695_s7 }
 0x918   : > { %3540 = vrot.lane.b32.xlu1 %v6021_v6, %s5695_s7 }
 0x91c   : > { %3536 = vrot.lane.b32.xlu1 %v6024_v7, %s5695_s7 }
 0x93c   : > { %v2846_v39 = vpop.xlane.xlu0 %2845 }
 0x940   : > { %v2840_v48 = vpop.xlane.xlu0 %2839 }
 0x944   : > { %v2849_v49 = vpop.xlane.xlu1 %2848 }
 0x945   : > { %5431 = vrcp.f32 %v2849_v49 }
 0x946   : > { %5433 = vrcp.f32 %v2840_v48 }
 0x947   : > { %5435 = vrcp.f32 %v2846_v39 }
 0x948   : > { %v2843_v58 = vpop.xlane.xlu1 %2842 }
 0x949   : > { %5437 = vrcp.f32 %v2843_v58 }
 0x94c   : > { %v2858_v60 = vpop.xlane.xlu0 %2857 }
 0x94e   : > { %v2861_v9 = vpop.xlane.xlu1 %2860 }
 0x94f   : > { %v5432_v11 = vpop.eup %5431  ;;  %5439 = vrcp.f32 %v2861_v9 }
 0x950   : > { %v2852_v24 = vpop.xlane.xlu0 %2851  ;;  %v5434_v26 = vpop.eup %5433  ;;  %v2905_v59 = vmul.f32 %v5432_v11, %v6877_v25 }
 0x951   : > { %5441 = vrcp.f32 %v2852_v24  ;;  %v5436_v41 = vpop.eup %5435  ;;  %v2902_v6 = vmul.f32 %v5434_v26, %v6871_v2 }
 0x952   : > { %5443 = vrcp.f32 %v2858_v60  ;;  %v2855_v43 = vpop.xlane.xlu1 %2854  ;;  %v2904_v62 = vmul.f32 %v5436_v41, %v6866_v16 }
 0x953   : > { %v5438_v57 = vpop.eup %5437  ;;  %5445 = vrcp.f32 %v2855_v43 }
 0x954   : > { %v2903_v7 = vmul.f32 %v5438_v57, %v6882_v56  ;;  %v2919_v35 = vpack.c.bf16 %v2905_v59, %v2904_v62  ;;  %v5268_v57 = vld [vmem:[#allocation7 + $0x28] sm:$0xff]  }
 0x956   : > { %v2918_v36 = vpack.c.bf16 %v2903_v7, %v2902_v6 }
 0x958   : > { %4930 = vmatprep.mubr.msk.bf16.mxu0 %vm751_vm0, %v2918_v36 }
 0x959   : > { %4931 = vmatmul.mubr.msk.bf16.vlgmr.msra.gmra.mrb[76].mxu0 %vm751_vm0, %v2919_v35  ;;  %v5440_v19 = vpop.eup %5439 }
 0x95a   : > { %4943 = vmatpush3.bf16.msra.mxu0 %v3049_v45  ;;  %v2909_v2 = vmul.f32 %v5440_v19, %v6890_v38 }
 0x95b   : > { %v5442_v30 = vpop.eup %5441  ;;  %4944 = vmatprep.subr.bf16.mxu0 %v3051_v40 }
 0x95c   : > { %v5444_v28 = vpop.eup %5443  ;;  %v2870_v25 = vpop.xlane.xlu0 %2869  ;;  %v2906_v16 = vmul.f32 %v5442_v30, %v6895_v51 }
 0x95d   : > { %v5446_v3 = vpop.eup %5445  ;;  %v2908_v0 = vmul.f32 %v5444_v28, %v6886_v37 }
 0x95e   : > { %4945 = vmatpush3.bf16.msra.mxu0 %v3051_v40  ;;  %v2873_v56 = vpop.xlane.xlu1 %2872  ;;  %v2907_v52 = vmul.f32 %v5446_v3, %v6900_v14 }
 0x95f   : > { %4958 = vmatprep.subr.bf16.mxu0 %v5267_v23  ;;  %5447 = vrcp.f32 %v2873_v56  ;;  %v2921_v55 = vpack.c.bf16 %v2909_v2, %v2908_v0 }
 0x960   : > { %v2864_v13 = vpop.xlane.xlu0 %2863  ;;  %v2920_v45 = vpack.c.bf16 %v2907_v52, %v2906_v16 }
 0x961   : > { %5449 = vrcp.f32 %v2864_v13 }
 0x962   : > { %5451 = vrcp.f32 %v2870_v25  ;;  %4938 = vmatprep.mubr.msk.bf16.mxu1 %vm751_vm0, %v2920_v45  ;;  %v2867_v39 = vpop.xlane.xlu1 %2866 }
 0x963   : > { %5453 = vrcp.f32 %v2867_v39  ;;  %4939 = vmatmul.mubr.msk.bf16.vlgmr.msra.gmra.mrb[80].mxu1 %vm751_vm0, %v2921_v55 }
 0x964   : > { %v3110_v38 = vpop.permute.xlu0 %3109 }
 0x965   : > { %4950 = vmatprep.subr.bf16.mxu1 %v3110_v38 }
 0x966   : > { %4951 = vmatpush3.bf16.msra.mxu1 %v3110_v38 }
 0x968   : > { %v3332_v51 = vpop.permute.xlu0 %3331 }
 0x969   : > { %v5448_v14 = vpop.eup %5447  ;;  %v3342_v2 = vsel %vm751_vm0, %v3332_v51, 0 }
 0x96a   : > { %v2913_v60 = vmul.f32 %v5448_v14, %v6910_v8 }
 0x96b   : > { %v5450_v40 = vpop.eup %5449 }
 0x96c   : > { %v5452_v37 = vpop.eup %5451  ;;  %v3328_v48 = vpop.permute.xlu0 %3327  ;;  %v2910_v9 = vmul.f32 %v5450_v40, %v6915_v22 }
 0x96d   : > { %v2882_v49 = vpop.xlane.xlu1 %2881  ;;  %v5454_v58 = vpop.eup %5453  ;;  %v2912_v24 = vmul.f32 %v5452_v37, %v6906_v34 }
 0x96e   : > { %v2911_v11 = vmul.f32 %v5454_v58, %v6920_v32 }
 0x96f   : > { %v2923_v43 = vpack.c.bf16 %v2913_v60, %v2912_v24 }
 0x970   : > { %v2922_v41 = vpack.c.bf16 %v2911_v11, %v2910_v9  ;;  %v3330_v59 = vpop.permute.xlu0 %3329 }
 0x971   : > { %v2876_v26 = vpop.xlane.xlu1 %2875 }
 0x972   : > { %4946 = vmatprep.mubr.msk.bf16.mxu0 %vm751_vm0, %v2922_v41 }
 0x973   : > { %4947 = vmatmul.mubr.msk.bf16.vlgmr.msra.gmra.mrb[80].mxu0 %vm751_vm0, %v2923_v43 }
 0x974   : > { %4959 = vmatpush3.bf16.msra.mxu0 %v5267_v23  ;;  %v6996_v8 = vpop.permute.xlu0 %3469 }
 0x975   : > { %v2885_v6 = vpop.xlane.xlu1 %2884  ;;  %4960 = vmatprep.subr.bf16.mxu0 %v5268_v57  ;;  %v3480_v11 = vsel %vm751_vm0, %v6996_v8, 0 }
 0x976   : > { %5455 = vrcp.f32 %v2885_v6 }
 0x977   : > { %5457 = vrcp.f32 %v2876_v26 }
 0x978   : > { %5459 = vrcp.f32 %v2882_v49  ;;  %4961 = vmatpush3.bf16.msra.mxu0 %v5268_v57 }
 0x979   : > { %v2879_v22 = vpop.xlane.xlu1 %2878  ;;  %5142 = vmatprep.subr.msk.bf16.mxu0 %vm751_vm0, %v6996_v8 }
 0x97a   : > { %5461 = vrcp.f32 %v2879_v22 }
 0x97d   : > { %v3112_v34 = vpop.permute.xlu1 %3111 }
 0x97e   : > { %4952 = vmatprep.subr.bf16.mxu1 %v3112_v34 }
 0x97f   : > { %4953 = vmatpush3.bf16.msra.mxu1 %v3112_v34 }
 0x980   : > { %5138 = vmatprep.subr.msk.bf16.mxu1 %vm751_vm0, %v3332_v51  ;;  %v5456_v32 = vpop.eup %5455 }
 0x981   : > { %v5458_v7 = vpop.eup %5457  ;;  %v2917_v35 = vmul.f32 %v5456_v32, %v6934_v4  ;;  %v3334_v28 = vpop.permute.xlu1 %3333 }
 0x982   : > { %v5460_v62 = vpop.eup %5459  ;;  %v2914_v19 = vmul.f32 %v5458_v7, %v6930_v15  ;;  %v3345_v15 = vsel %vm751_vm0, %v3334_v28, 0 }
 0x983   : > { %v2916_v23 = vmul.f32 %v5460_v62, %v6926_v17  ;;  %v3399_v17 = vpop.permute.xlu0 %3398 }
 0x984   : > { %v5462_v36 = vpop.eup %5461 }
 0x985   : > { %v2915_v30 = vmul.f32 %v5462_v36, %v6938_v47  ;;  %v2925_v3 = vpack.c.bf16 %v2917_v35, %v2916_v23  ;;  %v3401_v4 = vpop.permute.xlu1 %3400 }
 0x986   : > { %v3411_v16 = vsel %vm751_vm0, %v3401_v4, 0 }
 0x987   : > { %v2924_v25 = vpack.c.bf16 %v2915_v30, %v2914_v19  ;;  %v3539_v52 = vpop.permute.xlu0 %3538 }
 0x988   : > { %v3549_v39 = vsel %vm751_vm0, %v3539_v52, 0 }
 0x989   : > { %4954 = vmatprep.mubr.msk.bf16.mxu1 %vm751_vm0, %v2924_v25  ;;  %v3403_v47 = vpop.permute.xlu1 %3402 }
 0x98a   : > { %4955 = vmatmul.mubr.msk.bf16.vlgmr.msra.gmra.mrb[84].mxu1 %vm751_vm0, %v2925_v3  ;;  %v3414_v13 = vsel %vm751_vm0, %v3403_v47, 0 }
 0x98b   : > { %4979 = vmatpush3.bf16.xpose.msra.mxu1 %v3342_v2  ;;  %4982 = vmatprep.mubr.msk.bf16.mxu1 %vm751_vm0, %v3328_v48  ;;  %v3468_v45 = vpop.permute.xlu0 %3467 }
 0x98c   : > { %5139 = vmatprep.subr.msk.bf16.mxu1 %vm751_vm0, %v3334_v28 }
 0x98d   : > { %v3397_v56 = vpop.permute.xlu1 %3396 }
 0x98f   : > { %v3535_v38 = vpop.permute.xlu0 %3534 }
 0x991   : > { %v3472_v0 = vpop.permute.xlu1 %3471 }
 0x992   : > { %v3483_v6 = vsel %vm751_vm0, %v3472_v0, 0 }
 0x993   : > { %4981 = vmatpush3.bf16.xpose.msra.mxu1 %v3345_v15 }
 0x994   : > { %5140 = vmatprep.subr.msk.bf16.mxu1 %vm751_vm0, %v3401_v4 }
 0x995   : > { %v3466_v55 = vpop.permute.xlu1 %3465 }
 0x999   : > { %v3541_v51 = vpop.permute.xlu1 %3540 }
 0x99a   : > { %4983 = vmatmul.mubr.msk.bf16.vlgmr.msra.gmra.mrb[88].mxu1 %vm751_vm0, %v3330_v59  ;;  %v3552_v14 = vsel %vm751_vm0, %v3541_v51, 0 }
 0x99b   : > { %4987 = vmatpush3.bf16.xpose.msra.mxu1 %v3411_v16  ;;  %4990 = vmatprep.mubr.msk.bf16.mxu1 %vm751_vm0, %v3397_v56 }
 0x99c   : > { %5141 = vmatprep.subr.msk.bf16.mxu1 %vm751_vm0, %v3403_v47 }
 0x99d   : > { %v3537_v40 = vpop.permute.xlu1 %3536 }
 0x9a3   : > { %4989 = vmatpush3.bf16.xpose.msra.mxu1 %v3414_v13 }
 0x9a4   : > { %5144 = vmatprep.subr.msk.bf16.mxu1 %vm751_vm0, %v3539_v52 }
 0x9aa   : > { %4991 = vmatmul.mubr.msk.bf16.vlgmr.msra.gmra.mrb[92].mxu1 %vm751_vm0, %v3399_v17 }
 0x9ab   : > { %5003 = vmatpush3.bf16.xpose.msra.mxu1 %v3549_v39  ;;  %5006 = vmatprep.mubr.msk.bf16.mxu1 %vm751_vm0, %v3535_v38 }
 0x9ac   : > { %5145 = vmatprep.subr.msk.bf16.mxu1 %vm751_vm0, %v3541_v51 }
 0x9b3   : > { %5005 = vmatpush3.bf16.xpose.msra.mxu1 %v3552_v14 }
 0x9ba   : > { %5007 = vmatmul.mubr.msk.bf16.vlgmr.msra.gmra.mrb[96].mxu1 %vm751_vm0, %v3537_v40 }
 0xa2c   : > { %v4932_v37 = vpop.f32.mrb[76].mxu0 }
 0xa2d   : > { %v2972_v48 = vpop.f32.mrb[77].mxu0 }
 0xa2e   : > { %v4933_v49 = vpop.f32.mrb[78].mxu0 }
 0xa2f   : > { %v3171_v58 = vpack.c.bf16 %v4933_v49, %v4932_v37  ;;  %v2975_v60 = vpop.f32.mrb[79].mxu0 }
 0xa30   : > { %v3170_v9 = vpack.c.bf16 %v2975_v60, %v2972_v48 }
 0xa32   : > { %4962 = vmatprep.mubr.msk.bf16.mxu0 %vm751_vm0, %v3170_v9 }
 0xa33   : > { %4963 = vmatmul.mubr.msk.bf16.vlgmr.msra.gmra.mrb[60].mxu0 %vm751_vm0, %v3171_v58 }
 0xa34   : > { %4995 = vmatpush3.bf16.xpose.msra.mxu0 %v3480_v11 }
 0xa35   : > { %5143 = vmatprep.subr.msk.bf16.mxu0 %vm751_vm0, %v3472_v0 }
 0xa36   : > { %v4940_v24 = vpop.f32.mrb[80].mxu1 }
 0xa37   : > { %v3033_v26 = vpop.f32.mrb[81].mxu1 }
 0xa38   : > { %v4941_v41 = vpop.f32.mrb[82].mxu1 }
 0xa39   : > { %v3173_v43 = vpack.c.bf16 %v4941_v41, %v4940_v24  ;;  %v3036_v57 = vpop.f32.mrb[83].mxu1 }
 0xa3a   : > { %v3172_v59 = vpack.c.bf16 %v3036_v57, %v3033_v26 }
 0xa3c   : > { %4966 = vmatprep.mubr.msk.bf16.mxu0 %vm751_vm0, %v3172_v59  ;;  %4997 = vmatpush3.bf16.xpose.msra.mxu0 %v3483_v6 }
 0xa3d   : > { %4967 = vmatmul.mubr.msk.bf16.gmra.mrb[64].mxu0 %vm751_vm0, %v3173_v43 }
 0xa46   : > { %v4948_v22 = vpop.f32.mrb[80].mxu0 }
 0xa47   : > { %v3094_v8 = vpop.f32.mrb[81].mxu0 }
 0xa48   : > { %v4949_v34 = vpop.f32.mrb[82].mxu0 }
 0xa49   : > { %v3175_v32 = vpack.c.bf16 %v4949_v34, %v4948_v22  ;;  %v3097_v7 = vpop.f32.mrb[83].mxu0 }
 0xa4a   : > { %v3174_v62 = vpack.c.bf16 %v3097_v7, %v3094_v8 }
 0xa4c   : > { %4970 = vmatprep.mubr.msk.bf16.mxu0 %vm751_vm0, %v3174_v62 }
 0xa4d   : > { %4971 = vmatmul.mubr.msk.bf16.gmra.mrb[68].mxu0 %vm751_vm0, %v3175_v32 }
 0xa5d   : > { %v4956_v36 = vpop.f32.mrb[84].mxu1 }
 0xa5e   : > { %v3155_v35 = vpop.f32.mrb[85].mxu1 }
 0xa5f   : > { %v4957_v19 = vpop.f32.mrb[86].mxu1 }
 0xa60   : > { %v3177_v30 = vpack.c.bf16 %v4957_v19, %v4956_v36  ;;  %v3158_v23 = vpop.f32.mrb[87].mxu1 }
 0xa61   : > { %v3176_v28 = vpack.c.bf16 %v3158_v23, %v3155_v35 }
 0xa63   : > { %4974 = vmatprep.mubr.msk.bf16.mxu0 %vm751_vm0, %v3176_v28 }
 0xa64   : > { %4975 = vmatmul.mubr.msk.bf16.gmra.mrb[72].mxu0 %vm751_vm0, %v3177_v30 }
 0xa65   : > { %4998 = vmatprep.mubr.msk.bf16.mxu0 %vm751_vm0, %v3466_v55 }
 0xa6c   : > { %4999 = vmatmul.mubr.msk.bf16.vlgmr.msra.gmra.mrb[84].mxu0 %vm751_vm0, %v3468_v45 }
 0xa6d   : > { %v4984_v25 = vpop.f32.mrb[88].mxu1 }
 0xa6e   : > { %v7040_v3 = vsel %vm6038_vm1, %v4984_v25, -1e+30  ;;  %v3381_v2 = vpop.f32.mrb[89].mxu1 }
 0xa6f   : > { %v3625_v4 = vsel %vm751_vm0, %v7040_v3, -inf  ;;  %v4985_v15 = vpop.f32.mrb[90].mxu1  ;;  %v3603_v47 = vsel %vm6042_vm2, %v3381_v2, -1e+30 }
 0xa70   : > { %3626 = vmax.xlane.f32.xlu0 %v3625_v4  ;;  %v3384_v17 = vpop.f32.mrb[91].mxu1  ;;  %v3619_v52 = vsel %vm751_vm0, %v3603_v47, -inf  ;;  %v3606_v0 = vsel %vm6046_vm3, %v4985_v15, -1e+30 }
 0xa71   : > { %v3604_v56 = vsel %vm6054_vm4, %v3384_v17, -1e+30  ;;  %v3628_v13 = vsel %vm751_vm0, %v3606_v0, -inf }
 0xa72   : > { %v3622_v16 = vsel %vm751_vm0, %v3604_v56, -inf }
 0xa73   : > { %3623 = vmax.xlane.f32.xlu1 %v3622_v16 }
 0xa74   : > { %3620 = vmax.xlane.f32.xlu0 %v3619_v52 }
 0xa78   : > { %3629 = vmax.xlane.f32.xlu0 %v3628_v13 }
 0xa7d   : > { %v4992_v45 = vpop.f32.mrb[92].mxu1 }
 0xa7e   : > { %v7055_v55 = vsel %vm6038_vm1, %v4992_v45, -1e+30  ;;  %v3450_v39 = vpop.f32.mrb[93].mxu1 }
 0xa7f   : > { %v3637_v38 = vsel %vm751_vm0, %v7055_v55, -inf  ;;  %v4993_v51 = vpop.f32.mrb[94].mxu1  ;;  %v7061_v14 = vsel %vm6042_vm2, %v3450_v39, -1e+30 }
 0xa80   : > { %v3610_v40 = vsel %vm6046_vm3, %v4993_v51, -1e+30  ;;  %3638 = vmax.xlane.f32.xlu0 %v3637_v38  ;;  %v3453_v37 = vpop.f32.mrb[95].mxu1  ;;  %v3631_v58 = vsel %vm751_vm0, %v7061_v14, -inf }
 0xa81   : > { %v3640_v48 = vsel %vm751_vm0, %v3610_v40, -inf  ;;  %v3608_v49 = vsel %vm6054_vm4, %v3453_v37, -1e+30 }
 0xa82   : > { %3641 = vmax.xlane.f32.xlu1 %v3640_v48  ;;  %v3634_v60 = vsel %vm751_vm0, %v3608_v49, -inf }
 0xa84   : > { %3632 = vmax.xlane.f32.xlu0 %v3631_v58 }
 0xa86   : > { %3635 = vmax.xlane.f32.xlu1 %v3634_v60 }
 0xa8d   : > { %v5008_v9 = vpop.f32.mrb[96].mxu1 }
 0xa8e   : > { %v3588_v11 = vpop.f32.mrb[97].mxu1  ;;  %v3617_v53 = vsel %vm6038_vm1, %v5008_v9, -1e+30 }
 0xa8f   : > { %v3615_v24 = vsel %vm6042_vm2, %v3588_v11, -1e+30  ;;  %v5009_v26 = vpop.f32.mrb[98].mxu1 }
 0xa90   : > { %v3655_v41 = vsel %vm751_vm0, %v3615_v24, -inf  ;;  %v3591_v43 = vpop.f32.mrb[99].mxu1  ;;  %v7082_v6 = vsel %vm6046_vm3, %v5009_v26, -1e+30 }
 0xa91   : > { %v7076_v57 = vsel %vm6054_vm4, %v3591_v43, -1e+30  ;;  %3656 = vmax.xlane.f32.xlu0 %v3655_v41  ;;  %v3664_v22 = vsel %vm751_vm0, %v7082_v6, -inf }
 0xa92   : > { %v3658_v59 = vsel %vm751_vm0, %v7076_v57, -inf }
 0xa93   : > { %3659 = vmax.xlane.f32.xlu1 %v3658_v59 }
 0xa97   : > { %3665 = vmax.xlane.f32.xlu1 %v3664_v22 }
 0xafd   : > { %v3627_v36 = vpop.xlane.xlu0 %3626 }
 0xb00   : > { %v3624_v8 = vpop.xlane.xlu1 %3623 }
 0xb01   : > { %v3668_v34 = vsub.f32 %v3604_v56, %v3624_v8  ;;  %v3621_v35 = vpop.xlane.xlu0 %3620  ;;  %v3669_v56 = vsub.f32 %v7040_v3, %v3627_v36  ;;  %v3661_v8 = vsel %vm751_vm0, %v3617_v53, -inf }
 0xb02   : > { %v3667_v2 = vsub.f32 %v3603_v47, %v3621_v35 }
 0xb03   : > { %v3685_v32 = vmul.f32 1.442695, %v3668_v34  ;;  %v3687_v38 = vmul.f32 1.442695, %v3669_v56 }
 0xb04   : > { %v3683_v16 = vmul.f32 1.442695, %v3667_v2 }
 0xb05   : > { %5463 = vpow2.f32 %v3685_v32  ;;  %v3630_v19 = vpop.xlane.xlu0 %3629 }
 0xb06   : > { %v3670_v28 = vsub.f32 %v3606_v0, %v3630_v19 }
 0xb08   : > { %v3689_v4 = vmul.f32 1.442695, %v3670_v28 }
 0xb0a   : > { %5465 = vpow2.f32 %v3689_v4 }
 0xb0b   : > { %5467 = vpow2.f32 %v3683_v16 }
 0xb0d   : > { %v3639_v23 = vpop.xlane.xlu0 %3638 }
 0xb0e   : > { %v3673_v26 = vsub.f32 %v7055_v55, %v3639_v23 }
 0xb0f   : > { %v7086_v7 = vpop.eup %5463  ;;  %v3642_v30 = vpop.xlane.xlu1 %3641 }
 0xb10   : > { %v3718_v62 = vsel %vm751_vm0, %v7086_v7, 0.0  ;;  %v3674_v52 = vsub.f32 %v3610_v40, %v3642_v30  ;;  %v3695_v12 = vmul.f32 1.442695, %v3673_v26 }
 0xb11   : > { %3719 = vadd.xlane.f32.xlu1 %v3718_v62  ;;  %v3633_v17 = vpop.xlane.xlu0 %3632 }
 0xb12   : > { %v3671_v51 = vsub.f32 %v7061_v14, %v3633_v17  ;;  %v3697_v37 = vmul.f32 1.442695, %v3674_v52 }
 0xb13   : > { %v3636_v25 = vpop.xlane.xlu1 %3635 }
 0xb14   : > { %v3672_v15 = vsub.f32 %v3608_v49, %v3636_v25  ;;  %v3691_v41 = vmul.f32 1.442695, %v3671_v51  ;;  %v7120_v22 = vpop.eup %5465 }
 0xb15   : > { %v7123_v34 = vpop.eup %5467  ;;  %v3724_v9 = vsel %vm751_vm0, %v7120_v22, 0.0 }
 0xb16   : > { %v3693_v13 = vmul.f32 1.442695, %v3672_v15  ;;  %v3715_v32 = vsel %vm751_vm0, %v7123_v34, 0.0 }
 0xb18   : > { %5469 = vpow2.f32 %v3693_v13 }
 0xb19   : > { %5471 = vpow2.f32 %v3687_v38 }
 0xb1a   : > { %5473 = vpow2.f32 %v3697_v37 }
 0xb1b   : > { %5475 = vpow2.f32 %v3691_v41 }
 0xb1e   : > { %v3657_v45 = vpop.xlane.xlu0 %3656 }
 0xb1f   : > { %v3679_v40 = vsub.f32 %v3615_v24, %v3657_v45 }
 0xb20   : > { %v3660_v60 = vpop.xlane.xlu1 %3659 }
 0xb21   : > { %v3707_v43 = vmul.f32 1.442695, %v3679_v40  ;;  %v3680_v59 = vsub.f32 %v7076_v57, %v3660_v60 }
 0xb22   : > { %v7127_v57 = vpop.eup %5469 }
 0xb23   : > { %5477 = vpow2.f32 %v3707_v43  ;;  %v3709_v5 = vmul.f32 1.442695, %v3680_v59  ;;  %v7131_v62 = vpop.eup %5471  ;;  %v3730_v36 = vsel %vm751_vm0, %v7127_v57, 0.0 }
 0xb24   : > { %5479 = vpow2.f32 %v3695_v12  ;;  %v7135_v35 = vpop.eup %5473  ;;  %v3721_v19 = vsel %vm751_vm0, %v7131_v62, 0.0 }
 0xb25   : > { %5481 = vpow2.f32 %v3709_v5  ;;  %v7139_v30 = vpop.eup %5475  ;;  %v3736_v23 = vsel %vm751_vm0, %v7135_v35, 0.0 }
 0xb26   : > { %v3727_v25 = vsel %vm751_vm0, %v7139_v30, 0.0 }
 0xb2d   : > { %v7143_v28 = vpop.eup %5477 }
 0xb2e   : > { %v7147_v2 = vpop.eup %5479  ;;  %v3751_v4 = vsel %vm751_vm0, %v7143_v28, 0.0 }
 0xb2f   : > { %v7151_v15 = vpop.eup %5481  ;;  %v3733_v17 = vsel %vm751_vm0, %v7147_v2, 0.0 }
 0xb30   : > { %v3754_v56 = vsel %vm751_vm0, %v7151_v15, 0.0 }
 0xb3f   : > { %v5000_v39 = vpop.f32.mrb[84].mxu0 }
 0xb40   : > { %v7094_v0 = vsel %vm6038_vm1, %v5000_v39, -1e+30  ;;  %v3519_v47 = vpop.f32.mrb[85].mxu0  ;;  %v3666_v39 = vpop.xlane.xlu1 %3665 }
 0xb41   : > { %v3649_v48 = vsel %vm751_vm0, %v7094_v0, -inf  ;;  %v5001_v3 = vpop.f32.mrb[86].mxu0  ;;  %v7100_v49 = vsel %vm6042_vm2, %v3519_v47, -1e+30 }
 0xb42   : > { %v7104_v58 = vsel %vm6046_vm3, %v5001_v3, -1e+30  ;;  %v3522_v14 = vpop.f32.mrb[87].mxu0  ;;  %3650 = vmax.xlane.f32.xlu0 %v3649_v48  ;;  %v3643_v54 = vsel %vm751_vm0, %v7100_v49, -inf }
 0xb43   : > { %v3652_v11 = vsel %vm751_vm0, %v7104_v58, -inf  ;;  %v7111_v24 = vsel %vm6054_vm4, %v3522_v14, -1e+30 }
 0xb44   : > { %3653 = vmax.xlane.f32.xlu1 %v3652_v11  ;;  %v3646_v55 = vsel %vm751_vm0, %v7111_v24, -inf }
 0xb46   : > { %3644 = vmax.xlane.f32.xlu0 %v3643_v54 }
 0xb48   : > { %3647 = vmax.xlane.f32.xlu1 %v3646_v55 }
 0xb4a   : > { %3662 = vmax.xlane.f32.xlu0 %v3661_v8 }
 0xb4c   : > { %3725 = vadd.xlane.f32.xlu1 %v3724_v9 }
 0xb4e   : > { %3716 = vadd.xlane.f32.xlu0 %v3715_v32 }
 0xb50   : > { %3731 = vadd.xlane.f32.xlu1 %v3730_v36 }
 0xb52   : > { %3722 = vadd.xlane.f32.xlu0 %v3721_v19 }
 0xb54   : > { %3737 = vadd.xlane.f32.xlu1 %v3736_v23 }
 0xb56   : > { %3728 = vadd.xlane.f32.xlu0 %v3727_v25 }
 0xb58   : > { %3752 = vadd.xlane.f32.xlu1 %v3751_v4 }
 0xb5a   : > { %3734 = vadd.xlane.f32.xlu0 %v3733_v17 }
 0xb5c   : > { %3755 = vadd.xlane.f32.xlu1 %v3754_v56 }
 0xb70   : > { %3803 = vrot.lane.b32.xlu0 %v5964_v1, %s5695_s7  ;;  %v3682_v1 = vsub.f32 %v7082_v6, %v3666_v39 }
 0xb72   : > { %v3713_v48 = vmul.f32 1.442695, %v3682_v1 }
 0xb74   : > { %3864 = vrot.lane.b32.xlu0 %v7415_v20, %s5695_s7 }
 0xb78   : > { %3866 = vrot.lane.b32.xlu0 %v7416_v61, %s5695_s7 }
 0xb7c   : > { %3925 = vrot.lane.b32.xlu0 %v7417_v42, %s5695_s7 }
 0xb9e   : > { %v3720_v20 = vpop.xlane.xlu1 %3719 }
 0xbcf   : > { %v3651_v16 = vpop.xlane.xlu0 %3650 }
 0xbd0   : > { %v3677_v52 = vsub.f32 %v7094_v0, %v3651_v16 }
 0xbd2   : > { %v3703_v13 = vmul.f32 1.442695, %v3677_v52 }
 0xbd3   : > { %v3645_v45 = vpop.xlane.xlu0 %3644 }
 0xbd4   : > { %5483 = vpow2.f32 %v3703_v13  ;;  %v3675_v38 = vsub.f32 %v7100_v49, %v3645_v45 }
 0xbd6   : > { %v3699_v51 = vmul.f32 1.442695, %v3675_v38 }
 0xbd7   : > { %v3663_v47 = vpop.xlane.xlu0 %3662 }
 0xbd8   : > { %5485 = vpow2.f32 %v3699_v51  ;;  %v3681_v37 = vsub.f32 %v3617_v53, %v3663_v47 }
 0xbd9   : > { %5487 = vrcp.f32 %v3720_v20 }
 0xbda   : > { %v3711_v61 = vmul.f32 1.442695, %v3681_v37 }
 0xbdb   : > { %v3717_v42 = vpop.xlane.xlu0 %3716 }
 0xbdc   : > { %5489 = vpow2.f32 %v3711_v61 }
 0xbdd   : > { %5491 = vrcp.f32 %v3717_v42 }
 0xbde   : > { %v7168_v0 = vpop.eup %5483  ;;  %5493 = vpow2.f32 %v3713_v48 }
 0xbdf   : > { %v3723_v3 = vpop.xlane.xlu0 %3722  ;;  %v3745_v40 = vsel %vm751_vm0, %v7168_v0, 0.0 }
 0xbe0   : > { %3746 = vadd.xlane.f32.xlu0 %v3745_v40 }
 0xbe2   : > { %v7172_v49 = vpop.eup %5485 }
 0xbe3   : > { %v3729_v6 = vpop.xlane.xlu0 %3728  ;;  %v3739_v14 = vsel %vm751_vm0, %v7172_v49, 0.0  ;;  %v5488_v60 = vpop.eup %5487 }
 0xbe4   : > { %3740 = vadd.xlane.f32.xlu0 %v3739_v14  ;;  %v3780_v43 = vmul.f32 %v5488_v60, %v7086_v7  ;;  %v3654_v7 = vpop.xlane.xlu1 %3653 }
 0xbe6   : > { %v7176_v11 = vpop.eup %5489 }
 0xbe7   : > { %v5492_v26 = vpop.eup %5491  ;;  %v3735_v41 = vpop.xlane.xlu0 %3734  ;;  %v3757_v54 = vsel %vm751_vm0, %v7176_v11, 0.0 }
 0xbe8   : > { %3758 = vadd.xlane.f32.xlu1 %v3757_v54  ;;  %v3779_v53 = vmul.f32 %v5492_v26, %v7123_v34  ;;  %v7182_v59 = vpop.eup %5493  ;;  %v3678_v34 = vsub.f32 %v7104_v58, %v3654_v7  ;;  %v3648_v36 = vpop.xlane.xlu1 %3647 }
 0xbe9   : > { %v3760_v8 = vsel %vm751_vm0, %v7182_v59, 0.0  ;;  %v3676_v23 = vsub.f32 %v7111_v24, %v3648_v36 }
 0xbea   : > { %v3795_v55 = vpack.c.bf16 %v3780_v43, %v3779_v53  ;;  %v3705_v19 = vmul.f32 1.442695, %v3678_v34 }
 0xbeb   : > { %v3804_v12 = vpop.permute.xlu0 %3803  ;;  %v3701_v25 = vmul.f32 1.442695, %v3676_v23 }
 0xbec   : > { %5014 = vmatprep.mubr.msk.bf16.mxu0 %vm751_vm0, %v3795_v55  ;;  %5010 = vmatprep.subr.bf16.mxu0 %v3804_v12  ;;  %5495 = vpow2.f32 %v3705_v19  ;;  %v5269_v55 = vld [vmem:[#allocation7 + $0x30] sm:$0xff]  }
 0xbed   : > { %3761 = vadd.xlane.f32.xlu1 %v3760_v8  ;;  %5011 = vmatpush3.bf16.msra.mxu0 %v3804_v12  ;;  %5497 = vpow2.f32 %v3701_v25 }
 0xbee   : > { %5499 = vrcp.f32 %v3723_v3 }
 0xbef   : > { %v3865_v5 = vpop.permute.xlu0 %3864  ;;  %5501 = vrcp.f32 %v3729_v6 }
 0xbf3   : > { %v7187_v9 = vpop.permute.xlu0 %3866 }
 0xbf6   : > { %v7197_v4 = vpop.eup %5495 }
 0xbf7   : > { %v3926_v32 = vpop.permute.xlu0 %3925  ;;  %v7201_v17 = vpop.eup %5497 }
 0xbf8   : > { %5026 = vmatprep.subr.bf16.mxu1 %v3926_v32  ;;  %v5500_v13 = vpop.eup %5499 }
 0xbf9   : > { %5027 = vmatpush3.bf16.msra.mxu1 %v3926_v32  ;;  %v5502_v39 = vpop.eup %5501  ;;  %v3781_v1 = vmul.f32 %v5500_v13, %v7131_v62 }
 0xbfa   : > { %3986 = vrot.lane.b32.xlu0 %v6004_v50, %s5695_s7  ;;  %v3748_v50 = vsel %vm751_vm0, %v7197_v4, 0.0  ;;  %v3783_v20 = vmul.f32 %v5502_v39, %v7139_v30 }
 0xbfe   : > { %3805 = vrot.lane.b32.xlu1 %v5960_v63, %s5695_s7  ;;  %v3742_v63 = vsel %vm751_vm0, %v7201_v17, 0.0 }
 0xc02   : > { %3927 = vrot.lane.b32.xlu1 %v7414_v44, %s5695_s7  ;;  %v3726_v44 = vpop.xlane.xlu1 %3725 }
 0xc03   : > { %5503 = vrcp.f32 %v3726_v44 }
 0xc06   : > { %v3732_v58 = vpop.xlane.xlu1 %3731 }
 0xc07   : > { %5505 = vrcp.f32 %v3732_v58 }
 0xc08   : > { %5507 = vrcp.f32 %v3735_v41 }
 0xc0a   : > { %v3738_v24 = vpop.xlane.xlu1 %3737 }
 0xc0d   : > { %v5504_v38 = vpop.eup %5503 }
 0xc0e   : > { %v3753_v56 = vpop.xlane.xlu1 %3752  ;;  %v3782_v37 = vmul.f32 %v5504_v38, %v7120_v22 }
 0xc10   : > { %v3796_v48 = vpack.c.bf16 %v3782_v37, %v3781_v1 }
 0xc12   : > { %v3756_v16 = vpop.xlane.xlu1 %3755 }
 0xc13   : > { %5509 = vrcp.f32 %v3756_v16 }
 0xc14   : > { %5511 = vrcp.f32 %v3738_v24 }
 0xc15   : > { %5513 = vrcp.f32 %v3753_v56 }
 0xc26   : > { %3749 = vadd.xlane.f32.xlu1 %v3748_v50  ;;  %v5270_v50 = vld [vmem:[#allocation7 + $0x38] sm:$0xff]  }
 0xc2a   : > { %3743 = vadd.xlane.f32.xlu1 %v3742_v63 }
 0xc3b   : > { %3988 = vrot.lane.b32.xlu1 %v6002_v46, %s5695_s7  ;;  %v5506_v46 = vpop.eup %5505 }
 0xc3c   : > { %v3784_v61 = vmul.f32 %v5506_v46, %v7127_v57  ;;  %v5508_v42 = vpop.eup %5507 }
 0xc3d   : > { %v5510_v14 = vpop.eup %5509  ;;  %v3785_v22 = vmul.f32 %v5508_v42, %v7147_v2 }
 0xc3e   : > { %v3797_v6 = vpack.c.bf16 %v3784_v61, %v3783_v20  ;;  %v5512_v62 = vpop.eup %5511  ;;  %v3792_v57 = vmul.f32 %v5510_v14, %v7151_v15 }
 0xc3f   : > { %v5514_v30 = vpop.eup %5513  ;;  %v3786_v60 = vmul.f32 %v5512_v62, %v7135_v35 }
 0xc40   : > { %v3791_v41 = vmul.f32 %v5514_v30, %v7143_v28 }
 0xc41   : > { %v3798_v54 = vpack.c.bf16 %v3786_v60, %v3785_v22 }
 0xc42   : > { %v3801_v53 = vpack.c.bf16 %v3792_v57, %v3791_v41 }
 0xc6d   : > { %v3747_v51 = vpop.xlane.xlu0 %3746 }
 0xc71   : > { %v3741_v3 = vpop.xlane.xlu0 %3740 }
 0xc75   : > { %v3759_v52 = vpop.xlane.xlu1 %3758  ;;  %v3987_v26 = vpop.permute.xlu0 %3986 }
 0xc7a   : > { %v3762_v45 = vpop.xlane.xlu1 %3761 }
 0xc7b   : > { %5515 = vrcp.f32 %v3762_v45 }
 0xc7c   : > { %5517 = vrcp.f32 %v3759_v52 }
 0xc7e   : > { %v3806_v47 = vpop.permute.xlu1 %3805 }
 0xc7f   : > { %5012 = vmatprep.subr.bf16.mxu0 %v3806_v47 }
 0xc80   : > { %5013 = vmatpush3.bf16.msra.mxu0 %v3806_v47 }
 0xc81   : > { %5018 = vmatprep.subr.bf16.mxu0 %v3865_v5 }
 0xc82   : > { %v3928_v40 = vpop.permute.xlu1 %3927 }
 0xc83   : > { %5015 = vmatmul.mubr.msk.bf16.vlgmr.msra.gmra.mrb[88].mxu0 %vm751_vm0, %v3796_v48  ;;  %5028 = vmatprep.subr.bf16.mxu1 %v3928_v40 }
 0xc84   : > { %5019 = vmatpush3.bf16.msra.mxu0 %v3865_v5  ;;  %5022 = vmatprep.mubr.msk.bf16.mxu0 %vm751_vm0, %v3797_v6 }
 0xc85   : > { %5029 = vmatpush3.bf16.msra.mxu1 %v3928_v40  ;;  %5020 = vmatprep.subr.bf16.mxu0 %v7187_v9  ;;  %v5516_v15 = vpop.eup %5515 }
 0xc86   : > { %v5518_v43 = vpop.eup %5517  ;;  %v3794_v28 = vmul.f32 %v5516_v15, %v7182_v59 }
 0xc87   : > { %v3793_v8 = vmul.f32 %v5518_v43, %v7176_v11 }
 0xc88   : > { %5021 = vmatpush3.bf16.msra.mxu0 %v7187_v9 }
 0xc89   : > { %5034 = vmatprep.subr.bf16.mxu0 %v3987_v26  ;;  %v3802_v5 = vpack.c.bf16 %v3794_v28, %v3793_v8 }
 0xc8b   : > { %5023 = vmatmul.mubr.msk.bf16.vlgmr.msra.gmra.mrb[92].mxu0 %vm751_vm0, %v3798_v54 }
 0xc8c   : > { %5035 = vmatpush3.bf16.msra.mxu0 %v3987_v26  ;;  %5038 = vmatprep.mubr.msk.bf16.mxu0 %vm751_vm0, %v3801_v53 }
 0xcb3   : > { %v3750_v2 = vpop.xlane.xlu1 %3749 }
 0xcb4   : > { %5519 = vrcp.f32 %v3750_v2 }
 0xcb5   : > { %5521 = vrcp.f32 %v3741_v3  ;;  %v7242_v3 = vld [vmem:[%s7344_s3] ss:$0 sm:$0xff] }
 0xcb6   : > { %5523 = vrcp.f32 %v3747_v51 }
 0xcb7   : > { %v3744_v35 = vpop.xlane.xlu1 %3743 }
 0xcb8   : > { %5525 = vrcp.f32 %v3744_v35 }
 0xcbb   : > { %v3989_v12 = vpop.permute.xlu1 %3988 }
 0xcbc   : > { %5036 = vmatprep.subr.bf16.mxu0 %v3989_v12 }
 0xcbd   : > { %5037 = vmatpush3.bf16.msra.mxu0 %v3989_v12 }
 0xcbe   : > { %5042 = vmatprep.subr.bf16.mxu0 %v5269_v55  ;;  %v5520_v9 = vpop.eup %5519 }
 0xcbf   : > { %v5522_v32 = vpop.eup %5521  ;;  %v3790_v36 = vmul.f32 %v5520_v9, %v7197_v4 }
 0xcc0   : > { %5039 = vmatmul.mubr.msk.bf16.vlgmr.msra.gmra.mrb[96].mxu0 %vm751_vm0, %v3802_v5  ;;  %v5524_v7 = vpop.eup %5523  ;;  %v3787_v19 = vmul.f32 %v5522_v32, %v7172_v49 }
 0xcc1   : > { %5043 = vmatpush3.bf16.msra.mxu0 %v5269_v55  ;;  %v3789_v23 = vmul.f32 %v5524_v7, %v7168_v0 }
 0xcc2   : > { %v5526_v34 = vpop.eup %5525  ;;  %5044 = vmatprep.subr.bf16.mxu0 %v5270_v50 }
 0xcc3   : > { %v3788_v59 = vmul.f32 %v5526_v34, %v7201_v17  ;;  %v3800_v25 = vpack.c.bf16 %v3790_v36, %v3789_v23  ;;  %v7418_v36 = vld [vmem:[#allocation21_spill] sm:$0xff]  ;;  %v7419_v23 = vld [vmem:[#allocation20_spill] sm:$0xff] }
 0xcc5   : > { %v3799_v11 = vpack.c.bf16 %v3788_v59, %v3787_v19  ;;  %5045 = vmatpush3.bf16.msra.mxu0 %v5270_v50 }
 0xcc7   : > { %5030 = vmatprep.mubr.msk.bf16.mxu1 %vm751_vm0, %v3799_v11 }
 0xcc8   : > { %5031 = vmatmul.mubr.msk.bf16.vlgmr.msra.gmra.mrb[100].mxu1 %vm751_vm0, %v3800_v25  ;;  %v7420_v25 = vld [vmem:[#allocation22_spill] sm:$0xff] }
 0xd56   : > { %v5016_v63 = vpop.f32.mrb[88].mxu0 }
 0xd57   : > { %v3849_v44 = vpop.f32.mrb[89].mxu0 }
 0xd58   : > { %v5017_v58 = vpop.f32.mrb[90].mxu0 }
 0xd59   : > { %v4048_v24 = vpack.c.bf16 %v5017_v58, %v5016_v63  ;;  %v3852_v4 = vpop.f32.mrb[91].mxu0  ;;  %v7421_v58 = vld [vmem:[#allocation23_spill] sm:$0xff] }
 0xd5a   : > { %v4047_v56 = vpack.c.bf16 %v3852_v4, %v3849_v44 }
 0xd5c   : > { %5046 = vmatprep.mubr.msk.bf16.mxu0 %vm751_vm0, %v4047_v56 }
 0xd5d   : > { %5047 = vmatmul.mubr.msk.bf16.vlgmr.msra.gmra.mrb[60].mxu0 %vm751_vm0, %v4048_v24 }
 0xd5e   : > { %v5024_v0 = vpop.f32.mrb[92].mxu0 }
 0xd5f   : > { %v3910_v49 = vpop.f32.mrb[93].mxu0 }
 0xd60   : > { %v5025_v17 = vpop.f32.mrb[94].mxu0 }
 0xd61   : > { %v4050_v16 = vpack.c.bf16 %v5025_v17, %v5024_v0  ;;  %v3913_v52 = vpop.f32.mrb[95].mxu0  ;;  %v7422_v0 = vld [vmem:[#allocation24_spill] sm:$0xff] }
 0xd62   : > { %v4049_v13 = vpack.c.bf16 %v3913_v52, %v3910_v49 }
 0xd64   : > { %5050 = vmatprep.mubr.msk.bf16.mxu0 %vm751_vm0, %v4049_v13 }
 0xd65   : > { %5051 = vmatmul.mubr.msk.bf16.gmra.mrb[64].mxu0 %vm751_vm0, %v4050_v16 }
 0xd93   : > { %v5040_v45 = vpop.f32.mrb[96].mxu0 }
 0xd94   : > { %v4032_v39 = vpop.f32.mrb[97].mxu0 }
 0xd95   : > { %v5041_v38 = vpop.f32.mrb[98].mxu0 }
 0xd96   : > { %v4054_v51 = vpack.c.bf16 %v5041_v38, %v5040_v45  ;;  %v4035_v46 = vpop.f32.mrb[99].mxu0 }
 0xd97   : > { %v4053_v1 = vpack.c.bf16 %v4035_v46, %v4032_v39 }
 0xd9b   : > { %v5032_v47 = vpop.f32.mrb[100].mxu1 }
 0xd9c   : > { %v3971_v20 = vpop.f32.mrb[101].mxu1 }
 0xd9d   : > { %v5033_v37 = vpop.f32.mrb[102].mxu1 }
 0xd9e   : > { %v4052_v61 = vpack.c.bf16 %v5033_v37, %v5032_v47  ;;  %v3974_v48 = vpop.f32.mrb[103].mxu1 }
 0xd9f   : > { %v4051_v42 = vpack.c.bf16 %v3974_v48, %v3971_v20 }
 0xda1   : > { %5054 = vmatprep.mubr.msk.bf16.mxu0 %vm751_vm0, %v4051_v42 }
 0xda2   : > { %5055 = vmatmul.mubr.msk.bf16.gmra.mrb[68].mxu0 %vm751_vm0, %v4052_v61 }
 0xda3   : > { %5058 = vmatprep.mubr.msk.bf16.mxu0 %vm751_vm0, %v4053_v1 }
 0xdaa   : > { %5059 = vmatmul.mubr.msk.bf16.gmra.mrb[72].mxu0 %vm751_vm0, %v4054_v51 }
 0xe30   : > { %v5048_v40 = vpop.f32.mrb[60].mxu0 }
 0xe31   : > { %v4212_v6 = vadd.f32 %v5048_v40, %v7242_v3  ;;  %v4125_v14 = vpop.f32.mrb[61].mxu0 }
 0xe32   : > { %v4210_v62 = vadd.f32 %v7242_v3, %v4125_v14  ;;  %v5049_v30 = vpop.f32.mrb[62].mxu0 }
 0xe33   : > { %4228 = vst [vmem:[%s7246_s25 + $0x10] sm:$0xff] %v4212_v6  ;;  %v4213_v22 = vadd.f32 %v5049_v30, %v7242_v3  ;;  %v4128_v57 = vpop.f32.mrb[63].mxu0 }
 0xe34   : > { %4226 = vst [vmem:[%s7246_s25] sm:$0xff] %v4210_v62  ;;  %v4211_v60 = vadd.f32 %v7242_v3, %v4128_v57 }
 0xe35   : > { %4229 = vst [vmem:[%s7246_s25 + $0x18] sm:$0xff] %v4213_v22 }
 0xe36   : > { %4227 = vst [vmem:[%s7246_s25 + $0x8] sm:$0xff] %v4211_v60 }
 0xe38   : > { %v5052_v26 = vpop.f32.mrb[64].mxu0 }
 0xe39   : > { %v5066_v41 = vadd.f32 %v5052_v26, %v6734_v27  ;;  %v4141_v54 = vpop.f32.mrb[65].mxu0 }
 0xe3a   : > { %v5067_v53 = vadd.f32 %v4141_v54, %v6736_v31  ;;  %v5053_v2 = vpop.f32.mrb[66].mxu0 }
 0xe3b   : > { %v4216_v15 = vadd.f32 %v5066_v41, %v7242_v3  ;;  %v5068_v35 = vadd.f32 %v5053_v2, %v6738_v18  ;;  %v4144_v43 = vpop.f32.mrb[67].mxu0 }
 0xe3c   : > { %v4214_v28 = vadd.f32 %v5067_v53, %v7242_v3  ;;  %v5069_v55 = vadd.f32 %v4144_v43, %v6740_v29 }
 0xe3d   : > { %4232 = vst [vmem:[%s7246_s25 + $0x30] sm:$0xff] %v4216_v15  ;;  %v4217_v12 = vadd.f32 %v5068_v35, %v7242_v3 }
 0xe3e   : > { %4230 = vst [vmem:[%s7246_s25 + $0x20] sm:$0xff] %v4214_v28  ;;  %v4215_v27 = vadd.f32 %v5069_v55, %v7242_v3 }
 0xe3f   : > { %4233 = vst [vmem:[%s7246_s25 + $0x38] sm:$0xff] %v4217_v12 }
 0xe40   : > { %4231 = vst [vmem:[%s7246_s25 + $0x28] sm:$0xff] %v4215_v27 }
 0xe75   : > { %v5056_v31 = vpop.f32.mrb[68].mxu0 }
 0xe76   : > { %v5070_v18 = vadd.f32 %v5056_v31, %v6742_v33  ;;  %v4157_v8 = vpop.f32.mrb[69].mxu0 }
 0xe77   : > { %v5071_v5 = vadd.f32 %v4157_v8, %v6744_v21  ;;  %v5057_v9 = vpop.f32.mrb[70].mxu0 }
 0xe78   : > { %v4220_v29 = vadd.f32 %v5070_v18, %v7242_v3  ;;  %v5072_v32 = vadd.f32 %v5057_v9, %v6746_v10  ;;  %v4160_v7 = vpop.f32.mrb[71].mxu0 }
 0xe79   : > { %v4218_v34 = vadd.f32 %v5071_v5, %v7242_v3  ;;  %v5073_v19 = vadd.f32 %v4160_v7, %v7418_v36 }
 0xe7a   : > { %4236 = vst [vmem:[%s7246_s25 + $0x50] sm:$0xff] %v4220_v29  ;;  %v4221_v59 = vadd.f32 %v5072_v32, %v7242_v3 }
 0xe7b   : > { %4234 = vst [vmem:[%s7246_s25 + $0x40] sm:$0xff] %v4218_v34  ;;  %v4219_v33 = vadd.f32 %v5073_v19, %v7242_v3 }
 0xe7c   : > { %4237 = vst [vmem:[%s7246_s25 + $0x58] sm:$0xff] %v4221_v59 }
 0xe7d   : > { %4235 = vst [vmem:[%s7246_s25 + $0x48] sm:$0xff] %v4219_v33  ;;  %v5060_v21 = vpop.f32.mrb[72].mxu0 }
 0xe7e   : > { %v5074_v11 = vadd.f32 %v5060_v21, %v7419_v23  ;;  %v4173_v10 = vpop.f32.mrb[73].mxu0 }
 0xe7f   : > { %v5075_v50 = vadd.f32 %v4173_v10, %v7420_v25  ;;  %v5061_v63 = vpop.f32.mrb[74].mxu0 }
 0xe80   : > { %v4224_v44 = vadd.f32 %v5074_v11, %v7242_v3  ;;  %v5076_v24 = vadd.f32 %v5061_v63, %v7421_v58  ;;  %v4176_v4 = vpop.f32.mrb[75].mxu0 }
 0xe81   : > { %v4222_v56 = vadd.f32 %v5075_v50, %v7242_v3  ;;  %v5077_v49 = vadd.f32 %v4176_v4, %v7422_v0 }
 0xe82   : > { %4240 = vst [vmem:[%s7246_s25 + $0x70] sm:$0xff] %v4224_v44  ;;  %v4225_v17 = vadd.f32 %v5076_v24, %v7242_v3 }
 0xe83   : > { %4238 = vst [vmem:[%s7246_s25 + $0x60] sm:$0xff] %v4222_v56  ;;  %v4223_v16 = vadd.f32 %v5077_v49, %v7242_v3 }
 0xe84   : > { %4241 = vst [vmem:[%s7246_s25 + $0x78] sm:$0xff] %v4225_v17 }
 0xe85   : > { %4239 = vst [vmem:[%s7246_s25 + $0x68] sm:$0xff] %v4223_v16 }
 0xe86   : > { %5626 = shalt.err (!%p5623_p2)
}
 0xe87   : > { %s5627_s21 = scalar_lea.hbm %s7291_s5, 2048  ;;  %s5631_s8 = scalar_lea.hbm %s7345_s4, 4096 }
 0xe88   : > { %p5628_p13 = scmp.ne.s32.totalorder %s7291_s5, %s5627_s21  ;;  %p5632_p4 = scmp.lt.u32.totalorder %s7291_s5, %s7345_s4 }
 0xe89   : > { %p5633_p7 = scmp.lt.u32.totalorder %s5631_s8, %s5627_s21  ;;  %p5635_p11 = scmp.lt.u32.totalorder %s5627_s21, %s7291_s5 }
 0xe8a   : > { %p5629_p6 = pnand %p5628_p13, %p7423_p0 }
 0xe8b   : > { %p5634_p8 = por %p5633_p7, %p5632_p4 }
 0xe8c   : > { %p5630_p10 = pneg %p5629_p6 }
 0xe8d   : > { %p5636_p1 = por %p5635_p11, %p5634_p8 }
 0xe8f   : > { %p5637_p3 = pnand %p5636_p1, %p5630_p10 }
 0xe91   : > { %5640 = shalt.err (!%p5637_p3)
}
 0xe92   : > { %s5697_s25 = smov 128   ;;  %s5698_s9 = smov 8  }
 0xe93   : > { %5156 = dma.vmem_to_hbm [thread:$0]  (%p7423_p0), %s7293_s27, 2048, %s7291_s5, %s4243_s19, %s5697_s25, %s5697_s25, %s5698_s9  }
 0xe94 PF: > { %s4272_s20 = sand.u32 1, %s5671_s15   ;;  %p7424_p5 = scmp.ne.s32.totalorder %s7368_s22, 0 }
 0xe95   : > { %p7425_p9 = scmp.ge.s32.totalorder %s5683_s18, 2  ;;  %s4273_s29 = scalar_lea.sflag [#allocation4], %s4272_s20 }
 0xe97   : > { %p5170_p12 = pnand %p7425_p9, %p7424_p5 }
 0xe99   : > { %5666 = dma.done.wait (!%p5170_p12), %s4273_s29, 2048  }
 0xe9a   : > { %5668 = vsyncadd (!%p5170_p12), %s4273_s29, 4294965248  ;;  %p18_p2 = scmp.ge.s32.totalorder %s5837_s11, 4   ;;  %s7426_s15 = smov %s5675_s16 }
 0xe9b   : > { %s7427_s16 = smov %s5679_s17  ;;  %s7428_s17 = smov %s5846_s14 }
 0xe9c   : > { %s7429_s18 = smov %s5837_s11  ;;  %20 = sbr.rel (!%p18_p2) target bundleno = 6 (0x6), region = 89 }
 0xea3   :  { %4278 = vsyncpa [#allocation3], 1 }
 0xea4   :  { %4280 = vsyncpa [#allocation3 + $0x1], 1 }
 0xea5   :  { %4281 = vsyncpa [#allocation6], 1 }
 0xea6   :  { %4282 = vsyncpa [#allocation4], 1 }
 0xea7   :  { %4284 = vsyncpa [#allocation4 + $0x1], 1 }

</bundles_post_ra>
